<compile_context>
chip_gen: v5e
topology: v5e:2x2
jax: 0.10.0
libtpu: 0.0.40
codegen_flags: <defaults>
</compile_context>

<pallas_src>
import functools

import jax
import jax.numpy as jnp
from jax.experimental import pallas as pl
from jax.experimental.pallas import tpu as pltpu

NEG_SLOPE = 0.01   # nn.LeakyReLU default
LN_EPS = 1e-5      # nn.LayerNorm default


def _leaky_relu(x):
    return jnp.where(x >= 0, x, NEG_SLOPE * x)


def gca_kernel(cls_ref, feat_ref,
               wht_ref, wt_ref, bh_ref, bt_ref,
               w1_ref, b1_ref, w2_ref, b2_ref,
               gamma_ref, beta_ref,
               out_ref,
               et_scr,
               *, topk, scale, nc, nf, compute_dtype):
    """One grid step == `block_b` batch elements. Everything lives in VMEM."""
    bb, _, d = cls_ref.shape
    n = nc + nf
    cdt = compute_dtype

    cls_val = cls_ref[...]                                    # (Bb, Nc, D) f32
    bh, bt = bh_ref[...], bt_ref[...]
    b1, b2 = b1_ref[...], b2_ref[...]
    gamma, beta = gamma_ref[...], beta_ref[...]

    # ---- fused projections (no raw-input concat) -------------------------
    # cls_flat @ [Wh | Wt] gives e_h and e_t[:, :Nc] from ONE matmul.
    cls_flat = cls_val.reshape(bb * nc, d).astype(cdt)
    cls_proj = jnp.dot(cls_flat, wht_ref[...],
                       preferred_element_type=jnp.float32)    # (Bb*Nc, 2D)
    e_h = (cls_proj[:, :d] + bh).reshape(bb, nc, d)           # (Bb, Nc, D) f32
    et_scr[:, 0:nc, :] = (cls_proj[:, d:] + bt).reshape(bb, nc, d)

    feat_flat = feat_ref[...].reshape(bb * nf, d).astype(cdt)
    et_feat = jnp.dot(feat_flat, wt_ref[...],
                      preferred_element_type=jnp.float32) + bt
    et_scr[:, nc:n, :] = et_feat.reshape(bb, nf, d)

    # e_t cast to the matmul dtype exactly ONCE; reused by both einsums.
    e_t_c = et_scr[...].astype(cdt)                           # (Bb, N, D)

    # Attention logits.  `scale` is dropped here (positive scale is top-k
    # invariant) and applied only to the K selected values below.
    logits = jnp.einsum('bqd,bkd->bqk', e_h.astype(cdt), e_t_c,
                        preferred_element_type=jnp.float32)   # (Bb, Nc, N)

    # Broadcast iota — keeps vreg pressure low across the K rounds.
    iota_n = jax.lax.broadcasted_iota(jnp.int32, (1, 1, n), 2)

    # top-k via K rounds of masked argmax (K is a small static constant).
    cur = logits
    w_vals = []                                               # K x (Bb, Nc, 1)
    onehots = []                                              # K x (Bb, Nc, N) in cdt
    for k in range(topk):
        m_k = jnp.max(cur, axis=-1, keepdims=True)            # (Bb, Nc, 1)
        idx_k = jnp.min(jnp.where(cur == m_k, iota_n, n),
                        axis=-1, keepdims=True)               # first index of max
        oh_k = iota_n == idx_k                                 # (Bb, Nc, N) bool
        onehots.append(oh_k.astype(cdt))                       # 0/1 exact in bf16
        w_vals.append(m_k)
        if k + 1 < topk:
            cur = jnp.where(oh_k, -jnp.inf, cur)

    # Fused gather: ONE batched matmul for all K one-hot gathers (no scratch).
    oh_all = jnp.concatenate(onehots, axis=1)                 # (Bb, K*Nc, N)
    nb_all = jnp.einsum('bqn,bnd->bqd', oh_all, e_t_c,
                        preferred_element_type=jnp.float32)   # (Bb, K*Nc, D)
    nb = [nb_all[:, k * nc:(k + 1) * nc, :] for k in range(topk)]

    # softmax over k of the scaled top-k logits (w_vals[0] is the per-row max).
    w_exp = [jnp.exp((w - w_vals[0]) * scale) for w in w_vals]
    w_den = w_exp[0]
    for e in w_exp[1:]:
        w_den = w_den + e
    inv_w_den = 1.0 / w_den
    probs = [e * inv_w_den for e in w_exp]                    # K x (Bb, Nc, 1)

    # gate + ka_weight, reproducing einsum('ijkl,ijkm->ijk') == sum_l * sum_m.
    # tanh runs in compute_dtype (bf16 EUP on v6e/v7x); sums accumulate in f32.
    ka_vals = []
    for p_k, nb_k in zip(probs, nb):
        eh_r = (1.0 - p_k) * e_h + p_k * nb_k                 # (Bb, Nc, D)
        gate = jnp.tanh((e_h + eh_r).astype(cdt))
        ka = (jnp.sum(nb_k, axis=-1, keepdims=True) *
              jnp.sum(gate.astype(jnp.float32), axis=-1, keepdims=True))
        ka_vals.append(ka)                                    # (Bb, Nc, 1)

    ka_max = ka_vals[0]
    for ka in ka_vals[1:]:
        ka_max = jnp.maximum(ka_max, ka)
    ka_exp = [jnp.exp(ka - ka_max) for ka in ka_vals]
    ka_den = ka_exp[0]
    for e in ka_exp[1:]:
        ka_den = ka_den + e
    inv_ka_den = 1.0 / ka_den

    e_nh = jnp.zeros_like(e_h)
    for e_k, nb_k in zip(ka_exp, nb):
        e_nh = e_nh + (e_k * inv_ka_den) * nb_k               # (Bb, Nc, D)

    # output heads — flattened so linear1/linear2 are single big matmuls.
    sum_in = (((e_h + e_nh) * 0.1 + cls_val).reshape(bb * nc, d)).astype(cdt)
    bi_in = ((e_h * e_nh * 0.1 + cls_val).reshape(bb * nc, d)).astype(cdt)
    sum_emb = _leaky_relu(jnp.dot(sum_in, w1_ref[...],
                                  preferred_element_type=jnp.float32) + b1)
    bi_emb = _leaky_relu(jnp.dot(bi_in, w2_ref[...],
                                 preferred_element_type=jnp.float32) + b2)
    emb = sum_emb + bi_emb                                    # (Bb*Nc, D)

    # LayerNorm over D (biased variance, eps=1e-5)
    mu = jnp.mean(emb, axis=-1, keepdims=True)
    var = jnp.mean((emb - mu) ** 2, axis=-1, keepdims=True)
    normed = (emb - mu) * jax.lax.rsqrt(var + LN_EPS)
    out_ref[...] = (normed * gamma + beta).reshape(bb, nc, d)


# ---------------------------------------------------------------------------
# generation-aware sizing helpers
# ---------------------------------------------------------------------------

def _vmem_capacity_bytes():
    """Physical VMEM per TensorCore (v5e/v6e: 128 MiB, v7x: 64 MiB)."""
    try:
        info = pltpu.get_tpu_info()
        for name in ("vmem_capacity_bytes", "vmem_size_bytes", "vmem_bytes"):
            val = getattr(info, name, None)
            if val:
                return int(val)
    except Exception:
        pass
    return 64 << 20   # conservative default (v7x)


def _block_vmem_bytes(bb, nc, nf, d, topk, cbytes):
    """Rough per-grid-step VMEM footprint (bytes) for block_b == bb."""
    n = nc + nf
    f32 = 4
    io = 2 * bb * (2 * nc + nf) * d * f32               # double-buffered cls/feats/out
    wgt = 5 * d * d * cbytes + 6 * d * f32              # [Wh|Wt], Wt, W1, W2 (single-buf)
    scr = bb * n * d * f32                              # e_t scratch
    tmp_f32 = bb * ((2 * topk + 9) * nc * d + n * d + 2 * nc * n) * f32
    tmp_cdt = bb * (n * d + 2 * topk * nc * n) * cbytes
    return io + wgt + scr + tmp_f32 + tmp_cdt + (2 << 20)   # + fixed margin


def _pick_block_b(batch, nc, nf, d, topk, budget, cbytes, two_tc, row_cap=2048):
    """Largest batch divisor whose footprint fits `budget` (and <= row_cap MXU
    rows).  Only 2-TC chips (v7x) prefer >= 2 (ideally even) grid steps; on
    single-TC v5e/v6e the grid is a serial loop, so biggest block wins."""
    divisors = [bb for bb in range(1, batch + 1) if batch % bb == 0]
    fits = [bb for bb in divisors
            if bb * nc <= row_cap
            and _block_vmem_bytes(bb, nc, nf, d, topk, cbytes) <= budget]
    if not fits:
        return 1
    if two_tc:
        even = [bb for bb in fits if batch // bb >= 2 and (batch // bb) % 2 == 0]
        multi = [bb for bb in fits if batch // bb >= 2]
        if even:
            return max(even)
        if multi:
            return max(multi)
    return max(fits)


# ---------------------------------------------------------------------------
# wrapper
# ---------------------------------------------------------------------------

def graphic_cls_aggregation_pallas(cls_tokens, feats, params, tok_ratio=0.5,
                                   *, block_b=None, compute_dtype=jnp.float32):
    B, Nc, D = cls_tokens.shape
    Bf, Nf, Df = feats.shape
    if Bf != B or Df != D:
        raise ValueError("cls_tokens / feats shape mismatch")
    N = Nc + Nf
    topk = int(tok_ratio * Nc)
    if not (0 < topk <= N):
        raise ValueError(f"topk={topk} must lie in (0, {N}]")
    scale = float(D) ** (-0.5)

    wh, bh, wt, bt, w1, b1, w2, b2, gamma, beta = params
    cdt = compute_dtype
    cbytes = jnp.dtype(cdt).itemsize

    # Fused projection RHS [Wh | Wt]; weights stored in compute_dtype (bf16 in
    # production halves weight DMA/VMEM and hits the bf16 MXU rate).
    wht = jnp.concatenate([wh, wt], axis=1).astype(cdt)       # (D, 2D)
    wt_c = wt.astype(cdt)
    w1_c = w1.astype(cdt)
    w2_c = w2.astype(cdt)

    # Generation-aware VMEM budget (v7x: ~51 MiB, v5e/v6e: ~102 MiB).
    vmem_cap = _vmem_capacity_bytes()
    budget = int(vmem_cap * 4 // 5)
    two_tc = vmem_cap <= (64 << 20)   # 64 MiB/TC is the v7x (2-TC) signature

    if block_b is None:
        block_b = _pick_block_b(B, Nc, Nf, D, topk, budget, cbytes, two_tc)
    if B % block_b != 0:
        raise ValueError("block_b must divide the batch size")
    grid = (B // block_b,)

    kernel = functools.partial(gca_kernel, topk=topk, scale=scale,
                               nc=Nc, nf=Nf, compute_dtype=cdt)

    blk3 = lambda b: (b, 0, 0)
    full2 = lambda b: (0, 0)

    def _call(weight_mode):
        if weight_mode is None:
            wspec = lambda shape: pl.BlockSpec(shape, full2)
        else:
            wspec = lambda shape: pl.BlockSpec(shape, full2,
                                               pipeline_mode=weight_mode)
        return pl.pallas_call(
            kernel,
            out_shape=jax.ShapeDtypeStruct((B, Nc, D), jnp.float32),
            grid=grid,
            in_specs=[
                pl.BlockSpec((block_b, Nc, D), blk3),       # cls_tokens
                pl.BlockSpec((block_b, Nf, D), blk3),       # feats
                wspec((D, 2 * D)),                          # [Wh | Wt]
                wspec((D, D)),                              # Wt (feats path)
                wspec((1, D)), wspec((1, D)),               # bh, bt
                wspec((D, D)), wspec((1, D)),               # W1, b1
                wspec((D, D)), wspec((1, D)),               # W2, b2
                wspec((1, D)), wspec((1, D)),               # gamma, beta
            ],
            out_specs=pl.BlockSpec((block_b, Nc, D), blk3),
            scratch_shapes=[
                pltpu.VMEM((block_b, N, D), jnp.float32),   # e_t (projected tokens)
            ],
            compiler_params=pltpu.CompilerParams(
                dimension_semantics=("parallel",),
                vmem_limit_bytes=budget),
        )(cls_tokens, feats, wht, wt_c, bh, bt, w1_c, b1, w2_c, b2, gamma, beta)

    try:
        # Grid-invariant weights/biases/LN single-buffered: they never change
        # across the grid, so the second pipeline buffer is pure VMEM waste.
        return _call(pl.Buffered(1))
    except Exception:
        # TODO(synk): drop this fallback once single-buffered pipeline_mode is
        # guaranteed by the deployed jax; it only costs duplicate weight buffers.
        return _call(None)


# ---------------------------------------------------------------------------
# pure-JAX reference (mirrors the PyTorch forward) + param init + test
# ---------------------------------------------------------------------------

def gca_reference(cls_tokens, feats, params, tok_ratio=0.5):
    wh, bh, wt, bt, w1, b1, w2, b2, gamma, beta = params
    B, Nc, D = cls_tokens.shape
    topk = int(tok_ratio * Nc)
    scale = float(D) ** (-0.5)

    x = jnp.concatenate([cls_tokens, feats], axis=1)
    e_h = cls_tokens @ wh + bh
    e_t = x @ wt + bt
    logits = (e_h * scale) @ jnp.swapaxes(e_t, -1, -2)
    w_topk, idx = jax.lax.top_k(logits, topk)
    nb_h = jax.vmap(lambda et, ix: et[ix])(e_t, idx)                     # (B, Nc, K, D)
    p = jax.nn.softmax(w_topk, axis=-1)                                  # (B, Nc, K)
    eh_r = (1.0 - p)[..., None] * e_h[:, :, None, :] + p[..., None] * nb_h
    gate = jnp.tanh(e_h[:, :, None, :] + eh_r)
    ka_w = nb_h.sum(-1) * gate.sum(-1)                                   # einsum quirk
    ka_p = jax.nn.softmax(ka_w, axis=-1)
    e_Nh = (ka_p[..., None] * nb_h).sum(axis=2)
    sum_emb = _leaky_relu(((e_h + e_Nh) * 0.1 + cls_tokens) @ w1 + b1)
    bi_emb = _leaky_relu((e_h * e_Nh * 0.1 + cls_tokens) @ w2 + b2)
    emb = sum_emb + bi_emb
    mu = emb.mean(-1, keepdims=True)
    var = ((emb - mu) ** 2).mean(-1, keepdims=True)
    return (emb - mu) * jax.lax.rsqrt(var + LN_EPS) * gamma + beta


def init_params(key, d):
    ks = jax.random.split(key, 8)

    def lin(kw, kb, d_in, d_out):
        bound = 1.0 / (d_in ** 0.5)
        w = jax.random.uniform(kw, (d_in, d_out), jnp.float32, -bound, bound)
        b = jax.random.uniform(kb, (1, d_out), jnp.float32, -bound, bound)
        return w, b

    wh, bh = lin(ks[0], ks[1], d, d)     # head_proj
    wt, bt = lin(ks[2], ks[3], d, d)     # tail_proj
    w1, b1 = lin(ks[4], ks[5], d, d)     # linear1
    w2, b2 = lin(ks[6], ks[7], d, d)     # linear2
    gamma = jnp.ones((1, d), jnp.float32)
    beta = jnp.zeros((1, d), jnp.float32)
    return (wh, bh, wt, bt, w1, b1, w2, b2, gamma, beta)


if __name__ == "__main__":
    # Small but lane-dense shapes (D = 128 fills the lane axis; Nc multiple of 8
    # keeps the e_t / one-hot slices sublane-aligned).
    B, Nc, Nf, D = 4, 8, 8, 128

    key = jax.random.PRNGKey(0)
    k_cls, k_feat, k_par = jax.random.split(key, 3)
    cls_tokens = jax.random.normal(k_cls, (B, Nc, D), jnp.float32)
    feats = jax.random.normal(k_feat, (B, Nf, D), jnp.float32)
    params = init_params(k_par, D)

    # f32 compute for the strict check; production can pass compute_dtype=jnp.bfloat16
    # (note: bf16 logits may flip near-tied top-k selections vs an f32 reference).
    out = graphic_cls_aggregation_pallas(cls_tokens, feats, params, tok_ratio=0.5)
    out = jax.block_until_ready(out)

    ref = jax.block_until_ready(gca_reference(cls_tokens, feats, params, tok_ratio=0.5))
    assert out.shape == (B, Nc, D)
    assert jnp.allclose(out, ref, rtol=2e-3, atol=2e-3), "mismatch vs JAX reference"

    print("KERNEL_OK")
</pallas_src>

<mosaic_0001>
module attributes {stable_mosaic.version = 11 : i64} {
  func.func @gca_kernel(%arg0: i32, %arg1: memref<2x8x128xf32, #tpu.memory_space<vmem>>, %arg2: memref<2x8x128xf32, #tpu.memory_space<vmem>>, %arg3: memref<128x256xf32, #tpu.memory_space<vmem>>, %arg4: memref<128x128xf32, #tpu.memory_space<vmem>>, %arg5: memref<1x128xf32, #tpu.memory_space<vmem>>, %arg6: memref<1x128xf32, #tpu.memory_space<vmem>>, %arg7: memref<128x128xf32, #tpu.memory_space<vmem>>, %arg8: memref<1x128xf32, #tpu.memory_space<vmem>>, %arg9: memref<128x128xf32, #tpu.memory_space<vmem>>, %arg10: memref<1x128xf32, #tpu.memory_space<vmem>>, %arg11: memref<1x128xf32, #tpu.memory_space<vmem>>, %arg12: memref<1x128xf32, #tpu.memory_space<vmem>>, %arg13: memref<2x8x128xf32, #tpu.memory_space<vmem>>, %arg14: memref<2x16x128xf32, #tpu.memory_space<vmem>>) attributes {dimension_semantics = [#tpu.dimension_semantics<parallel>], iteration_bounds = array<i64: 2>, scalar_prefetch = 0 : i64, scratch_operands = 1 : i64, tpu.core_type = #tpu.core_type<tc>, window_params = [{transform_indices = @transform_0, window_bounds = array<i64: 2, 8, 128>}, {transform_indices = @transform_1, window_bounds = array<i64: 2, 8, 128>}, {pipeline_mode = #tpu.pipeline_mode<synchronous>, transform_indices = @transform_2, window_bounds = array<i64: 128, 256>}, {pipeline_mode = #tpu.pipeline_mode<synchronous>, transform_indices = @transform_3, window_bounds = array<i64: 128, 128>}, {pipeline_mode = #tpu.pipeline_mode<synchronous>, transform_indices = @transform_4, window_bounds = array<i64: 1, 128>}, {pipeline_mode = #tpu.pipeline_mode<synchronous>, transform_indices = @transform_5, window_bounds = array<i64: 1, 128>}, {pipeline_mode = #tpu.pipeline_mode<synchronous>, transform_indices = @transform_6, window_bounds = array<i64: 128, 128>}, {pipeline_mode = #tpu.pipeline_mode<synchronous>, transform_indices = @transform_7, window_bounds = array<i64: 1, 128>}, {pipeline_mode = #tpu.pipeline_mode<synchronous>, transform_indices = @transform_8, window_bounds = array<i64: 128, 128>}, {pipeline_mode = #tpu.pipeline_mode<synchronous>, transform_indices = @transform_9, window_bounds = array<i64: 1, 128>}, {pipeline_mode = #tpu.pipeline_mode<synchronous>, transform_indices = @transform_10, window_bounds = array<i64: 1, 128>}, {pipeline_mode = #tpu.pipeline_mode<synchronous>, transform_indices = @transform_11, window_bounds = array<i64: 1, 128>}, {transform_indices = @transform_12, window_bounds = array<i64: 2, 8, 128>}]} {
    %c0 = arith.constant 0 : index
    %c0_0 = arith.constant 0 : index
    %c0_1 = arith.constant 0 : index
    %0 = vector.load %arg1[%c0, %c0_0, %c0_1] : memref<2x8x128xf32, #tpu.memory_space<vmem>>, vector<2x8x128xf32>
    %c0_2 = arith.constant 0 : index
    %c0_3 = arith.constant 0 : index
    %1 = vector.load %arg5[%c0_2, %c0_3] : memref<1x128xf32, #tpu.memory_space<vmem>>, vector<1x128xf32>
    %c0_4 = arith.constant 0 : index
    %c0_5 = arith.constant 0 : index
    %2 = vector.load %arg6[%c0_4, %c0_5] : memref<1x128xf32, #tpu.memory_space<vmem>>, vector<1x128xf32>
    %c0_6 = arith.constant 0 : index
    %c0_7 = arith.constant 0 : index
    %3 = vector.load %arg8[%c0_6, %c0_7] : memref<1x128xf32, #tpu.memory_space<vmem>>, vector<1x128xf32>
    %c0_8 = arith.constant 0 : index
    %c0_9 = arith.constant 0 : index
    %4 = vector.load %arg10[%c0_8, %c0_9] : memref<1x128xf32, #tpu.memory_space<vmem>>, vector<1x128xf32>
    %c0_10 = arith.constant 0 : index
    %c0_11 = arith.constant 0 : index
    %5 = vector.load %arg11[%c0_10, %c0_11] : memref<1x128xf32, #tpu.memory_space<vmem>>, vector<1x128xf32>
    %c0_12 = arith.constant 0 : index
    %c0_13 = arith.constant 0 : index
    %6 = vector.load %arg12[%c0_12, %c0_13] : memref<1x128xf32, #tpu.memory_space<vmem>>, vector<1x128xf32>
    %7 = vector.shape_cast %0 : vector<2x8x128xf32> to vector<16x128xf32>
    %c0_14 = arith.constant 0 : index
    %c0_15 = arith.constant 0 : index
    %8 = vector.load %arg3[%c0_14, %c0_15] : memref<128x256xf32, #tpu.memory_space<vmem>>, vector<128x256xf32>
    %cst = arith.constant dense<0.000000e+00> : vector<16x256xf32>
    %9 = tpu.matmul %7, %8, %cst {dimension_numbers = #tpu.dot_dimension_numbers<[1], [0], [0], [1], [0, 0, 1, 1], [], []>} : vector<16x128xf32>, vector<128x256xf32>, vector<16x256xf32> -> vector<16x256xf32>
    %10 = vector.extract_strided_slice %9 {offsets = [0, 0], sizes = [16, 128], strides = [1, 1]} : vector<16x256xf32> to vector<16x128xf32>
    %11 = vector.broadcast %1 : vector<1x128xf32> to vector<16x128xf32>
    %12 = arith.addf %10, %11 : vector<16x128xf32>
    %13 = vector.shape_cast %12 : vector<16x128xf32> to vector<2x8x128xf32>
    %14 = vector.extract_strided_slice %9 {offsets = [0, 128], sizes = [16, 128], strides = [1, 1]} : vector<16x256xf32> to vector<16x128xf32>
    %15 = vector.broadcast %2 : vector<1x128xf32> to vector<16x128xf32>
    %16 = arith.addf %14, %15 : vector<16x128xf32>
    %17 = vector.shape_cast %16 : vector<16x128xf32> to vector<2x8x128xf32>
    %c0_16 = arith.constant 0 : index
    %c0_17 = arith.constant 0 : index
    %c0_18 = arith.constant 0 : index
    %18 = vector.load %arg14[%c0_16, %c0_17, %c0_18] : memref<2x16x128xf32, #tpu.memory_space<vmem>>, vector<2x8x128xf32>
    tpu.vector_store %arg14[%c0_16, %c0_17, %c0_18], %17 {strides = array<i32>} : memref<2x16x128xf32, #tpu.memory_space<vmem>>, vector<2x8x128xf32>,
    %c0_19 = arith.constant 0 : index
    %c0_20 = arith.constant 0 : index
    %c0_21 = arith.constant 0 : index
    %19 = vector.load %arg2[%c0_19, %c0_20, %c0_21] : memref<2x8x128xf32, #tpu.memory_space<vmem>>, vector<2x8x128xf32>
    %20 = vector.shape_cast %19 : vector<2x8x128xf32> to vector<16x128xf32>
    %c0_22 = arith.constant 0 : index
    %c0_23 = arith.constant 0 : index
    %21 = vector.load %arg4[%c0_22, %c0_23] : memref<128x128xf32, #tpu.memory_space<vmem>>, vector<128x128xf32>
    %cst_24 = arith.constant dense<0.000000e+00> : vector<16x128xf32>
    %22 = tpu.matmul %20, %21, %cst_24 {dimension_numbers = #tpu.dot_dimension_numbers<[1], [0], [0], [1], [0, 0, 1, 1], [], []>} : vector<16x128xf32>, vector<128x128xf32>, vector<16x128xf32> -> vector<16x128xf32>
    %23 = vector.broadcast %2 : vector<1x128xf32> to vector<16x128xf32>
    %24 = arith.addf %22, %23 : vector<16x128xf32>
    %25 = vector.shape_cast %24 : vector<16x128xf32> to vector<2x8x128xf32>
    %c0_25 = arith.constant 0 : index
    %c8 = arith.constant 8 : index
    %c0_26 = arith.constant 0 : index
    %26 = vector.load %arg14[%c0_25, %c8, %c0_26] : memref<2x16x128xf32, #tpu.memory_space<vmem>>, vector<2x8x128xf32>
    tpu.vector_store %arg14[%c0_25, %c8, %c0_26], %25 {strides = array<i32>} : memref<2x16x128xf32, #tpu.memory_space<vmem>>, vector<2x8x128xf32>,
    %c0_27 = arith.constant 0 : index
    %c0_28 = arith.constant 0 : index
    %c0_29 = arith.constant 0 : index
    %27 = vector.load %arg14[%c0_27, %c0_28, %c0_29] : memref<2x16x128xf32, #tpu.memory_space<vmem>>, vector<2x16x128xf32>
    "tpu.trace_start"() <{level = 10 : i32, message = "bqd,bkd->bqk"}> : () -> ()
    %cst_30 = arith.constant dense<0.000000e+00> : vector<2x8x16xf32>
    %28 = tpu.matmul %13, %27, %cst_30 {dimension_numbers = #tpu.dot_dimension_numbers<[2], [2], [1], [1], [0, 0, 0, 1, 1, 1], [0], [0]>} : vector<2x8x128xf32>, vector<2x16x128xf32>, vector<2x8x16xf32> -> vector<2x8x16xf32>
    "tpu.trace_stop"() : () -> ()
    %29 = tpu.iota {dimensions = array<i32: 2>} : vector<1x1x16xi32>
    %cst_31 = arith.constant dense<0xFF800000> : vector<2x8xf32>
    %30 = vector.multi_reduction <maximumf>, %28, %cst_31 [2] : vector<2x8x16xf32> to vector<2x8xf32>
    %31 = vector.shape_cast %30 : vector<2x8xf32> to vector<2x8x1xf32>
    %32 = vector.broadcast %31 : vector<2x8x1xf32> to vector<2x8x16xf32>
    %33 = arith.cmpf oeq, %28, %32 : vector<2x8x16xf32>
    %c16_i32 = arith.constant 16 : i32
    %34 = vector.shape_cast %29 : vector<1x1x16xi32> to vector<1x1x16xi32>
    %35 = vector.broadcast %34 : vector<1x1x16xi32> to vector<2x8x16xi32>
    %36 = vector.broadcast %c16_i32 : i32 to vector<2x8x16xi32>
    %37 = arith.select %33, %35, %36 : vector<2x8x16xi1>, vector<2x8x16xi32>
    %cst_32 = arith.constant dense<2147483647> : vector<2x8xi32>
    %38 = vector.multi_reduction <minsi>, %37, %cst_32 [2] : vector<2x8x16xi32> to vector<2x8xi32>
    %39 = vector.shape_cast %38 : vector<2x8xi32> to vector<2x8x1xi32>
    %40 = vector.broadcast %29 : vector<1x1x16xi32> to vector<2x8x16xi32>
    %41 = vector.broadcast %39 : vector<2x8x1xi32> to vector<2x8x16xi32>
    %42 = arith.cmpi eq, %40, %41 : vector<2x8x16xi32>
    %43 = arith.extui %42 : vector<2x8x16xi1> to vector<2x8x16xi32>
    %44 = arith.sitofp %43 : vector<2x8x16xi32> to vector<2x8x16xf32>
    %cst_33 = arith.constant 0xFF800000 : f32
    %45 = vector.broadcast %cst_33 : f32 to vector<2x8x16xf32>
    %46 = arith.select %42, %45, %28 : vector<2x8x16xi1>, vector<2x8x16xf32>
    %cst_34 = arith.constant dense<0xFF800000> : vector<2x8xf32>
    %47 = vector.multi_reduction <maximumf>, %46, %cst_34 [2] : vector<2x8x16xf32> to vector<2x8xf32>
    %48 = vector.shape_cast %47 : vector<2x8xf32> to vector<2x8x1xf32>
    %49 = vector.broadcast %48 : vector<2x8x1xf32> to vector<2x8x16xf32>
    %50 = arith.cmpf oeq, %46, %49 : vector<2x8x16xf32>
    %c16_i32_35 = arith.constant 16 : i32
    %51 = vector.shape_cast %29 : vector<1x1x16xi32> to vector<1x1x16xi32>
    %52 = vector.broadcast %51 : vector<1x1x16xi32> to vector<2x8x16xi32>
    %53 = vector.broadcast %c16_i32_35 : i32 to vector<2x8x16xi32>
    %54 = arith.select %50, %52, %53 : vector<2x8x16xi1>, vector<2x8x16xi32>
    %cst_36 = arith.constant dense<2147483647> : vector<2x8xi32>
    %55 = vector.multi_reduction <minsi>, %54, %cst_36 [2] : vector<2x8x16xi32> to vector<2x8xi32>
    %56 = vector.shape_cast %55 : vector<2x8xi32> to vector<2x8x1xi32>
    %57 = vector.broadcast %29 : vector<1x1x16xi32> to vector<2x8x16xi32>
    %58 = vector.broadcast %56 : vector<2x8x1xi32> to vector<2x8x16xi32>
    %59 = arith.cmpi eq, %57, %58 : vector<2x8x16xi32>
    %60 = arith.extui %59 : vector<2x8x16xi1> to vector<2x8x16xi32>
    %61 = arith.sitofp %60 : vector<2x8x16xi32> to vector<2x8x16xf32>
    %cst_37 = arith.constant 0xFF800000 : f32
    %62 = vector.broadcast %cst_37 : f32 to vector<2x8x16xf32>
    %63 = arith.select %59, %62, %46 : vector<2x8x16xi1>, vector<2x8x16xf32>
    %cst_38 = arith.constant dense<0xFF800000> : vector<2x8xf32>
    %64 = vector.multi_reduction <maximumf>, %63, %cst_38 [2] : vector<2x8x16xf32> to vector<2x8xf32>
    %65 = vector.shape_cast %64 : vector<2x8xf32> to vector<2x8x1xf32>
    %66 = vector.broadcast %65 : vector<2x8x1xf32> to vector<2x8x16xf32>
    %67 = arith.cmpf oeq, %63, %66 : vector<2x8x16xf32>
    %c16_i32_39 = arith.constant 16 : i32
    %68 = vector.shape_cast %29 : vector<1x1x16xi32> to vector<1x1x16xi32>
    %69 = vector.broadcast %68 : vector<1x1x16xi32> to vector<2x8x16xi32>
    %70 = vector.broadcast %c16_i32_39 : i32 to vector<2x8x16xi32>
    %71 = arith.select %67, %69, %70 : vector<2x8x16xi1>, vector<2x8x16xi32>
    %cst_40 = arith.constant dense<2147483647> : vector<2x8xi32>
    %72 = vector.multi_reduction <minsi>, %71, %cst_40 [2] : vector<2x8x16xi32> to vector<2x8xi32>
    %73 = vector.shape_cast %72 : vector<2x8xi32> to vector<2x8x1xi32>
    %74 = vector.broadcast %29 : vector<1x1x16xi32> to vector<2x8x16xi32>
    %75 = vector.broadcast %73 : vector<2x8x1xi32> to vector<2x8x16xi32>
    %76 = arith.cmpi eq, %74, %75 : vector<2x8x16xi32>
    %77 = arith.extui %76 : vector<2x8x16xi1> to vector<2x8x16xi32>
    %78 = arith.sitofp %77 : vector<2x8x16xi32> to vector<2x8x16xf32>
    %cst_41 = arith.constant 0xFF800000 : f32
    %79 = vector.broadcast %cst_41 : f32 to vector<2x8x16xf32>
    %80 = arith.select %76, %79, %63 : vector<2x8x16xi1>, vector<2x8x16xf32>
    %cst_42 = arith.constant dense<0xFF800000> : vector<2x8xf32>
    %81 = vector.multi_reduction <maximumf>, %80, %cst_42 [2] : vector<2x8x16xf32> to vector<2x8xf32>
    %82 = vector.shape_cast %81 : vector<2x8xf32> to vector<2x8x1xf32>
    %83 = vector.broadcast %82 : vector<2x8x1xf32> to vector<2x8x16xf32>
    %84 = arith.cmpf oeq, %80, %83 : vector<2x8x16xf32>
    %c16_i32_43 = arith.constant 16 : i32
    %85 = vector.shape_cast %29 : vector<1x1x16xi32> to vector<1x1x16xi32>
    %86 = vector.broadcast %85 : vector<1x1x16xi32> to vector<2x8x16xi32>
    %87 = vector.broadcast %c16_i32_43 : i32 to vector<2x8x16xi32>
    %88 = arith.select %84, %86, %87 : vector<2x8x16xi1>, vector<2x8x16xi32>
    %cst_44 = arith.constant dense<2147483647> : vector<2x8xi32>
    %89 = vector.multi_reduction <minsi>, %88, %cst_44 [2] : vector<2x8x16xi32> to vector<2x8xi32>
    %90 = vector.shape_cast %89 : vector<2x8xi32> to vector<2x8x1xi32>
    %91 = vector.broadcast %29 : vector<1x1x16xi32> to vector<2x8x16xi32>
    %92 = vector.broadcast %90 : vector<2x8x1xi32> to vector<2x8x16xi32>
    %93 = arith.cmpi eq, %91, %92 : vector<2x8x16xi32>
    %94 = arith.extui %93 : vector<2x8x16xi1> to vector<2x8x16xi32>
    %95 = arith.sitofp %94 : vector<2x8x16xi32> to vector<2x8x16xf32>
    %96 = tpu.concatenate %44, %61, %78, %95 in 1 : vector<2x8x16xf32>, vector<2x8x16xf32>, vector<2x8x16xf32>, vector<2x8x16xf32> -> vector<2x32x16xf32>
    "tpu.trace_start"() <{level = 10 : i32, message = "bqn,bnd->bqd"}> : () -> ()
    %cst_45 = arith.constant dense<0.000000e+00> : vector<2x32x128xf32>
    %97 = tpu.matmul %96, %27, %cst_45 {dimension_numbers = #tpu.dot_dimension_numbers<[2], [1], [1], [2], [0, 0, 0, 1, 1, 2], [0], [0]>} : vector<2x32x16xf32>, vector<2x16x128xf32>, vector<2x32x128xf32> -> vector<2x32x128xf32>
    "tpu.trace_stop"() : () -> ()
    %98 = vector.extract_strided_slice %97 {offsets = [0, 0, 0], sizes = [2, 8, 128], strides = [1, 1, 1]} : vector<2x32x128xf32> to vector<2x8x128xf32>
    %99 = vector.extract_strided_slice %97 {offsets = [0, 8, 0], sizes = [2, 8, 128], strides = [1, 1, 1]} : vector<2x32x128xf32> to vector<2x8x128xf32>
    %100 = vector.extract_strided_slice %97 {offsets = [0, 16, 0], sizes = [2, 8, 128], strides = [1, 1, 1]} : vector<2x32x128xf32> to vector<2x8x128xf32>
    %101 = vector.extract_strided_slice %97 {offsets = [0, 24, 0], sizes = [2, 8, 128], strides = [1, 1, 1]} : vector<2x32x128xf32> to vector<2x8x128xf32>
    %102 = arith.subf %31, %31 : vector<2x8x1xf32>
    %cst_46 = arith.constant 0.0883883461 : f32
    %103 = vector.broadcast %cst_46 : f32 to vector<2x8x1xf32>
    %104 = arith.mulf %102, %103 : vector<2x8x1xf32>
    %105 = math.exp %104 : vector<2x8x1xf32>
    %106 = arith.subf %48, %31 : vector<2x8x1xf32>
    %cst_47 = arith.constant 0.0883883461 : f32
    %107 = vector.broadcast %cst_47 : f32 to vector<2x8x1xf32>
    %108 = arith.mulf %106, %107 : vector<2x8x1xf32>
    %109 = math.exp %108 : vector<2x8x1xf32>
    %110 = arith.subf %65, %31 : vector<2x8x1xf32>
    %cst_48 = arith.constant 0.0883883461 : f32
    %111 = vector.broadcast %cst_48 : f32 to vector<2x8x1xf32>
    %112 = arith.mulf %110, %111 : vector<2x8x1xf32>
    %113 = math.exp %112 : vector<2x8x1xf32>
    %114 = arith.subf %82, %31 : vector<2x8x1xf32>
    %cst_49 = arith.constant 0.0883883461 : f32
    %115 = vector.broadcast %cst_49 : f32 to vector<2x8x1xf32>
    %116 = arith.mulf %114, %115 : vector<2x8x1xf32>
    %117 = math.exp %116 : vector<2x8x1xf32>
    %118 = arith.addf %105, %109 : vector<2x8x1xf32>
    %119 = arith.addf %118, %113 : vector<2x8x1xf32>
    %120 = arith.addf %119, %117 : vector<2x8x1xf32>
    %cst_50 = arith.constant 1.000000e+00 : f32
    %121 = vector.broadcast %cst_50 : f32 to vector<2x8x1xf32>
    %122 = arith.divf %121, %120 : vector<2x8x1xf32>
    %123 = arith.mulf %105, %122 : vector<2x8x1xf32>
    %124 = arith.mulf %109, %122 : vector<2x8x1xf32>
    %125 = arith.mulf %113, %122 : vector<2x8x1xf32>
    %126 = arith.mulf %117, %122 : vector<2x8x1xf32>
    %cst_51 = arith.constant 1.000000e+00 : f32
    %127 = vector.broadcast %cst_51 : f32 to vector<2x8x1xf32>
    %128 = arith.subf %127, %123 : vector<2x8x1xf32>
    %129 = vector.broadcast %128 : vector<2x8x1xf32> to vector<2x8x128xf32>
    %130 = arith.mulf %129, %13 : vector<2x8x128xf32>
    %131 = vector.broadcast %123 : vector<2x8x1xf32> to vector<2x8x128xf32>
    %132 = arith.mulf %131, %98 : vector<2x8x128xf32>
    %133 = arith.addf %130, %132 : vector<2x8x128xf32>
    %134 = arith.addf %13, %133 : vector<2x8x128xf32>
    %135 = math.tanh %134 : vector<2x8x128xf32>
    %cst_52 = arith.constant dense<0.000000e+00> : vector<2x8xf32>
    %136 = vector.multi_reduction <add>, %98, %cst_52 [2] : vector<2x8x128xf32> to vector<2x8xf32>
    %137 = vector.shape_cast %136 : vector<2x8xf32> to vector<2x8x1xf32>
    %cst_53 = arith.constant dense<0.000000e+00> : vector<2x8xf32>
    %138 = vector.multi_reduction <add>, %135, %cst_53 [2] : vector<2x8x128xf32> to vector<2x8xf32>
    %139 = vector.shape_cast %138 : vector<2x8xf32> to vector<2x8x1xf32>
    %140 = arith.mulf %137, %139 : vector<2x8x1xf32>
    %cst_54 = arith.constant 1.000000e+00 : f32
    %141 = vector.broadcast %cst_54 : f32 to vector<2x8x1xf32>
    %142 = arith.subf %141, %124 : vector<2x8x1xf32>
    %143 = vector.broadcast %142 : vector<2x8x1xf32> to vector<2x8x128xf32>
    %144 = arith.mulf %143, %13 : vector<2x8x128xf32>
    %145 = vector.broadcast %124 : vector<2x8x1xf32> to vector<2x8x128xf32>
    %146 = arith.mulf %145, %99 : vector<2x8x128xf32>
    %147 = arith.addf %144, %146 : vector<2x8x128xf32>
    %148 = arith.addf %13, %147 : vector<2x8x128xf32>
    %149 = math.tanh %148 : vector<2x8x128xf32>
    %cst_55 = arith.constant dense<0.000000e+00> : vector<2x8xf32>
    %150 = vector.multi_reduction <add>, %99, %cst_55 [2] : vector<2x8x128xf32> to vector<2x8xf32>
    %151 = vector.shape_cast %150 : vector<2x8xf32> to vector<2x8x1xf32>
    %cst_56 = arith.constant dense<0.000000e+00> : vector<2x8xf32>
    %152 = vector.multi_reduction <add>, %149, %cst_56 [2] : vector<2x8x128xf32> to vector<2x8xf32>
    %153 = vector.shape_cast %152 : vector<2x8xf32> to vector<2x8x1xf32>
    %154 = arith.mulf %151, %153 : vector<2x8x1xf32>
    %cst_57 = arith.constant 1.000000e+00 : f32
    %155 = vector.broadcast %cst_57 : f32 to vector<2x8x1xf32>
    %156 = arith.subf %155, %125 : vector<2x8x1xf32>
    %157 = vector.broadcast %156 : vector<2x8x1xf32> to vector<2x8x128xf32>
    %158 = arith.mulf %157, %13 : vector<2x8x128xf32>
    %159 = vector.broadcast %125 : vector<2x8x1xf32> to vector<2x8x128xf32>
    %160 = arith.mulf %159, %100 : vector<2x8x128xf32>
    %161 = arith.addf %158, %160 : vector<2x8x128xf32>
    %162 = arith.addf %13, %161 : vector<2x8x128xf32>
    %163 = math.tanh %162 : vector<2x8x128xf32>
    %cst_58 = arith.constant dense<0.000000e+00> : vector<2x8xf32>
    %164 = vector.multi_reduction <add>, %100, %cst_58 [2] : vector<2x8x128xf32> to vector<2x8xf32>
    %165 = vector.shape_cast %164 : vector<2x8xf32> to vector<2x8x1xf32>
    %cst_59 = arith.constant dense<0.000000e+00> : vector<2x8xf32>
    %166 = vector.multi_reduction <add>, %163, %cst_59 [2] : vector<2x8x128xf32> to vector<2x8xf32>
    %167 = vector.shape_cast %166 : vector<2x8xf32> to vector<2x8x1xf32>
    %168 = arith.mulf %165, %167 : vector<2x8x1xf32>
    %cst_60 = arith.constant 1.000000e+00 : f32
    %169 = vector.broadcast %cst_60 : f32 to vector<2x8x1xf32>
    %170 = arith.subf %169, %126 : vector<2x8x1xf32>
    %171 = vector.broadcast %170 : vector<2x8x1xf32> to vector<2x8x128xf32>
    %172 = arith.mulf %171, %13 : vector<2x8x128xf32>
    %173 = vector.broadcast %126 : vector<2x8x1xf32> to vector<2x8x128xf32>
    %174 = arith.mulf %173, %101 : vector<2x8x128xf32>
    %175 = arith.addf %172, %174 : vector<2x8x128xf32>
    %176 = arith.addf %13, %175 : vector<2x8x128xf32>
    %177 = math.tanh %176 : vector<2x8x128xf32>
    %cst_61 = arith.constant dense<0.000000e+00> : vector<2x8xf32>
    %178 = vector.multi_reduction <add>, %101, %cst_61 [2] : vector<2x8x128xf32> to vector<2x8xf32>
    %179 = vector.shape_cast %178 : vector<2x8xf32> to vector<2x8x1xf32>
    %cst_62 = arith.constant dense<0.000000e+00> : vector<2x8xf32>
    %180 = vector.multi_reduction <add>, %177, %cst_62 [2] : vector<2x8x128xf32> to vector<2x8xf32>
    %181 = vector.shape_cast %180 : vector<2x8xf32> to vector<2x8x1xf32>
    %182 = arith.mulf %179, %181 : vector<2x8x1xf32>
    %183 = arith.maximumf %140, %154 : vector<2x8x1xf32>
    %184 = arith.maximumf %183, %168 : vector<2x8x1xf32>
    %185 = arith.maximumf %184, %182 : vector<2x8x1xf32>
    %186 = arith.subf %140, %185 : vector<2x8x1xf32>
    %187 = math.exp %186 : vector<2x8x1xf32>
    %188 = arith.subf %154, %185 : vector<2x8x1xf32>
    %189 = math.exp %188 : vector<2x8x1xf32>
    %190 = arith.subf %168, %185 : vector<2x8x1xf32>
    %191 = math.exp %190 : vector<2x8x1xf32>
    %192 = arith.subf %182, %185 : vector<2x8x1xf32>
    %193 = math.exp %192 : vector<2x8x1xf32>
    %194 = arith.addf %187, %189 : vector<2x8x1xf32>
    %195 = arith.addf %194, %191 : vector<2x8x1xf32>
    %196 = arith.addf %195, %193 : vector<2x8x1xf32>
    %cst_63 = arith.constant 1.000000e+00 : f32
    %197 = vector.broadcast %cst_63 : f32 to vector<2x8x1xf32>
    %198 = arith.divf %197, %196 : vector<2x8x1xf32>
    %cst_64 = arith.constant 0.000000e+00 : f32
    %199 = vector.broadcast %cst_64 : f32 to vector<2x8x128xf32>
    %200 = arith.mulf %187, %198 : vector<2x8x1xf32>
    %201 = vector.broadcast %200 : vector<2x8x1xf32> to vector<2x8x128xf32>
    %202 = arith.mulf %201, %98 : vector<2x8x128xf32>
    %203 = arith.addf %199, %202 : vector<2x8x128xf32>
    %204 = arith.mulf %189, %198 : vector<2x8x1xf32>
    %205 = vector.broadcast %204 : vector<2x8x1xf32> to vector<2x8x128xf32>
    %206 = arith.mulf %205, %99 : vector<2x8x128xf32>
    %207 = arith.addf %203, %206 : vector<2x8x128xf32>
    %208 = arith.mulf %191, %198 : vector<2x8x1xf32>
    %209 = vector.broadcast %208 : vector<2x8x1xf32> to vector<2x8x128xf32>
    %210 = arith.mulf %209, %100 : vector<2x8x128xf32>
    %211 = arith.addf %207, %210 : vector<2x8x128xf32>
    %212 = arith.mulf %193, %198 : vector<2x8x1xf32>
    %213 = vector.broadcast %212 : vector<2x8x1xf32> to vector<2x8x128xf32>
    %214 = arith.mulf %213, %101 : vector<2x8x128xf32>
    %215 = arith.addf %211, %214 : vector<2x8x128xf32>
    %216 = arith.addf %13, %215 : vector<2x8x128xf32>
    %cst_65 = arith.constant 1.000000e-01 : f32
    %217 = vector.broadcast %cst_65 : f32 to vector<2x8x128xf32>
    %218 = arith.mulf %216, %217 : vector<2x8x128xf32>
    %219 = arith.addf %218, %0 : vector<2x8x128xf32>
    %220 = vector.shape_cast %219 : vector<2x8x128xf32> to vector<16x128xf32>
    %221 = arith.mulf %13, %215 : vector<2x8x128xf32>
    %cst_66 = arith.constant 1.000000e-01 : f32
    %222 = vector.broadcast %cst_66 : f32 to vector<2x8x128xf32>
    %223 = arith.mulf %221, %222 : vector<2x8x128xf32>
    %224 = arith.addf %223, %0 : vector<2x8x128xf32>
    %225 = vector.shape_cast %224 : vector<2x8x128xf32> to vector<16x128xf32>
    %c0_67 = arith.constant 0 : index
    %c0_68 = arith.constant 0 : index
    %226 = vector.load %arg7[%c0_67, %c0_68] : memref<128x128xf32, #tpu.memory_space<vmem>>, vector<128x128xf32>
    %cst_69 = arith.constant dense<0.000000e+00> : vector<16x128xf32>
    %227 = tpu.matmul %220, %226, %cst_69 {dimension_numbers = #tpu.dot_dimension_numbers<[1], [0], [0], [1], [0, 0, 1, 1], [], []>} : vector<16x128xf32>, vector<128x128xf32>, vector<16x128xf32> -> vector<16x128xf32>
    %228 = vector.broadcast %3 : vector<1x128xf32> to vector<16x128xf32>
    %229 = arith.addf %227, %228 : vector<16x128xf32>
    %cst_70 = arith.constant 0.000000e+00 : f32
    %230 = vector.broadcast %cst_70 : f32 to vector<16x128xf32>
    %231 = arith.cmpf oge, %229, %230 : vector<16x128xf32>
    %cst_71 = arith.constant 0.00999999977 : f32
    %232 = vector.broadcast %cst_71 : f32 to vector<16x128xf32>
    %233 = arith.mulf %232, %229 : vector<16x128xf32>
    %234 = arith.select %231, %229, %233 : vector<16x128xi1>, vector<16x128xf32>
    %c0_72 = arith.constant 0 : index
    %c0_73 = arith.constant 0 : index
    %235 = vector.load %arg9[%c0_72, %c0_73] : memref<128x128xf32, #tpu.memory_space<vmem>>, vector<128x128xf32>
    %cst_74 = arith.constant dense<0.000000e+00> : vector<16x128xf32>
    %236 = tpu.matmul %225, %235, %cst_74 {dimension_numbers = #tpu.dot_dimension_numbers<[1], [0], [0], [1], [0, 0, 1, 1], [], []>} : vector<16x128xf32>, vector<128x128xf32>, vector<16x128xf32> -> vector<16x128xf32>
    %237 = vector.broadcast %4 : vector<1x128xf32> to vector<16x128xf32>
    %238 = arith.addf %236, %237 : vector<16x128xf32>
    %cst_75 = arith.constant 0.000000e+00 : f32
    %239 = vector.broadcast %cst_75 : f32 to vector<16x128xf32>
    %240 = arith.cmpf oge, %238, %239 : vector<16x128xf32>
    %cst_76 = arith.constant 0.00999999977 : f32
    %241 = vector.broadcast %cst_76 : f32 to vector<16x128xf32>
    %242 = arith.mulf %241, %238 : vector<16x128xf32>
    %243 = arith.select %240, %238, %242 : vector<16x128xi1>, vector<16x128xf32>
    %244 = arith.addf %234, %243 : vector<16x128xf32>
    %cst_77 = arith.constant dense<0.000000e+00> : vector<16xf32>
    %245 = vector.multi_reduction <add>, %244, %cst_77 [1] : vector<16x128xf32> to vector<16xf32>
    %246 = vector.shape_cast %245 : vector<16xf32> to vector<16x1xf32>
    %cst_78 = arith.constant 1.280000e+02 : f32
    %247 = vector.broadcast %cst_78 : f32 to vector<16x1xf32>
    %248 = arith.divf %246, %247 : vector<16x1xf32>
    %249 = vector.broadcast %248 : vector<16x1xf32> to vector<16x128xf32>
    %250 = arith.subf %244, %249 : vector<16x128xf32>
    %251 = arith.mulf %250, %250 : vector<16x128xf32>
    %cst_79 = arith.constant dense<0.000000e+00> : vector<16xf32>
    %252 = vector.multi_reduction <add>, %251, %cst_79 [1] : vector<16x128xf32> to vector<16xf32>
    %253 = vector.shape_cast %252 : vector<16xf32> to vector<16x1xf32>
    %cst_80 = arith.constant 1.280000e+02 : f32
    %254 = vector.broadcast %cst_80 : f32 to vector<16x1xf32>
    %255 = arith.divf %253, %254 : vector<16x1xf32>
    %256 = vector.broadcast %248 : vector<16x1xf32> to vector<16x128xf32>
    %257 = arith.subf %244, %256 : vector<16x128xf32>
    %cst_81 = arith.constant 9.99999974E-6 : f32
    %258 = vector.broadcast %cst_81 : f32 to vector<16x1xf32>
    %259 = arith.addf %255, %258 : vector<16x1xf32>
    %260 = math.rsqrt %259 : vector<16x1xf32>
    %261 = vector.broadcast %260 : vector<16x1xf32> to vector<16x128xf32>
    %262 = arith.mulf %257, %261 : vector<16x128xf32>
    %263 = vector.broadcast %5 : vector<1x128xf32> to vector<16x128xf32>
    %264 = arith.mulf %262, %263 : vector<16x128xf32>
    %265 = vector.broadcast %6 : vector<1x128xf32> to vector<16x128xf32>
    %266 = arith.addf %264, %265 : vector<16x128xf32>
    %267 = vector.shape_cast %266 : vector<16x128xf32> to vector<2x8x128xf32>
    %c0_82 = arith.constant 0 : index
    %c0_83 = arith.constant 0 : index
    %c0_84 = arith.constant 0 : index
    %268 = vector.load %arg13[%c0_82, %c0_83, %c0_84] : memref<2x8x128xf32, #tpu.memory_space<vmem>>, vector<2x8x128xf32>
    tpu.vector_store %arg13[%c0_82, %c0_83, %c0_84], %267 {strides = array<i32>} : memref<2x8x128xf32, #tpu.memory_space<vmem>>, vector<2x8x128xf32>,
    return
  }
  func.func @transform_0(%arg0: i32) -> (i32, i32, i32) {
    %c0_i32 = arith.constant 0 : i32
    %c0_i32_0 = arith.constant 0 : i32
    %c0_i32_1 = arith.constant 0 : i32
    return %arg0, %c0_i32, %c0_i32_0 : i32, i32, i32
  }
  func.func @transform_1(%arg0: i32) -> (i32, i32, i32) {
    %c0_i32 = arith.constant 0 : i32
    %c0_i32_0 = arith.constant 0 : i32
    %c0_i32_1 = arith.constant 0 : i32
    return %arg0, %c0_i32, %c0_i32_0 : i32, i32, i32
  }
  func.func @transform_2(%arg0: i32) -> (i32, i32) {
    %c0_i32 = arith.constant 0 : i32
    %c0_i32_0 = arith.constant 0 : i32
    %c0_i32_1 = arith.constant 0 : i32
    return %c0_i32, %c0_i32_0 : i32, i32
  }
  func.func @transform_3(%arg0: i32) -> (i32, i32) {
    %c0_i32 = arith.constant 0 : i32
    %c0_i32_0 = arith.constant 0 : i32
    %c0_i32_1 = arith.constant 0 : i32
    return %c0_i32, %c0_i32_0 : i32, i32
  }
  func.func @transform_4(%arg0: i32) -> (i32, i32) {
    %c0_i32 = arith.constant 0 : i32
    %c0_i32_0 = arith.constant 0 : i32
    %c0_i32_1 = arith.constant 0 : i32
    return %c0_i32, %c0_i32_0 : i32, i32
  }
  func.func @transform_5(%arg0: i32) -> (i32, i32) {
    %c0_i32 = arith.constant 0 : i32
    %c0_i32_0 = arith.constant 0 : i32
    %c0_i32_1 = arith.constant 0 : i32
    return %c0_i32, %c0_i32_0 : i32, i32
  }
  func.func @transform_6(%arg0: i32) -> (i32, i32) {
    %c0_i32 = arith.constant 0 : i32
    %c0_i32_0 = arith.constant 0 : i32
    %c0_i32_1 = arith.constant 0 : i32
    return %c0_i32, %c0_i32_0 : i32, i32
  }
  func.func @transform_7(%arg0: i32) -> (i32, i32) {
    %c0_i32 = arith.constant 0 : i32
    %c0_i32_0 = arith.constant 0 : i32
    %c0_i32_1 = arith.constant 0 : i32
    return %c0_i32, %c0_i32_0 : i32, i32
  }
  func.func @transform_8(%arg0: i32) -> (i32, i32) {
    %c0_i32 = arith.constant 0 : i32
    %c0_i32_0 = arith.constant 0 : i32
    %c0_i32_1 = arith.constant 0 : i32
    return %c0_i32, %c0_i32_0 : i32, i32
  }
  func.func @transform_9(%arg0: i32) -> (i32, i32) {
    %c0_i32 = arith.constant 0 : i32
    %c0_i32_0 = arith.constant 0 : i32
    %c0_i32_1 = arith.constant 0 : i32
    return %c0_i32, %c0_i32_0 : i32, i32
  }
  func.func @transform_10(%arg0: i32) -> (i32, i32) {
    %c0_i32 = arith.constant 0 : i32
    %c0_i32_0 = arith.constant 0 : i32
    %c0_i32_1 = arith.constant 0 : i32
    return %c0_i32, %c0_i32_0 : i32, i32
  }
  func.func @transform_11(%arg0: i32) -> (i32, i32) {
    %c0_i32 = arith.constant 0 : i32
    %c0_i32_0 = arith.constant 0 : i32
    %c0_i32_1 = arith.constant 0 : i32
    return %c0_i32, %c0_i32_0 : i32, i32
  }
  func.func @transform_12(%arg0: i32) -> (i32, i32, i32) {
    %c0_i32 = arith.constant 0 : i32
    %c0_i32_0 = arith.constant 0 : i32
    %c0_i32_1 = arith.constant 0 : i32
    return %arg0, %c0_i32, %c0_i32_0 : i32, i32, i32
  }
}

module attributes {stable_mosaic.version = 11 : i64} {
  func.func @gca_kernel(%arg0: i32, %arg1: memref<2x8x128xf32, #tpu.memory_space<vmem>>, %arg2: memref<2x8x128xf32, #tpu.memory_space<vmem>>, %arg3: memref<128x256xf32, #tpu.memory_space<vmem>>, %arg4: memref<128x128xf32, #tpu.memory_space<vmem>>, %arg5: memref<1x128xf32, #tpu.memory_space<vmem>>, %arg6: memref<1x128xf32, #tpu.memory_space<vmem>>, %arg7: memref<128x128xf32, #tpu.memory_space<vmem>>, %arg8: memref<1x128xf32, #tpu.memory_space<vmem>>, %arg9: memref<128x128xf32, #tpu.memory_space<vmem>>, %arg10: memref<1x128xf32, #tpu.memory_space<vmem>>, %arg11: memref<1x128xf32, #tpu.memory_space<vmem>>, %arg12: memref<1x128xf32, #tpu.memory_space<vmem>>, %arg13: memref<2x8x128xf32, #tpu.memory_space<vmem>>, %arg14: memref<2x16x128xf32, #tpu.memory_space<vmem>>) attributes {dimension_semantics = [#tpu.dimension_semantics<parallel>], iteration_bounds = array<i64: 2>, scalar_prefetch = 0 : i64, scratch_operands = 1 : i64, tpu.core_type = #tpu.core_type<tc>, window_params = [{transform_indices = @transform_0, window_bounds = array<i64: 2, 8, 128>}, {transform_indices = @transform_1, window_bounds = array<i64: 2, 8, 128>}, {pipeline_mode = #tpu.pipeline_mode<synchronous>, transform_indices = @transform_2, window_bounds = array<i64: 128, 256>}, {pipeline_mode = #tpu.pipeline_mode<synchronous>, transform_indices = @transform_3, window_bounds = array<i64: 128, 128>}, {pipeline_mode = #tpu.pipeline_mode<synchronous>, transform_indices = @transform_4, window_bounds = array<i64: 1, 128>}, {pipeline_mode = #tpu.pipeline_mode<synchronous>, transform_indices = @transform_5, window_bounds = array<i64: 1, 128>}, {pipeline_mode = #tpu.pipeline_mode<synchronous>, transform_indices = @transform_6, window_bounds = array<i64: 128, 128>}, {pipeline_mode = #tpu.pipeline_mode<synchronous>, transform_indices = @transform_7, window_bounds = array<i64: 1, 128>}, {pipeline_mode = #tpu.pipeline_mode<synchronous>, transform_indices = @transform_8, window_bounds = array<i64: 128, 128>}, {pipeline_mode = #tpu.pipeline_mode<synchronous>, transform_indices = @transform_9, window_bounds = array<i64: 1, 128>}, {pipeline_mode = #tpu.pipeline_mode<synchronous>, transform_indices = @transform_10, window_bounds = array<i64: 1, 128>}, {pipeline_mode = #tpu.pipeline_mode<synchronous>, transform_indices = @transform_11, window_bounds = array<i64: 1, 128>}, {transform_indices = @transform_12, window_bounds = array<i64: 2, 8, 128>}]} {
    %c0 = arith.constant 0 : index
    %c0_0 = arith.constant 0 : index
    %c0_1 = arith.constant 0 : index
    %0 = vector.load %arg1[%c0, %c0_0, %c0_1] : memref<2x8x128xf32, #tpu.memory_space<vmem>>, vector<2x8x128xf32>
    %c0_2 = arith.constant 0 : index
    %c0_3 = arith.constant 0 : index
    %1 = vector.load %arg5[%c0_2, %c0_3] : memref<1x128xf32, #tpu.memory_space<vmem>>, vector<1x128xf32>
    %c0_4 = arith.constant 0 : index
    %c0_5 = arith.constant 0 : index
    %2 = vector.load %arg6[%c0_4, %c0_5] : memref<1x128xf32, #tpu.memory_space<vmem>>, vector<1x128xf32>
    %c0_6 = arith.constant 0 : index
    %c0_7 = arith.constant 0 : index
    %3 = vector.load %arg8[%c0_6, %c0_7] : memref<1x128xf32, #tpu.memory_space<vmem>>, vector<1x128xf32>
    %c0_8 = arith.constant 0 : index
    %c0_9 = arith.constant 0 : index
    %4 = vector.load %arg10[%c0_8, %c0_9] : memref<1x128xf32, #tpu.memory_space<vmem>>, vector<1x128xf32>
    %c0_10 = arith.constant 0 : index
    %c0_11 = arith.constant 0 : index
    %5 = vector.load %arg11[%c0_10, %c0_11] : memref<1x128xf32, #tpu.memory_space<vmem>>, vector<1x128xf32>
    %c0_12 = arith.constant 0 : index
    %c0_13 = arith.constant 0 : index
    %6 = vector.load %arg12[%c0_12, %c0_13] : memref<1x128xf32, #tpu.memory_space<vmem>>, vector<1x128xf32>
    %7 = vector.shape_cast %0 : vector<2x8x128xf32> to vector<16x128xf32>
    %c0_14 = arith.constant 0 : index
    %c0_15 = arith.constant 0 : index
    %8 = vector.load %arg3[%c0_14, %c0_15] : memref<128x256xf32, #tpu.memory_space<vmem>>, vector<128x256xf32>
    %cst = arith.constant dense<0.000000e+00> : vector<16x256xf32>
    %9 = tpu.matmul %7, %8, %cst {dimension_numbers = #tpu.dot_dimension_numbers<[1], [0], [0], [1], [0, 0, 1, 1], [], []>} : vector<16x128xf32>, vector<128x256xf32>, vector<16x256xf32> -> vector<16x256xf32>
    %10 = vector.extract_strided_slice %9 {offsets = [0, 0], sizes = [16, 128], strides = [1, 1]} : vector<16x256xf32> to vector<16x128xf32>
    %11 = vector.broadcast %1 : vector<1x128xf32> to vector<16x128xf32>
    %12 = arith.addf %10, %11 : vector<16x128xf32>
    %13 = vector.shape_cast %12 : vector<16x128xf32> to vector<2x8x128xf32>
    %14 = vector.extract_strided_slice %9 {offsets = [0, 128], sizes = [16, 128], strides = [1, 1]} : vector<16x256xf32> to vector<16x128xf32>
    %15 = vector.broadcast %2 : vector<1x128xf32> to vector<16x128xf32>
    %16 = arith.addf %14, %15 : vector<16x128xf32>
    %17 = vector.shape_cast %16 : vector<16x128xf32> to vector<2x8x128xf32>
    %c0_16 = arith.constant 0 : index
    %c0_17 = arith.constant 0 : index
    %c0_18 = arith.constant 0 : index
    %18 = vector.load %arg14[%c0_16, %c0_17, %c0_18] : memref<2x16x128xf32, #tpu.memory_space<vmem>>, vector<2x8x128xf32>
    tpu.vector_store %arg14[%c0_16, %c0_17, %c0_18], %17 {strides = array<i32>} : memref<2x16x128xf32, #tpu.memory_space<vmem>>, vector<2x8x128xf32>,
    %c0_19 = arith.constant 0 : index
    %c0_20 = arith.constant 0 : index
    %c0_21 = arith.constant 0 : index
    %19 = vector.load %arg2[%c0_19, %c0_20, %c0_21] : memref<2x8x128xf32, #tpu.memory_space<vmem>>, vector<2x8x128xf32>
    %20 = vector.shape_cast %19 : vector<2x8x128xf32> to vector<16x128xf32>
    %c0_22 = arith.constant 0 : index
    %c0_23 = arith.constant 0 : index
    %21 = vector.load %arg4[%c0_22, %c0_23] : memref<128x128xf32, #tpu.memory_space<vmem>>, vector<128x128xf32>
    %cst_24 = arith.constant dense<0.000000e+00> : vector<16x128xf32>
    %22 = tpu.matmul %20, %21, %cst_24 {dimension_numbers = #tpu.dot_dimension_numbers<[1], [0], [0], [1], [0, 0, 1, 1], [], []>} : vector<16x128xf32>, vector<128x128xf32>, vector<16x128xf32> -> vector<16x128xf32>
    %23 = vector.broadcast %2 : vector<1x128xf32> to vector<16x128xf32>
    %24 = arith.addf %22, %23 : vector<16x128xf32>
    %25 = vector.shape_cast %24 : vector<16x128xf32> to vector<2x8x128xf32>
    %c0_25 = arith.constant 0 : index
    %c8 = arith.constant 8 : index
    %c0_26 = arith.constant 0 : index
    %26 = vector.load %arg14[%c0_25, %c8, %c0_26] : memref<2x16x128xf32, #tpu.memory_space<vmem>>, vector<2x8x128xf32>
    tpu.vector_store %arg14[%c0_25, %c8, %c0_26], %25 {strides = array<i32>} : memref<2x16x128xf32, #tpu.memory_space<vmem>>, vector<2x8x128xf32>,
    %c0_27 = arith.constant 0 : index
    %c0_28 = arith.constant 0 : index
    %c0_29 = arith.constant 0 : index
    %27 = vector.load %arg14[%c0_27, %c0_28, %c0_29] : memref<2x16x128xf32, #tpu.memory_space<vmem>>, vector<2x16x128xf32>
    "tpu.trace_start"() <{level = 10 : i32, message = "bqd,bkd->bqk"}> : () -> ()
    %cst_30 = arith.constant dense<0.000000e+00> : vector<2x8x16xf32>
    %28 = tpu.matmul %13, %27, %cst_30 {dimension_numbers = #tpu.dot_dimension_numbers<[2], [2], [1], [1], [0, 0, 0, 1, 1, 1], [0], [0]>} : vector<2x8x128xf32>, vector<2x16x128xf32>, vector<2x8x16xf32> -> vector<2x8x16xf32>
    "tpu.trace_stop"() : () -> ()
    %29 = tpu.iota {dimensions = array<i32: 2>} : vector<1x1x16xi32>
    %cst_31 = arith.constant dense<0xFF800000> : vector<2x8xf32>
    %30 = vector.multi_reduction <maximumf>, %28, %cst_31 [2] : vector<2x8x16xf32> to vector<2x8xf32>
    %31 = vector.shape_cast %30 : vector<2x8xf32> to vector<2x8x1xf32>
    %32 = vector.broadcast %31 : vector<2x8x1xf32> to vector<2x8x16xf32>
    %33 = arith.cmpf oeq, %28, %32 : vector<2x8x16xf32>
    %c16_i32 = arith.constant 16 : i32
    %34 = vector.shape_cast %29 : vector<1x1x16xi32> to vector<1x1x16xi32>
    %35 = vector.broadcast %34 : vector<1x1x16xi32> to vector<2x8x16xi32>
    %36 = vector.broadcast %c16_i32 : i32 to vector<2x8x16xi32>
    %37 = arith.select %33, %35, %36 : vector<2x8x16xi1>, vector<2x8x16xi32>
    %cst_32 = arith.constant dense<2147483647> : vector<2x8xi32>
    %38 = vector.multi_reduction <minsi>, %37, %cst_32 [2] : vector<2x8x16xi32> to vector<2x8xi32>
    %39 = vector.shape_cast %38 : vector<2x8xi32> to vector<2x8x1xi32>
    %40 = vector.broadcast %29 : vector<1x1x16xi32> to vector<2x8x16xi32>
    %41 = vector.broadcast %39 : vector<2x8x1xi32> to vector<2x8x16xi32>
    %42 = arith.cmpi eq, %40, %41 : vector<2x8x16xi32>
    %43 = arith.extui %42 : vector<2x8x16xi1> to vector<2x8x16xi32>
    %44 = arith.sitofp %43 : vector<2x8x16xi32> to vector<2x8x16xf32>
    %cst_33 = arith.constant 0xFF800000 : f32
    %45 = vector.broadcast %cst_33 : f32 to vector<2x8x16xf32>
    %46 = arith.select %42, %45, %28 : vector<2x8x16xi1>, vector<2x8x16xf32>
    %cst_34 = arith.constant dense<0xFF800000> : vector<2x8xf32>
    %47 = vector.multi_reduction <maximumf>, %46, %cst_34 [2] : vector<2x8x16xf32> to vector<2x8xf32>
    %48 = vector.shape_cast %47 : vector<2x8xf32> to vector<2x8x1xf32>
    %49 = vector.broadcast %48 : vector<2x8x1xf32> to vector<2x8x16xf32>
    %50 = arith.cmpf oeq, %46, %49 : vector<2x8x16xf32>
    %c16_i32_35 = arith.constant 16 : i32
    %51 = vector.shape_cast %29 : vector<1x1x16xi32> to vector<1x1x16xi32>
    %52 = vector.broadcast %51 : vector<1x1x16xi32> to vector<2x8x16xi32>
    %53 = vector.broadcast %c16_i32_35 : i32 to vector<2x8x16xi32>
    %54 = arith.select %50, %52, %53 : vector<2x8x16xi1>, vector<2x8x16xi32>
    %cst_36 = arith.constant dense<2147483647> : vector<2x8xi32>
    %55 = vector.multi_reduction <minsi>, %54, %cst_36 [2] : vector<2x8x16xi32> to vector<2x8xi32>
    %56 = vector.shape_cast %55 : vector<2x8xi32> to vector<2x8x1xi32>
    %57 = vector.broadcast %29 : vector<1x1x16xi32> to vector<2x8x16xi32>
    %58 = vector.broadcast %56 : vector<2x8x1xi32> to vector<2x8x16xi32>
    %59 = arith.cmpi eq, %57, %58 : vector<2x8x16xi32>
    %60 = arith.extui %59 : vector<2x8x16xi1> to vector<2x8x16xi32>
    %61 = arith.sitofp %60 : vector<2x8x16xi32> to vector<2x8x16xf32>
    %cst_37 = arith.constant 0xFF800000 : f32
    %62 = vector.broadcast %cst_37 : f32 to vector<2x8x16xf32>
    %63 = arith.select %59, %62, %46 : vector<2x8x16xi1>, vector<2x8x16xf32>
    %cst_38 = arith.constant dense<0xFF800000> : vector<2x8xf32>
    %64 = vector.multi_reduction <maximumf>, %63, %cst_38 [2] : vector<2x8x16xf32> to vector<2x8xf32>
    %65 = vector.shape_cast %64 : vector<2x8xf32> to vector<2x8x1xf32>
    %66 = vector.broadcast %65 : vector<2x8x1xf32> to vector<2x8x16xf32>
    %67 = arith.cmpf oeq, %63, %66 : vector<2x8x16xf32>
    %c16_i32_39 = arith.constant 16 : i32
    %68 = vector.shape_cast %29 : vector<1x1x16xi32> to vector<1x1x16xi32>
    %69 = vector.broadcast %68 : vector<1x1x16xi32> to vector<2x8x16xi32>
    %70 = vector.broadcast %c16_i32_39 : i32 to vector<2x8x16xi32>
    %71 = arith.select %67, %69, %70 : vector<2x8x16xi1>, vector<2x8x16xi32>
    %cst_40 = arith.constant dense<2147483647> : vector<2x8xi32>
    %72 = vector.multi_reduction <minsi>, %71, %cst_40 [2] : vector<2x8x16xi32> to vector<2x8xi32>
    %73 = vector.shape_cast %72 : vector<2x8xi32> to vector<2x8x1xi32>
    %74 = vector.broadcast %29 : vector<1x1x16xi32> to vector<2x8x16xi32>
    %75 = vector.broadcast %73 : vector<2x8x1xi32> to vector<2x8x16xi32>
    %76 = arith.cmpi eq, %74, %75 : vector<2x8x16xi32>
    %77 = arith.extui %76 : vector<2x8x16xi1> to vector<2x8x16xi32>
    %78 = arith.sitofp %77 : vector<2x8x16xi32> to vector<2x8x16xf32>
    %cst_41 = arith.constant 0xFF800000 : f32
    %79 = vector.broadcast %cst_41 : f32 to vector<2x8x16xf32>
    %80 = arith.select %76, %79, %63 : vector<2x8x16xi1>, vector<2x8x16xf32>
    %cst_42 = arith.constant dense<0xFF800000> : vector<2x8xf32>
    %81 = vector.multi_reduction <maximumf>, %80, %cst_42 [2] : vector<2x8x16xf32> to vector<2x8xf32>
    %82 = vector.shape_cast %81 : vector<2x8xf32> to vector<2x8x1xf32>
    %83 = vector.broadcast %82 : vector<2x8x1xf32> to vector<2x8x16xf32>
    %84 = arith.cmpf oeq, %80, %83 : vector<2x8x16xf32>
    %c16_i32_43 = arith.constant 16 : i32
    %85 = vector.shape_cast %29 : vector<1x1x16xi32> to vector<1x1x16xi32>
    %86 = vector.broadcast %85 : vector<1x1x16xi32> to vector<2x8x16xi32>
    %87 = vector.broadcast %c16_i32_43 : i32 to vector<2x8x16xi32>
    %88 = arith.select %84, %86, %87 : vector<2x8x16xi1>, vector<2x8x16xi32>
    %cst_44 = arith.constant dense<2147483647> : vector<2x8xi32>
    %89 = vector.multi_reduction <minsi>, %88, %cst_44 [2] : vector<2x8x16xi32> to vector<2x8xi32>
    %90 = vector.shape_cast %89 : vector<2x8xi32> to vector<2x8x1xi32>
    %91 = vector.broadcast %29 : vector<1x1x16xi32> to vector<2x8x16xi32>
    %92 = vector.broadcast %90 : vector<2x8x1xi32> to vector<2x8x16xi32>
    %93 = arith.cmpi eq, %91, %92 : vector<2x8x16xi32>
    %94 = arith.extui %93 : vector<2x8x16xi1> to vector<2x8x16xi32>
    %95 = arith.sitofp %94 : vector<2x8x16xi32> to vector<2x8x16xf32>
    %96 = tpu.concatenate %44, %61, %78, %95 in 1 : vector<2x8x16xf32>, vector<2x8x16xf32>, vector<2x8x16xf32>, vector<2x8x16xf32> -> vector<2x32x16xf32>
    "tpu.trace_start"() <{level = 10 : i32, message = "bqn,bnd->bqd"}> : () -> ()
    %cst_45 = arith.constant dense<0.000000e+00> : vector<2x32x128xf32>
    %97 = tpu.matmul %96, %27, %cst_45 {dimension_numbers = #tpu.dot_dimension_numbers<[2], [1], [1], [2], [0, 0, 0, 1, 1, 2], [0], [0]>} : vector<2x32x16xf32>, vector<2x16x128xf32>, vector<2x32x128xf32> -> vector<2x32x128xf32>
    "tpu.trace_stop"() : () -> ()
    %98 = vector.extract_strided_slice %97 {offsets = [0, 0, 0], sizes = [2, 8, 128], strides = [1, 1, 1]} : vector<2x32x128xf32> to vector<2x8x128xf32>
    %99 = vector.extract_strided_slice %97 {offsets = [0, 8, 0], sizes = [2, 8, 128], strides = [1, 1, 1]} : vector<2x32x128xf32> to vector<2x8x128xf32>
    %100 = vector.extract_strided_slice %97 {offsets = [0, 16, 0], sizes = [2, 8, 128], strides = [1, 1, 1]} : vector<2x32x128xf32> to vector<2x8x128xf32>
    %101 = vector.extract_strided_slice %97 {offsets = [0, 24, 0], sizes = [2, 8, 128], strides = [1, 1, 1]} : vector<2x32x128xf32> to vector<2x8x128xf32>
    %102 = arith.subf %31, %31 : vector<2x8x1xf32>
    %cst_46 = arith.constant 0.0883883461 : f32
    %103 = vector.broadcast %cst_46 : f32 to vector<2x8x1xf32>
    %104 = arith.mulf %102, %103 : vector<2x8x1xf32>
    %105 = math.exp %104 : vector<2x8x1xf32>
    %106 = arith.subf %48, %31 : vector<2x8x1xf32>
    %cst_47 = arith.constant 0.0883883461 : f32
    %107 = vector.broadcast %cst_47 : f32 to vector<2x8x1xf32>
    %108 = arith.mulf %106, %107 : vector<2x8x1xf32>
    %109 = math.exp %108 : vector<2x8x1xf32>
    %110 = arith.subf %65, %31 : vector<2x8x1xf32>
    %cst_48 = arith.constant 0.0883883461 : f32
    %111 = vector.broadcast %cst_48 : f32 to vector<2x8x1xf32>
    %112 = arith.mulf %110, %111 : vector<2x8x1xf32>
    %113 = math.exp %112 : vector<2x8x1xf32>
    %114 = arith.subf %82, %31 : vector<2x8x1xf32>
    %cst_49 = arith.constant 0.0883883461 : f32
    %115 = vector.broadcast %cst_49 : f32 to vector<2x8x1xf32>
    %116 = arith.mulf %114, %115 : vector<2x8x1xf32>
    %117 = math.exp %116 : vector<2x8x1xf32>
    %118 = arith.addf %105, %109 : vector<2x8x1xf32>
    %119 = arith.addf %118, %113 : vector<2x8x1xf32>
    %120 = arith.addf %119, %117 : vector<2x8x1xf32>
    %cst_50 = arith.constant 1.000000e+00 : f32
    %121 = vector.broadcast %cst_50 : f32 to vector<2x8x1xf32>
    %122 = arith.divf %121, %120 : vector<2x8x1xf32>
    %123 = arith.mulf %105, %122 : vector<2x8x1xf32>
    %124 = arith.mulf %109, %122 : vector<2x8x1xf32>
    %125 = arith.mulf %113, %122 : vector<2x8x1xf32>
    %126 = arith.mulf %117, %122 : vector<2x8x1xf32>
    %cst_51 = arith.constant 1.000000e+00 : f32
    %127 = vector.broadcast %cst_51 : f32 to vector<2x8x1xf32>
    %128 = arith.subf %127, %123 : vector<2x8x1xf32>
    %129 = vector.broadcast %128 : vector<2x8x1xf32> to vector<2x8x128xf32>
    %130 = arith.mulf %129, %13 : vector<2x8x128xf32>
    %131 = vector.broadcast %123 : vector<2x8x1xf32> to vector<2x8x128xf32>
    %132 = arith.mulf %131, %98 : vector<2x8x128xf32>
    %133 = arith.addf %130, %132 : vector<2x8x128xf32>
    %134 = arith.addf %13, %133 : vector<2x8x128xf32>
    %135 = math.tanh %134 : vector<2x8x128xf32>
    %cst_52 = arith.constant dense<0.000000e+00> : vector<2x8xf32>
    %136 = vector.multi_reduction <add>, %98, %cst_52 [2] : vector<2x8x128xf32> to vector<2x8xf32>
    %137 = vector.shape_cast %136 : vector<2x8xf32> to vector<2x8x1xf32>
    %cst_53 = arith.constant dense<0.000000e+00> : vector<2x8xf32>
    %138 = vector.multi_reduction <add>, %135, %cst_53 [2] : vector<2x8x128xf32> to vector<2x8xf32>
    %139 = vector.shape_cast %138 : vector<2x8xf32> to vector<2x8x1xf32>
    %140 = arith.mulf %137, %139 : vector<2x8x1xf32>
    %cst_54 = arith.constant 1.000000e+00 : f32
    %141 = vector.broadcast %cst_54 : f32 to vector<2x8x1xf32>
    %142 = arith.subf %141, %124 : vector<2x8x1xf32>
    %143 = vector.broadcast %142 : vector<2x8x1xf32> to vector<2x8x128xf32>
    %144 = arith.mulf %143, %13 : vector<2x8x128xf32>
    %145 = vector.broadcast %124 : vector<2x8x1xf32> to vector<2x8x128xf32>
    %146 = arith.mulf %145, %99 : vector<2x8x128xf32>
    %147 = arith.addf %144, %146 : vector<2x8x128xf32>
    %148 = arith.addf %13, %147 : vector<2x8x128xf32>
    %149 = math.tanh %148 : vector<2x8x128xf32>
    %cst_55 = arith.constant dense<0.000000e+00> : vector<2x8xf32>
    %150 = vector.multi_reduction <add>, %99, %cst_55 [2] : vector<2x8x128xf32> to vector<2x8xf32>
    %151 = vector.shape_cast %150 : vector<2x8xf32> to vector<2x8x1xf32>
    %cst_56 = arith.constant dense<0.000000e+00> : vector<2x8xf32>
    %152 = vector.multi_reduction <add>, %149, %cst_56 [2] : vector<2x8x128xf32> to vector<2x8xf32>
    %153 = vector.shape_cast %152 : vector<2x8xf32> to vector<2x8x1xf32>
    %154 = arith.mulf %151, %153 : vector<2x8x1xf32>
    %cst_57 = arith.constant 1.000000e+00 : f32
    %155 = vector.broadcast %cst_57 : f32 to vector<2x8x1xf32>
    %156 = arith.subf %155, %125 : vector<2x8x1xf32>
    %157 = vector.broadcast %156 : vector<2x8x1xf32> to vector<2x8x128xf32>
    %158 = arith.mulf %157, %13 : vector<2x8x128xf32>
    %159 = vector.broadcast %125 : vector<2x8x1xf32> to vector<2x8x128xf32>
    %160 = arith.mulf %159, %100 : vector<2x8x128xf32>
    %161 = arith.addf %158, %160 : vector<2x8x128xf32>
    %162 = arith.addf %13, %161 : vector<2x8x128xf32>
    %163 = math.tanh %162 : vector<2x8x128xf32>
    %cst_58 = arith.constant dense<0.000000e+00> : vector<2x8xf32>
    %164 = vector.multi_reduction <add>, %100, %cst_58 [2] : vector<2x8x128xf32> to vector<2x8xf32>
    %165 = vector.shape_cast %164 : vector<2x8xf32> to vector<2x8x1xf32>
    %cst_59 = arith.constant dense<0.000000e+00> : vector<2x8xf32>
    %166 = vector.multi_reduction <add>, %163, %cst_59 [2] : vector<2x8x128xf32> to vector<2x8xf32>
    %167 = vector.shape_cast %166 : vector<2x8xf32> to vector<2x8x1xf32>
    %168 = arith.mulf %165, %167 : vector<2x8x1xf32>
    %cst_60 = arith.constant 1.000000e+00 : f32
    %169 = vector.broadcast %cst_60 : f32 to vector<2x8x1xf32>
    %170 = arith.subf %169, %126 : vector<2x8x1xf32>
    %171 = vector.broadcast %170 : vector<2x8x1xf32> to vector<2x8x128xf32>
    %172 = arith.mulf %171, %13 : vector<2x8x128xf32>
    %173 = vector.broadcast %126 : vector<2x8x1xf32> to vector<2x8x128xf32>
    %174 = arith.mulf %173, %101 : vector<2x8x128xf32>
    %175 = arith.addf %172, %174 : vector<2x8x128xf32>
    %176 = arith.addf %13, %175 : vector<2x8x128xf32>
    %177 = math.tanh %176 : vector<2x8x128xf32>
    %cst_61 = arith.constant dense<0.000000e+00> : vector<2x8xf32>
    %178 = vector.multi_reduction <add>, %101, %cst_61 [2] : vector<2x8x128xf32> to vector<2x8xf32>
    %179 = vector.shape_cast %178 : vector<2x8xf32> to vector<2x8x1xf32>
    %cst_62 = arith.constant dense<0.000000e+00> : vector<2x8xf32>
    %180 = vector.multi_reduction <add>, %177, %cst_62 [2] : vector<2x8x128xf32> to vector<2x8xf32>
    %181 = vector.shape_cast %180 : vector<2x8xf32> to vector<2x8x1xf32>
    %182 = arith.mulf %179, %181 : vector<2x8x1xf32>
    %183 = arith.maximumf %140, %154 : vector<2x8x1xf32>
    %184 = arith.maximumf %183, %168 : vector<2x8x1xf32>
    %185 = arith.maximumf %184, %182 : vector<2x8x1xf32>
    %186 = arith.subf %140, %185 : vector<2x8x1xf32>
    %187 = math.exp %186 : vector<2x8x1xf32>
    %188 = arith.subf %154, %185 : vector<2x8x1xf32>
    %189 = math.exp %188 : vector<2x8x1xf32>
    %190 = arith.subf %168, %185 : vector<2x8x1xf32>
    %191 = math.exp %190 : vector<2x8x1xf32>
    %192 = arith.subf %182, %185 : vector<2x8x1xf32>
    %193 = math.exp %192 : vector<2x8x1xf32>
    %194 = arith.addf %187, %189 : vector<2x8x1xf32>
    %195 = arith.addf %194, %191 : vector<2x8x1xf32>
    %196 = arith.addf %195, %193 : vector<2x8x1xf32>
    %cst_63 = arith.constant 1.000000e+00 : f32
    %197 = vector.broadcast %cst_63 : f32 to vector<2x8x1xf32>
    %198 = arith.divf %197, %196 : vector<2x8x1xf32>
    %cst_64 = arith.constant 0.000000e+00 : f32
    %199 = vector.broadcast %cst_64 : f32 to vector<2x8x128xf32>
    %200 = arith.mulf %187, %198 : vector<2x8x1xf32>
    %201 = vector.broadcast %200 : vector<2x8x1xf32> to vector<2x8x128xf32>
    %202 = arith.mulf %201, %98 : vector<2x8x128xf32>
    %203 = arith.addf %199, %202 : vector<2x8x128xf32>
    %204 = arith.mulf %189, %198 : vector<2x8x1xf32>
    %205 = vector.broadcast %204 : vector<2x8x1xf32> to vector<2x8x128xf32>
    %206 = arith.mulf %205, %99 : vector<2x8x128xf32>
    %207 = arith.addf %203, %206 : vector<2x8x128xf32>
    %208 = arith.mulf %191, %198 : vector<2x8x1xf32>
    %209 = vector.broadcast %208 : vector<2x8x1xf32> to vector<2x8x128xf32>
    %210 = arith.mulf %209, %100 : vector<2x8x128xf32>
    %211 = arith.addf %207, %210 : vector<2x8x128xf32>
    %212 = arith.mulf %193, %198 : vector<2x8x1xf32>
    %213 = vector.broadcast %212 : vector<2x8x1xf32> to vector<2x8x128xf32>
    %214 = arith.mulf %213, %101 : vector<2x8x128xf32>
    %215 = arith.addf %211, %214 : vector<2x8x128xf32>
    %216 = arith.addf %13, %215 : vector<2x8x128xf32>
    %cst_65 = arith.constant 1.000000e-01 : f32
    %217 = vector.broadcast %cst_65 : f32 to vector<2x8x128xf32>
    %218 = arith.mulf %216, %217 : vector<2x8x128xf32>
    %219 = arith.addf %218, %0 : vector<2x8x128xf32>
    %220 = vector.shape_cast %219 : vector<2x8x128xf32> to vector<16x128xf32>
    %221 = arith.mulf %13, %215 : vector<2x8x128xf32>
    %cst_66 = arith.constant 1.000000e-01 : f32
    %222 = vector.broadcast %cst_66 : f32 to vector<2x8x128xf32>
    %223 = arith.mulf %221, %222 : vector<2x8x128xf32>
    %224 = arith.addf %223, %0 : vector<2x8x128xf32>
    %225 = vector.shape_cast %224 : vector<2x8x128xf32> to vector<16x128xf32>
    %c0_67 = arith.constant 0 : index
    %c0_68 = arith.constant 0 : index
    %226 = vector.load %arg7[%c0_67, %c0_68] : memref<128x128xf32, #tpu.memory_space<vmem>>, vector<128x128xf32>
    %cst_69 = arith.constant dense<0.000000e+00> : vector<16x128xf32>
    %227 = tpu.matmul %220, %226, %cst_69 {dimension_numbers = #tpu.dot_dimension_numbers<[1], [0], [0], [1], [0, 0, 1, 1], [], []>} : vector<16x128xf32>, vector<128x128xf32>, vector<16x128xf32> -> vector<16x128xf32>
    %228 = vector.broadcast %3 : vector<1x128xf32> to vector<16x128xf32>
    %229 = arith.addf %227, %228 : vector<16x128xf32>
    %cst_70 = arith.constant 0.000000e+00 : f32
    %230 = vector.broadcast %cst_70 : f32 to vector<16x128xf32>
    %231 = arith.cmpf oge, %229, %230 : vector<16x128xf32>
    %cst_71 = arith.constant 0.00999999977 : f32
    %232 = vector.broadcast %cst_71 : f32 to vector<16x128xf32>
    %233 = arith.mulf %232, %229 : vector<16x128xf32>
    %234 = arith.select %231, %229, %233 : vector<16x128xi1>, vector<16x128xf32>
    %c0_72 = arith.constant 0 : index
    %c0_73 = arith.constant 0 : index
    %235 = vector.load %arg9[%c0_72, %c0_73] : memref<128x128xf32, #tpu.memory_space<vmem>>, vector<128x128xf32>
    %cst_74 = arith.constant dense<0.000000e+00> : vector<16x128xf32>
    %236 = tpu.matmul %225, %235, %cst_74 {dimension_numbers = #tpu.dot_dimension_numbers<[1], [0], [0], [1], [0, 0, 1, 1], [], []>} : vector<16x128xf32>, vector<128x128xf32>, vector<16x128xf32> -> vector<16x128xf32>
    %237 = vector.broadcast %4 : vector<1x128xf32> to vector<16x128xf32>
    %238 = arith.addf %236, %237 : vector<16x128xf32>
    %cst_75 = arith.constant 0.000000e+00 : f32
    %239 = vector.broadcast %cst_75 : f32 to vector<16x128xf32>
    %240 = arith.cmpf oge, %238, %239 : vector<16x128xf32>
    %cst_76 = arith.constant 0.00999999977 : f32
    %241 = vector.broadcast %cst_76 : f32 to vector<16x128xf32>
    %242 = arith.mulf %241, %238 : vector<16x128xf32>
    %243 = arith.select %240, %238, %242 : vector<16x128xi1>, vector<16x128xf32>
    %244 = arith.addf %234, %243 : vector<16x128xf32>
    %cst_77 = arith.constant dense<0.000000e+00> : vector<16xf32>
    %245 = vector.multi_reduction <add>, %244, %cst_77 [1] : vector<16x128xf32> to vector<16xf32>
    %246 = vector.shape_cast %245 : vector<16xf32> to vector<16x1xf32>
    %cst_78 = arith.constant 1.280000e+02 : f32
    %247 = vector.broadcast %cst_78 : f32 to vector<16x1xf32>
    %248 = arith.divf %246, %247 : vector<16x1xf32>
    %249 = vector.broadcast %248 : vector<16x1xf32> to vector<16x128xf32>
    %250 = arith.subf %244, %249 : vector<16x128xf32>
    %251 = arith.mulf %250, %250 : vector<16x128xf32>
    %cst_79 = arith.constant dense<0.000000e+00> : vector<16xf32>
    %252 = vector.multi_reduction <add>, %251, %cst_79 [1] : vector<16x128xf32> to vector<16xf32>
    %253 = vector.shape_cast %252 : vector<16xf32> to vector<16x1xf32>
    %cst_80 = arith.constant 1.280000e+02 : f32
    %254 = vector.broadcast %cst_80 : f32 to vector<16x1xf32>
    %255 = arith.divf %253, %254 : vector<16x1xf32>
    %256 = vector.broadcast %248 : vector<16x1xf32> to vector<16x128xf32>
    %257 = arith.subf %244, %256 : vector<16x128xf32>
    %cst_81 = arith.constant 9.99999974E-6 : f32
    %258 = vector.broadcast %cst_81 : f32 to vector<16x1xf32>
    %259 = arith.addf %255, %258 : vector<16x1xf32>
    %260 = math.rsqrt %259 : vector<16x1xf32>
    %261 = vector.broadcast %260 : vector<16x1xf32> to vector<16x128xf32>
    %262 = arith.mulf %257, %261 : vector<16x128xf32>
    %263 = vector.broadcast %5 : vector<1x128xf32> to vector<16x128xf32>
    %264 = arith.mulf %262, %263 : vector<16x128xf32>
    %265 = vector.broadcast %6 : vector<1x128xf32> to vector<16x128xf32>
    %266 = arith.addf %264, %265 : vector<16x128xf32>
    %267 = vector.shape_cast %266 : vector<16x128xf32> to vector<2x8x128xf32>
    %c0_82 = arith.constant 0 : index
    %c0_83 = arith.constant 0 : index
    %c0_84 = arith.constant 0 : index
    %268 = vector.load %arg13[%c0_82, %c0_83, %c0_84] : memref<2x8x128xf32, #tpu.memory_space<vmem>>, vector<2x8x128xf32>
    tpu.vector_store %arg13[%c0_82, %c0_83, %c0_84], %267 {strides = array<i32>} : memref<2x8x128xf32, #tpu.memory_space<vmem>>, vector<2x8x128xf32>,
    return
  }
  func.func @transform_0(%arg0: i32) -> (i32, i32, i32) {
    %c0_i32 = arith.constant 0 : i32
    %c0_i32_0 = arith.constant 0 : i32
    %c0_i32_1 = arith.constant 0 : i32
    return %arg0, %c0_i32, %c0_i32_0 : i32, i32, i32
  }
  func.func @transform_1(%arg0: i32) -> (i32, i32, i32) {
    %c0_i32 = arith.constant 0 : i32
    %c0_i32_0 = arith.constant 0 : i32
    %c0_i32_1 = arith.constant 0 : i32
    return %arg0, %c0_i32, %c0_i32_0 : i32, i32, i32
  }
  func.func @transform_2(%arg0: i32) -> (i32, i32) {
    %c0_i32 = arith.constant 0 : i32
    %c0_i32_0 = arith.constant 0 : i32
    %c0_i32_1 = arith.constant 0 : i32
    return %c0_i32, %c0_i32_0 : i32, i32
  }
  func.func @transform_3(%arg0: i32) -> (i32, i32) {
    %c0_i32 = arith.constant 0 : i32
    %c0_i32_0 = arith.constant 0 : i32
    %c0_i32_1 = arith.constant 0 : i32
    return %c0_i32, %c0_i32_0 : i32, i32
  }
  func.func @transform_4(%arg0: i32) -> (i32, i32) {
    %c0_i32 = arith.constant 0 : i32
    %c0_i32_0 = arith.constant 0 : i32
    %c0_i32_1 = arith.constant 0 : i32
    return %c0_i32, %c0_i32_0 : i32, i32
  }
  func.func @transform_5(%arg0: i32) -> (i32, i32) {
    %c0_i32 = arith.constant 0 : i32
    %c0_i32_0 = arith.constant 0 : i32
    %c0_i32_1 = arith.constant 0 : i32
    return %c0_i32, %c0_i32_0 : i32, i32
  }
  func.func @transform_6(%arg0: i32) -> (i32, i32) {
    %c0_i32 = arith.constant 0 : i32
    %c0_i32_0 = arith.constant 0 : i32
    %c0_i32_1 = arith.constant 0 : i32
    return %c0_i32, %c0_i32_0 : i32, i32
  }
  func.func @transform_7(%arg0: i32) -> (i32, i32) {
    %c0_i32 = arith.constant 0 : i32
    %c0_i32_0 = arith.constant 0 : i32
    %c0_i32_1 = arith.constant 0 : i32
    return %c0_i32, %c0_i32_0 : i32, i32
  }
  func.func @transform_8(%arg0: i32) -> (i32, i32) {
    %c0_i32 = arith.constant 0 : i32
    %c0_i32_0 = arith.constant 0 : i32
    %c0_i32_1 = arith.constant 0 : i32
    return %c0_i32, %c0_i32_0 : i32, i32
  }
  func.func @transform_9(%arg0: i32) -> (i32, i32) {
    %c0_i32 = arith.constant 0 : i32
    %c0_i32_0 = arith.constant 0 : i32
    %c0_i32_1 = arith.constant 0 : i32
    return %c0_i32, %c0_i32_0 : i32, i32
  }
  func.func @transform_10(%arg0: i32) -> (i32, i32) {
    %c0_i32 = arith.constant 0 : i32
    %c0_i32_0 = arith.constant 0 : i32
    %c0_i32_1 = arith.constant 0 : i32
    return %c0_i32, %c0_i32_0 : i32, i32
  }
  func.func @transform_11(%arg0: i32) -> (i32, i32) {
    %c0_i32 = arith.constant 0 : i32
    %c0_i32_0 = arith.constant 0 : i32
    %c0_i32_1 = arith.constant 0 : i32
    return %c0_i32, %c0_i32_0 : i32, i32
  }
  func.func @transform_12(%arg0: i32) -> (i32, i32, i32) {
    %c0_i32 = arith.constant 0 : i32
    %c0_i32_0 = arith.constant 0 : i32
    %c0_i32_1 = arith.constant 0 : i32
    return %arg0, %c0_i32, %c0_i32_0 : i32, i32, i32
  }
}

</mosaic_0001>

<bundles_post_ra>
// kernel: tpu_custom_call.1
= control target key start
LH: loop header
LB: loop body
LE: loop exit
PB: predicated region body
PF: predicated region fallthrough
CT: control target
= control target key end

     0   :  { %s2572_s0 = inlined_call_operand.hbm [shape: f32[4,8,128], index: 0, kind: input, shape index: {}]   ;;  %s2573_s1 = inlined_call_operand.hbm [shape: f32[4,8,128], index: 1, kind: input, shape index: {}]   ;;  %s2574_s2 = inlined_call_operand.hbm [shape: f32[128,256], index: 2, kind: input, shape index: {}]   ;;  %s2575_s3 = inlined_call_operand.hbm [shape: f32[128,128], index: 3, kind: input, shape index: {}]   ;;  %s2576_s4 = inlined_call_operand.vmem [shape: f32[1,128], index: 4, kind: input, shape index: {}]   ;;  %s2577_s5 = inlined_call_operand.vmem [shape: f32[1,128], index: 5, kind: input, shape index: {}]   ;;  %s2578_s6 = inlined_call_operand.hbm [shape: f32[128,128], index: 6, kind: input, shape index: {}]   ;;  %s2579_s7 = inlined_call_operand.vmem [shape: f32[1,128], index: 7, kind: input, shape index: {}]   ;;  %s2580_s8 = inlined_call_operand.hbm [shape: f32[128,128], index: 8, kind: input, shape index: {}]   ;;  %s2581_s9 = inlined_call_operand.vmem [shape: f32[1,128], index: 9, kind: input, shape index: {}]   ;;  %s2582_s10 = inlined_call_operand.vmem [shape: f32[1,128], index: 10, kind: input, shape index: {}]   ;;  %s2583_s11 = inlined_call_operand.vmem [shape: f32[1,128], index: 11, kind: input, shape index: {}]   ;;  %s2584_s12 = inlined_call_operand.hbm [shape: f32[4,8,128], index: 12, kind: output, shape index: {}]  }
   0x1   :  { %2596 = sst [smem:[#allocation27_spill]] %s2572_s0 }
   0x2   :  { %2597 = sst [smem:[#allocation28_spill]] %s2574_s2 }
   0x3   :  { %2598 = sst [smem:[#allocation29_spill]] %s2575_s3 }
   0x4   :  { %2599 = sst [smem:[#allocation30_spill]] %s2578_s6 }
   0x5   :  { %2600 = sst [smem:[#allocation31_spill]] %s2580_s8 }
   0x6   :  { %17 = vsyncpa [#allocation4], 0 }
   0x7   :  { %19 = vsyncpa [#allocation4 + $0x1], 0 }
   0x8   :  { %20 = vsyncpa [#allocation7], 0 }
   0x9   :  { %22 = vsyncpa [#allocation7 + $0x1], 0 }
   0xa   :  { %23 = vsyncpa [#allocation10], 0 }
   0xb   :  { %24 = vsyncpa [#allocation13], 0 }
   0xc   :  { %25 = vsyncpa [#allocation5], 0 }
   0xd   :  { %27 = vsyncpa [#allocation5 + $0x1], 0  ;;  %s2136_s21 = smov 0   ;;  %s2138_s22 = smov 0  }
   0xe   :  { %s2140_s23 = smov 0   ;;  %s2142_s24 = smov 0  }
   0xf LB: > { %2601 = sst [smem:[#allocation21_spill]] %s2045_s21  ;;  %s2157_s25 = sadd.s32 4294967295, %s2057_s24   ;;  %s2057_s24 = sphi %s2142_s24, %s2624_s24   ;;  %s2053_s23 = sphi %s2140_s23, %s2626_s23   ;;  %s2049_s22 = sphi %s2138_s22, %s2628_s22   ;;  %s2045_s21 = sphi %s2136_s21, %s2627_s21  }
  0x10   : > { %2602 = sst [smem:[#allocation22_spill]] %s2053_s23  ;;  %s1578_s26 = sadd.s32 4294967294, %s2057_s24  }
  0x11   : > { %p53_p0 = scmp.ne.s32.totalorder %s2049_s22, %s2045_s21  ;;  %p54_p1 = scmp.eq.s32.totalorder %s2157_s25, 0 }
  0x12   : > { %p313_p2 = scmp.eq.s32.totalorder %s2157_s25, 1  ;;  %p319_p3 = scmp.eq.s32.totalorder %s1578_s26, 1 }
  0x13   : > { %p2166_p4 = por %p54_p1, %p53_p0  ;;  %p1579_p5 = scmp.ge.s32.totalorder %s2057_s24, 1 }
  0x14   : > { %p2171_p6 = por %p319_p3, %p53_p0  ;;  %p326_p7 = scmp.lt.s32.totalorder %s2057_s24, 3 }
  0x15   : > { %s2606_s2 = sld [smem:[#allocation28_spill]]  ;;  %s2059_s15 = smov [#allocation8]  }
  0x16   : > { %s2604_s28 = scalar_select %p2171_p6, 1, 0 }
  0x17   : > { %p2179_p8 = pnand %p1579_p5, %p326_p7  ;;  %s339_s16 = sshll.u32 %s2059_s15, 4  ;;  %s340_s16 = int_to_ptr.vmem [resolvable:$true] %s339_s16 }
  0x18   : > { %2605 = sst [smem:[#allocation23_spill]] %s2604_s28  ;;  %s2060_s26 = smov 256  }
  0x19   : > { %p1647_p9 = pneg %p2179_p8  ;;  %s2609_s3 = sld [smem:[#allocation29_spill]] }
  0x1a   : > { %s2061_s29 = smov 16   ;;  %s2062_s30 = smov [#allocation9]  }
  0x1b   : > { %s337_s13 = sshll.u32 %s2606_s2, 4  ;;  %p2187_p10 = pnand %p1647_p9, %p54_p1  ;;  %s338_s13 = int_to_ptr.hbm [resolvable:$true] %s337_s13 }
  0x1c   : > { %s353_s15 = sshll.u32 %s2062_s30, 4  ;;  %s2586_s2 = smov 128   ;;  %s354_s15 = int_to_ptr.vmem [resolvable:$true] %s353_s15 }
  0x1d   : > { %1650 = dma.hbm_to_vmem [thread:$0]  (!%p2187_p10), %s338_s13, 4096, %s340_s16, [#allocation7], %s2060_s26, %s2060_s26, %s2061_s29  }
  0x1e   : > { %s2588_s28 = smov 8   ;;  %s2610_s6 = sld [smem:[#allocation30_spill]] }
  0x1f   : > { %s351_s20 = sshll.u32 %s2609_s3, 4  ;;  %s2065_s16 = smov [#allocation11]   ;;  %s352_s20 = int_to_ptr.hbm [resolvable:$true] %s351_s20 }
  0x20   : > { %1653 = dma.hbm_to_vmem [thread:$0]  (!%p2187_p10), %s352_s20, 2048, %s354_s15, [#allocation10], %s2586_s2, %s2586_s2, %s2588_s28  }
  0x21   : > { %s373_s26 = sshll.u32 %s2065_s16, 4  ;;  %s2611_s8 = sld [smem:[#allocation31_spill]]  ;;  %s374_s26 = int_to_ptr.vmem [resolvable:$true] %s373_s26 }
  0x22   : > { %s2066_s20 = smov [#allocation12]   ;;  %s2219_s18 = sadd.s32 1, %s2057_s24  }
  0x23   : > { %s390_s15 = sshll.u32 %s2066_s20, 4  ;;  %2612 = sst [smem:[#allocation24_spill]] %s2219_s18  ;;  %s391_s15 = int_to_ptr.vmem [resolvable:$true] %s390_s15 }
  0x24   : > { %s371_s13 = sshll.u32 %s2610_s6, 4  ;;  %s40_s19 = sadd.s32 1, %s2053_s23  ;;  %s372_s13 = int_to_ptr.hbm [resolvable:$true] %s371_s13 }
  0x25   : > { %1656 = dma.hbm_to_vmem [thread:$0]  (!%p2187_p10), %s372_s13, 2048, %s374_s26, [#allocation10], %s2586_s2, %s2586_s2, %s2588_s28  }
  0x26   : > { %s37_s16 = ssub.s32 %s2057_s24, %s2219_s18  ;;  %p47_p12 = scmp.ne.s32.totalorder %s2053_s23, %s2049_s22 }
  0x27   : > { %s388_s3 = sshll.u32 %s2611_s8, 4  ;;  %p38_p13 = scmp.eq.s32.totalorder %s37_s16, 0  ;;  %s389_s3 = int_to_ptr.hbm [resolvable:$true] %s388_s3 }
  0x28   : > { %1659 = dma.hbm_to_vmem [thread:$0]  (!%p2187_p10), %s389_s3, 2048, %s391_s15, [#allocation13], %s2586_s2, %s2586_s2, %s2588_s28  }
  0x29   : > { %p48_p0 = scmp.eq.s32.totalorder %s2057_s24, 0  ;;  %p2229_p3 = por %p313_p2, %p47_p12 }
  0x2a   : > { %p1675_p5 = scmp.lt.s32.totalorder %s2057_s24, 2  ;;  %s413_s17 = sand.u32 1, %s2053_s23  }
  0x2b   : > { %s2613_s13 = scalar_select %p2229_p3, 1, 0 }
  0x2c   : > { %s2235_s26 = scalar_select %p38_p13, %s2053_s23, %s40_s19  }
  0x2d   : > { %2614 = sst [smem:[#allocation25_spill]] %s2613_s13  ;;  %p49_p7 = por %p48_p0, %p47_p12 }
  0x2e   : > { %2615 = sst [smem:[#allocation26_spill]] %s2235_s26  ;;  %s2238_s29 = sshll.u32 %s413_s17, 4 }
  0x2f   : > { %s1620_s3 = sshll.u32 %s2057_s24, 4  ;;  %s2616_s0 = sld [smem:[#allocation27_spill]] }
  0x30   : > { %s417_s16 = scalar_lea.vmem [#allocation3], %s2238_s29  ;;  %p2245_p2 = pnand %p1675_p5, %p49_p7 }
  0x31   : > { %s425_s2 = sshll.u32 %s417_s16, 4  ;;  %s444_s26 = scalar_lea.hbm %s2573_s1, %s1620_s3  ;;  %s426_s2 = int_to_ptr.vmem [resolvable:$true] %s425_s2 }
  0x32   : > { %s445_s23 = sshll.u32 %s444_s26, 4  ;;  %s414_s18 = scalar_lea.sflag [#allocation4], %s413_s17  ;;  %s446_s23 = int_to_ptr.hbm [resolvable:$true] %s445_s23 }
  0x33   : > { %p1919_p10 = pneg %p2245_p2 }
  0x35   : > { %s422_s15 = scalar_lea.hbm %s2616_s0, %s1620_s3  ;;  %s1922_s16 = scalar_lea.hbm %s2616_s0, 32 }
  0x36   : > { %s423_s28 = sshll.u32 %s422_s15, 4  ;;  %s424_s28 = int_to_ptr.hbm [resolvable:$true] %s423_s28 }
  0x37   : > { %s1915_s21 = sshra.s32 %s424_s28, 4  ;;  %s1916_s21 = int_to_ptr.hbm [resolvable:$true] %s1915_s21 }
  0x38   : > { %s1917_s30 = scalar_lea.hbm %s1916_s21, 16  ;;  %p1923_p0 = scmp.lt.s32.totalorder %s1916_s21, %s2616_s0 }
  0x39   : > { %p1918_p9 = scmp.ne.s32.totalorder %s1916_s21, %s1917_s30  ;;  %p1924_p5 = scmp.lt.s32.totalorder %s1922_s16, %s1917_s30 }
  0x3b   : > { %p1920_p12 = pnand %p1919_p10, %p1918_p9  ;;  %p1925_p7 = por %p1924_p5, %p1923_p0 }
  0x3d   : > { %p1921_p13 = pneg %p1920_p12 }
  0x3f   : > { %p1926_p11 = pnand %p1925_p7, %p1921_p13 }
  0x41   : > { %1929 = shalt.err (!%p1926_p11)
}
  0x42   : > { %s2618_s26 = smov 8   ;;  %s2619_s17 = smov 128  }
  0x43   : > { %1663 = dma.hbm_to_vmem [thread:$0]  (!%p2245_p2), %s424_s28, 256, %s426_s2, %s414_s18, %s2619_s17, %s2619_s17, %s2618_s26  }
  0x44   : > { %s439_s3 = scalar_lea.vmem [#allocation6], %s2238_s29  ;;  %s435_s15 = sand.u32 1, %s2057_s24  }
  0x45   : > { %s447_s20 = sshll.u32 %s439_s3, 4  ;;  %s436_s8 = scalar_lea.sflag [#allocation7], %s435_s15  ;;  %s448_s20 = int_to_ptr.vmem [resolvable:$true] %s447_s20 }
  0x46   : > { %s1945_s21 = sshra.s32 %s446_s23, 4  ;;  %s1952_s0 = scalar_lea.hbm %s2573_s1, 32  ;;  %s1946_s21 = int_to_ptr.hbm [resolvable:$true] %s1945_s21 }
  0x47   : > { %s1947_s30 = scalar_lea.hbm %s1946_s21, 16  ;;  %p1953_p13 = scmp.lt.s32.totalorder %s1946_s21, %s2573_s1 }
  0x48   : > { %p1948_p9 = scmp.ne.s32.totalorder %s1946_s21, %s1947_s30  ;;  %p1954_p0 = scmp.lt.s32.totalorder %s1952_s0, %s1947_s30 }
  0x4a   : > { %p1950_p11 = pnand %p1948_p9, %p1919_p10  ;;  %p1955_p5 = por %p1954_p0, %p1953_p13 }
  0x4c   : > { %p1951_p12 = pneg %p1950_p11 }
  0x4e   : > { %p1956_p7 = pnand %p1955_p5, %p1951_p12 }
  0x50   : > { %1959 = shalt.err (!%p1956_p7)
}
  0x51   : > { %1666 = dma.hbm_to_vmem [thread:$0]  (!%p2245_p2), %s446_s23, 256, %s448_s20, %s436_s8, %s2619_s17, %s2619_s17, %s2618_s26  }
  0x52   : > { %459 = sbr.rel (%p2179_p8) target bundleno = 2593 (0xa21), region = 68  ;;  %s2287_s28 = sand.u32 (!%p2179_p8), 1, %s2049_s22  }
  0x53   : > { %s2290_s18 = sshll.u32 (!%p2179_p8), %s2287_s28, 4  ;;  %s462_s0 = scalar_lea.sflag (!%p2179_p8), [#allocation4], %s2287_s28 }
  0x54   : > { %s2294_s13 = scalar_lea.vmem (!%p2179_p8), [#allocation3], %s2290_s18 }
  0x57   : > { %2020 = dma.done.wait (%p2166_p4), %s462_s0, 256  }
  0x58   : > { %2022 = vsyncadd (%p2166_p4), %s462_s0, 4294967040  ;;  %s471_s6 = sand.u32 1, %s2157_s25   ;;  %s475_s14 = scalar_lea.vmem [#allocation6], %s2290_s18 }
  0x59   : > { %s472_s23 = scalar_lea.sflag [#allocation7], %s471_s6 }
  0x5a   : > { %2024 = dma.done.wait (%p2166_p4), %s472_s23, 256  }
  0x5b   : > { %2026 = vsyncadd (%p2166_p4), %s472_s23, 4294967040 }
  0x5c   : > { %2028 = dma.done.wait (%p54_p1), [#allocation7], 4096  }
  0x5d   : > { %2030 = vsyncadd (%p54_p1), [#allocation7], 4294963200 }
  0x5e   : > { %2032 = dma.done.wait (%p54_p1), [#allocation10], 4096  }
  0x5f   : > { %2034 = vsyncadd (%p54_p1), [#allocation10], 4294963200 }
  0x60   : > { %2036 = dma.done.wait (%p54_p1), [#allocation13], 2048  }
  0x61   : > { %2038 = vsyncadd (%p54_p1), [#allocation13], 4294965248  ;;  %v660_v0 = vld [vmem:[#allocation9 + $0x78] sm:$0xff]  ;;  %v659_v1 = vld [vmem:[#allocation9 + $0x70] sm:$0xff]  ;;  %vm732_vm0 = vcmask 130048   ;;  %s1622_s2 = sshll.u32 %s2157_s25, 4 }
  0x62   : > { %661 = vmatpush.msra.mxu2 %v660_v0  ;;  %v584_v2 = vld [vmem:[#allocation8 + $0xf8] sm:$0xff]  ;;  %v658_v3 = vld [vmem:[#allocation9 + $0x68] sm:$0xff]  ;;  %v583_v5 = vld [vmem:[#allocation8 + $0xf0] sm:$0xff]  ;;  %s541_s0 = scalar_lea.vmem [#allocation14], %s2290_s18  ;;  %s1440_s23 = scalar_lea.hbm %s2584_s12, %s1622_s2 }
  0x63   : > { %608 = vmatpush.msra.mxu1 %v584_v2  ;;  %v582_v4 = vld [vmem:[#allocation8 + $0xe8] sm:$0xff]  ;;  %v580_v6 = vld [vmem:[#allocation8 + $0xd8] sm:$0xff]  ;;  %v657_v7 = vld [vmem:[#allocation9 + $0x60] sm:$0xff]  ;;  %585 = vmatpush.msra.mxu0 %v583_v5  ;;  %s1441_s27 = sshll.u32 %s541_s0, 4  ;;  %s1443_s29 = sshll.u32 %s1440_s23, 4  ;;  %s1442_s27 = int_to_ptr.vmem [resolvable:$true] %s1441_s27  ;;  %s1444_s29 = int_to_ptr.hbm [resolvable:$true] %s1443_s29 }
  0x64   : > { %662 = vmatpush.msra.mxu2 %v659_v1  ;;  %v581_v8 = vld [vmem:[#allocation8 + $0xe0] sm:$0xff]  ;;  %v578_v9 = vld [vmem:[#allocation8 + $0xc8] sm:$0xff]  ;;  %v579_v10 = vld [vmem:[#allocation8 + $0xd0] sm:$0xff]  ;;  %s1429_s25 = scalar_lea.sflag [#allocation5], %s2287_s28  ;;  %s1989_s18 = sshra.s32 %s1444_s29, 4  ;;  %s1990_s18 = int_to_ptr.hbm [resolvable:$true] %s1989_s18 }
  0x65   : > { %609 = vmatpush.msra.mxu1 %v582_v4  ;;  %v656_v11 = vld [vmem:[#allocation9 + $0x58] sm:$0xff]  ;;  %586 = vmatpush.msra.mxu0 %v581_v8  ;;  %v577_v13 = vld [vmem:[#allocation8 + $0xc0] sm:$0xff]  ;;  %v655_v14 = vld [vmem:[#allocation9 + $0x50] sm:$0xff]  ;;  %s1991_s26 = scalar_lea.hbm %s1990_s18, 16  ;;  %s1995_s20 = scalar_lea.hbm %s2584_s12, 32 }
  0x66   : > { %663 = vmatpush.msra.mxu2 %v658_v3  ;;  %v576_v12 = vld [vmem:[#allocation8 + $0xb8] sm:$0xff]  ;;  %v574_v15 = vld [vmem:[#allocation8 + $0xa8] sm:$0xff]  ;;  %v575_v16 = vld [vmem:[#allocation8 + $0xb0] sm:$0xff]  ;;  %p1992_p1 = scmp.ne.s32.totalorder %s1990_s18, %s1991_s26  ;;  %p1996_p2 = scmp.lt.s32.totalorder %s1990_s18, %s2584_s12 }
  0x67   : > { %610 = vmatpush.msra.mxu1 %v580_v6  ;;  %587 = vmatpush.msra.mxu0 %v579_v10  ;;  %v654_v17 = vld [vmem:[#allocation9 + $0x48] sm:$0xff]  ;;  %v572_v18 = vld [vmem:[#allocation8 + $0x98] sm:$0xff]  ;;  %v573_v19 = vld [vmem:[#allocation8 + $0xa0] sm:$0xff]  ;;  %v730_v6 = vlaneseq  ;;  %p1997_p10 = scmp.lt.s32.totalorder %s1995_s20, %s1991_s26 }
  0x68   : > { %664 = vmatpush.msra.mxu2 %v657_v7  ;;  %v653_v20 = vld [vmem:[#allocation9 + $0x40] sm:$0xff]  ;;  %v570_v21 = vld [vmem:[#allocation8 + $0x88] sm:$0xff]  ;;  %v571_v22 = vld [vmem:[#allocation8 + $0x90] sm:$0xff]  ;;  %p1993_p4 = pnand %p1992_p1, %p2229_p3 }
  0x69   : > { %611 = vmatpush.msra.mxu1 %v578_v9  ;;  %588 = vmatpush.msra.mxu0 %v577_v13  ;;  %v652_v23 = vld [vmem:[#allocation9 + $0x38] sm:$0xff]  ;;  %v569_v25 = vld [vmem:[#allocation8 + $0x80] sm:$0xff]  ;;  %v651_v26 = vld [vmem:[#allocation9 + $0x30] sm:$0xff]  ;;  %v2338_v7 = vand.u32 127, %v730_v6  ;;  %p1998_p9 = por %p1997_p10, %p1996_p2 }
  0x6a   : > { %665 = vmatpush.msra.mxu2 %v656_v11  ;;  %v568_v24 = vld [vmem:[#allocation8 + $0x78] sm:$0xff]  ;;  %v650_v27 = vld [vmem:[#allocation9 + $0x28] sm:$0xff]  ;;  %v567_v29 = vld [vmem:[#allocation8 + $0x70] sm:$0xff]  ;;  %p1994_p8 = pneg %p1993_p4 }
  0x6b   : > { %612 = vmatpush.msra.mxu1 %v576_v12  ;;  %589 = vmatpush.msra.mxu0 %v575_v16  ;;  %v566_v28 = vld [vmem:[#allocation8 + $0x68] sm:$0xff]  ;;  %v564_v30 = vld [vmem:[#allocation8 + $0x58] sm:$0xff]  ;;  %v565_v31 = vld [vmem:[#allocation8 + $0x60] sm:$0xff] }
  0x6c   : > { %666 = vmatpush.msra.mxu2 %v655_v14  ;;  %v649_v32 = vld [vmem:[#allocation9 + $0x20] sm:$0xff]  ;;  %v562_v33 = vld [vmem:[#allocation8 + $0x48] sm:$0xff]  ;;  %v563_v34 = vld [vmem:[#allocation8 + $0x50] sm:$0xff]  ;;  %p1999_p11 = pnand %p1998_p9, %p1994_p8 }
  0x6d   : > { %613 = vmatpush.msra.mxu1 %v574_v15  ;;  %590 = vmatpush.msra.mxu0 %v573_v19  ;;  %v648_v35 = vld [vmem:[#allocation9 + $0x18] sm:$0xff]  ;;  %v561_v37 = vld [vmem:[#allocation8 + $0x40] sm:$0xff]  ;;  %v647_v38 = vld [vmem:[#allocation9 + $0x10] sm:$0xff] }
  0x6e   : > { %667 = vmatpush.msra.mxu2 %v654_v17  ;;  %v560_v36 = vld [vmem:[#allocation8 + $0x38] sm:$0xff]  ;;  %v558_v39 = vld [vmem:[#allocation8 + $0x28] sm:$0xff]  ;;  %v559_v40 = vld [vmem:[#allocation8 + $0x30] sm:$0xff] }
  0x6f   : > { %614 = vmatpush.msra.mxu1 %v572_v18  ;;  %591 = vmatpush.msra.mxu0 %v571_v22  ;;  %v646_v41 = vld [vmem:[#allocation9 + $0x8] sm:$0xff]  ;;  %v556_v42 = vld [vmem:[#allocation8 + $0x18] sm:$0xff]  ;;  %v557_v43 = vld [vmem:[#allocation8 + $0x20] sm:$0xff] }
  0x70   : > { %668 = vmatpush.msra.mxu2 %v653_v20  ;;  %v645_v44 = vld [vmem:[#allocation9] sm:$0xff]  ;;  %v554_v46 = vld [vmem:[#allocation8 + $0x8] sm:$0xff]  ;;  %v555_v47 = vld [vmem:[#allocation8 + $0x10] sm:$0xff] }
  0x71   : > { %615 = vmatpush.msra.mxu1 %v570_v21  ;;  %592 = vmatpush.msra.mxu0 %v569_v25  ;;  %v643_v45 = vld [vmem:[%s475_s14] sm:$0xff]  ;;  %v644_v50 = vld [vmem:[%s475_s14 + $0x8] sm:$0xff] }
  0x72   : > { %669 = vmatpush.msra.mxu2 %v652_v23  ;;  %v545_v48 = vld [vmem:[%s2294_s13] sm:$0xff]  ;;  %v546_v51 = vld [vmem:[%s2294_s13 + $0x8] sm:$0xff] }
  0x73   : > { %616 = vmatpush.msra.mxu1 %v568_v24  ;;  %593 = vmatpush.msra.mxu0 %v567_v29  ;;  %v553_v49 = vld [vmem:[#allocation8] sm:$0xff] }
  0x74   : > { %670 = vmatpush.msra.mxu2 %v651_v26  ;;  %v1725_v52 = vld [vmem:[%s2577_s5] ss:$0 sm:$0xff] }
  0x75   : > { %617 = vmatpush.msra.mxu1 %v566_v28  ;;  %594 = vmatpush.msra.mxu0 %v565_v31  ;;  %v1726_v57 = vld [vmem:[%s2576_s4] ss:$0 sm:$0xff] }
  0x76   : > { %671 = vmatpush.msra.mxu2 %v650_v27 }
  0x77   : > { %618 = vmatpush.msra.mxu1 %v564_v30  ;;  %595 = vmatpush.msra.mxu0 %v563_v34 }
  0x78   : > { %672 = vmatpush.msra.mxu2 %v649_v32  ;;  %v2067_v32 = vmov 0.0  }
  0x79   : > { %619 = vmatpush.msra.mxu1 %v562_v33  ;;  %596 = vmatpush.msra.mxu0 %v561_v37 }
  0x7a   : > { %673 = vmatpush.msra.mxu2 %v648_v35 }
  0x7b   : > { %620 = vmatpush.msra.mxu1 %v560_v36  ;;  %597 = vmatpush.msra.mxu0 %v559_v40 }
  0x7c   : > { %674 = vmatpush.msra.mxu2 %v647_v38 }
  0x7d   : > { %621 = vmatpush.msra.mxu1 %v558_v39  ;;  %598 = vmatpush.msra.mxu0 %v557_v43 }
  0x7e   : > { %675 = vmatpush.msra.mxu2 %v646_v41 }
  0x7f   : > { %622 = vmatpush.msra.mxu1 %v556_v42  ;;  %599 = vmatpush.msra.mxu0 %v555_v47 }
  0x80   : > { %676 = vmatpush.msra.mxu2 %v645_v44 }
  0x81   : > { %677 = vmatmul.f32.vlgmr.msra.gmra.mxu2 %v643_v45  ;;  %623 = vmatpush.msra.mxu1 %v554_v46 }
  0x82   : > { %624 = vmatmul.f32.vlgmr.msra.gmra.mxu1 %v545_v48  ;;  %600 = vmatpush.msra.mxu0 %v553_v49 }
  0x83   : > { %601 = vmatmul.f32.vlgmr.msra.gmra.mxu0 %v545_v48 }
  0x89   : > { %680 = vmatmul.f32.gmra.mxu2 %v644_v50 }
  0x8a   : > { %627 = vmatmul.f32.gmra.mxu1 %v546_v51 }
  0x8b   : > { %604 = vmatmul.f32.gmra.mxu0 %v546_v51 }
  0xff   : > { %v625_v53 = vpop.f32.mrf.mxu1 }
 0x100   : > { %v602_v56 = vpop.f32.mrf.mxu0  ;;  %v639_v58 = vadd.f32 %v1725_v52, %v625_v53 }
 0x101   : > { %v2330_v59 = vadd.f32 %v1726_v57, %v602_v56 }
 0x104   : > { %v678_v54 = vpop.f32.mrf.mxu2 }
 0x105   : > { %v679_v55 = vadd.f32 %v1725_v52, %v678_v54 }
 0x107   : > { %704 = vmatpush.xpose.msra.mxu3 %v679_v55  ;;  %v628_v61 = vpop.f32.mrf.mxu1 }
 0x108   : > { %v640_v63 = vadd.f32 %v1725_v52, %v628_v61  ;;  %v605_v0 = vpop.f32.mrf.mxu0 }
 0x109   : > { %v2333_v1 = vadd.f32 %v1726_v57, %v605_v0 }
 0x10b   : > { %705 = vmatpush.xpose.msra.mxu3 %v639_v58 }
 0x10c   : > { %v681_v60 = vpop.f32.mrf.mxu2 }
 0x10d   : > { %v682_v62 = vadd.f32 %v1725_v52, %v681_v60 }
 0x10e   : > { %706 = vmatmul.f32.vlgmr.msra.gmra.mxu3 %v2330_v59 }
 0x10f   : > { %724 = vmatpush.xpose.msrb.mxu3 %v682_v62  ;;  %990 = vmatpush.msrb.mxu0 %v682_v62 }
 0x110   : > { %1623 = vmatpush.msrb.mxu2 %v682_v62 }
 0x111   : > { %991 = vmatpush.msrb.mxu0 %v640_v63 }
 0x112   : > { %1624 = vmatpush.msrb.mxu2 %v640_v63 }
 0x113   : > { %725 = vmatpush.xpose.msrb.mxu3 %v640_v63 }
 0x116   : > { %726 = vmatmul.f32.vlgmr.msrb.gmra.mxu3 %v2333_v1 }
 0x117   : > { %949 = vmatpush.msra.mxu3 %v679_v55 }
 0x119   : > { %950 = vmatpush.msra.mxu3 %v639_v58 }
 0x191   : > { %v707_v2 = vpop.f32.mrf.mxu3 }
 0x192   : > { %v733_v3 = vsel %vm732_vm0, %v707_v2, -inf }
 0x193   : > { %734 = vmax.xlane.f32.xlu0 %v733_v3 }
 0x199   : > { %v727_v4 = vpop.f32.mrf.mxu3 }
 0x19a   : > { %v736_v5 = vsel %vm732_vm0, %v727_v4, -inf }
 0x19b   : > { %737 = vmax.xlane.f32.xlu0 %v736_v5 }
 0x206   : > { %v2340_v8 = vpop.xlane.xlu0 %734 }
 0x207   : > { %vm739_vm1 = vcmp.eq.f32.partialorder %v707_v2, %v2340_v8 }
 0x208   : > { %v741_v9 = vsel %vm739_vm1, %v2338_v7, 16 }
 0x209   : > { %v743_v10 = vsel %vm732_vm0, %v741_v9, 2147483647 }
 0x20a   : > { %v745_v11 = vshra.s32 %v743_v10, 16  ;;  %v744_v18 = vand.u32 65535, %v743_v10 }
 0x20c   : > { %v747_v12 = vcvt.s32.f32 %v745_v11  ;;  %v746_v20 = vcvt.s32.f32 %v744_v18 }
 0x20e   : > { %748 = vmin.xlane.f32.xlu1 %v747_v12  ;;  %v2345_v13 = vpop.xlane.xlu0 %737 }
 0x20f   : > { %vm740_vm2 = vcmp.eq.f32.partialorder %v727_v4, %v2345_v13 }
 0x210   : > { %v742_v14 = vsel %vm740_vm2, %v2338_v7, 16 }
 0x211   : > { %v758_v15 = vsel %vm732_vm0, %v742_v14, 2147483647 }
 0x212   : > { %v760_v16 = vshra.s32 %v758_v15, 16  ;;  %v759_v22 = vand.u32 65535, %v758_v15 }
 0x214   : > { %v762_v17 = vcvt.s32.f32 %v760_v16  ;;  %v761_v24 = vcvt.s32.f32 %v759_v22 }
 0x216   : > { %763 = vmin.xlane.f32.xlu1 %v762_v17 }
 0x281   : > { %v749_v19 = vpop.xlane.xlu1 %748 }
 0x282   : > { %vm750_vm3 = vcmp.eq.f32.partialorder %v747_v12, %v749_v19  ;;  %v755_v26 = vcvt.f32.s32 %v749_v19 }
 0x283   : > { %v751_v21 = vsel %vm750_vm3, %v746_v20, inf }
 0x284   : > { %752 = vmin.xlane.f32.xlu2 %v751_v21  ;;  %v756_v28 = vshll.u32 %v755_v26, 16 }
 0x289   : > { %v764_v23 = vpop.xlane.xlu1 %763 }
 0x28a   : > { %vm765_vm4 = vcmp.eq.f32.partialorder %v762_v17, %v764_v23  ;;  %v770_v31 = vcvt.f32.s32 %v764_v23 }
 0x28b   : > { %v766_v25 = vsel %vm765_vm4, %v761_v24, inf }
 0x28c   : > { %767 = vmin.xlane.f32.xlu2 %v766_v25  ;;  %v771_v37 = vshll.u32 %v770_v31, 16 }
 0x2f7   : > { %v753_v27 = vpop.xlane.xlu2 %752 }
 0x2f8   : > { %v754_v29 = vcvt.f32.s32 %v753_v27 }
 0x2fa   : > { %v757_v30 = vadd.s32 %v756_v28, %v754_v29 }
 0x2fc   : > { %vm773_vm5 = vcmp.eq.s32.totalorder %v2338_v7, %v757_v30 }
 0x2fd   : > { %v1599_v33 = vsel %vm773_vm5, 1.0, %v2067_v32  ;;  %v779_v34 = vsel %vm773_vm5, -inf, %v707_v2 }
 0x2fe   : > { %1607 = vmatmul.msk.f32.vlgmr.msra.gmra.mxu3 %vm732_vm0, %v1599_v33  ;;  %v781_v35 = vsel %vm732_vm0, %v779_v34, -inf }
 0x2ff   : > { %782 = vmax.xlane.f32.xlu0 %v781_v35  ;;  %v768_v36 = vpop.xlane.xlu2 %767 }
 0x300   : > { %v769_v38 = vcvt.f32.s32 %v768_v36 }
 0x302   : > { %v772_v39 = vadd.s32 %v771_v37, %v769_v38 }
 0x304   : > { %vm774_vm6 = vcmp.eq.s32.totalorder %v2338_v7, %v772_v39 }
 0x305   : > { %v1600_v40 = vsel %vm774_vm6, 1.0, %v2067_v32  ;;  %v780_v41 = vsel %vm774_vm6, -inf, %v727_v4 }
 0x306   : > { %1611 = vmatmul.msk.f32.vlgmr.msrb.gmra.mxu0 %vm732_vm0, %v1600_v40  ;;  %v784_v42 = vsel %vm732_vm0, %v780_v41, -inf }
 0x307   : > { %785 = vmax.xlane.f32.xlu1 %v784_v42 }
 0x372   : > { %v2358_v43 = vpop.xlane.xlu0 %782 }
 0x373   : > { %vm787_vm7 = vcmp.eq.f32.partialorder %v779_v34, %v2358_v43 }
 0x374   : > { %v789_v44 = vsel %vm787_vm7, %v2338_v7, 16 }
 0x375   : > { %v791_v45 = vsel %vm732_vm0, %v789_v44, 2147483647 }
 0x376   : > { %v793_v46 = vshra.s32 %v791_v45, 16  ;;  %v792_v53 = vand.u32 65535, %v791_v45 }
 0x378   : > { %v795_v47 = vcvt.s32.f32 %v793_v46  ;;  %v794_v55 = vcvt.s32.f32 %v792_v53 }
 0x37a   : > { %v2363_v48 = vpop.xlane.xlu1 %785  ;;  %796 = vmin.xlane.f32.xlu2 %v795_v47 }
 0x37b   : > { %vm788_vm8 = vcmp.eq.f32.partialorder %v780_v41, %v2363_v48 }
 0x37c   : > { %v790_v49 = vsel %vm788_vm8, %v2338_v7, 16 }
 0x37d   : > { %v806_v50 = vsel %vm732_vm0, %v790_v49, 2147483647 }
 0x37e   : > { %v808_v51 = vshra.s32 %v806_v50, 16  ;;  %v807_v57 = vand.u32 65535, %v806_v50 }
 0x380   : > { %v810_v52 = vcvt.s32.f32 %v808_v51  ;;  %v809_v60 = vcvt.s32.f32 %v807_v57 }
 0x382   : > { %811 = vmin.xlane.f32.xlu0 %v810_v52 }
 0x3ed   : > { %v797_v54 = vpop.xlane.xlu2 %796 }
 0x3ee   : > { %vm798_vm9 = vcmp.eq.f32.partialorder %v795_v47, %v797_v54  ;;  %v803_v62 = vcvt.f32.s32 %v797_v54 }
 0x3ef   : > { %v799_v56 = vsel %vm798_vm9, %v794_v55, inf  ;;  %v1013_v55 = vsub.f32 %v2358_v43, %v2340_v8 }
 0x3f0   : > { %800 = vmin.xlane.f32.xlu1 %v799_v56  ;;  %v804_v0 = vshll.u32 %v803_v62, 16  ;;  %v1005_v56 = vsub.f32 %v2340_v8, %v2340_v8 }
 0x3f5   : > { %v812_v58 = vpop.xlane.xlu0 %811 }
 0x3f6   : > { %vm813_vm10 = vcmp.eq.f32.partialorder %v810_v52, %v812_v58  ;;  %v818_v4 = vcvt.f32.s32 %v812_v58  ;;  %v1015_v58 = vmul.f32 0.088388346, %v1013_v55 }
 0x3f7   : > { %v814_v61 = vsel %vm813_vm10, %v809_v60, inf  ;;  %v1007_v60 = vmul.f32 0.088388346, %v1005_v56 }
 0x3f8   : > { %815 = vmin.xlane.f32.xlu2 %v814_v61  ;;  %v819_v11 = vshll.u32 %v818_v4, 16  ;;  %v1017_v62 = vmul.f32 1.442695, %v1015_v58 }
 0x3fa   : > { %1731 = vpow2.f32 %v1017_v62 }
 0x463   : > { %v801_v63 = vpop.xlane.xlu1 %800 }
 0x464   : > { %v802_v2 = vcvt.f32.s32 %v801_v63  ;;  %v1014_v63 = vsub.f32 %v2363_v48, %v2345_v13 }
 0x466   : > { %v805_v3 = vadd.s32 %v804_v0, %v802_v2  ;;  %v1009_v0 = vmul.f32 1.442695, %v1007_v60  ;;  %v1006_v2 = vsub.f32 %v2345_v13, %v2345_v13 }
 0x468   : > { %vm821_vm11 = vcmp.eq.s32.totalorder %v2338_v7, %v805_v3  ;;  %1733 = vpow2.f32 %v1009_v0 }
 0x469   : > { %v1601_v5 = vsel %vm821_vm11, 1.0, %v2067_v32  ;;  %v827_v6 = vsel %vm821_vm11, -inf, %v779_v34 }
 0x46a   : > { %1608 = vmatmul.msk.f32.gmra.mxu3 %vm732_vm0, %v1601_v5  ;;  %v829_v9 = vsel %vm732_vm0, %v827_v6, -inf  ;;  %v1016_v5 = vmul.f32 0.088388346, %v1014_v63 }
 0x46b   : > { %830 = vmax.xlane.f32.xlu0 %v829_v9  ;;  %v816_v10 = vpop.xlane.xlu2 %815  ;;  %v1008_v9 = vmul.f32 0.088388346, %v1006_v2 }
 0x46c   : > { %v817_v12 = vcvt.f32.s32 %v816_v10 }
 0x46e   : > { %v820_v14 = vadd.s32 %v819_v11, %v817_v12 }
 0x470   : > { %vm822_vm12 = vcmp.eq.s32.totalorder %v2338_v7, %v820_v14 }
 0x471   : > { %v1602_v15 = vsel %vm822_vm12, 1.0, %v2067_v32  ;;  %v828_v16 = vsel %vm822_vm12, -inf, %v780_v41 }
 0x472   : > { %1612 = vmatmul.msk.f32.vlgmr.msrb.gmra.mxu2 %vm732_vm0, %v1602_v15  ;;  %v832_v17 = vsel %vm732_vm0, %v828_v16, -inf  ;;  %v1019_v15 = vmul.f32 1.442695, %v1016_v5 }
 0x473   : > { %833 = vmax.xlane.f32.xlu1 %v832_v17  ;;  %v1011_v17 = vmul.f32 1.442695, %v1008_v9 }
 0x4de   : > { %v831_v18 = vpop.xlane.xlu0 %830 }
 0x4df   : > { %vm835_vm13 = vcmp.eq.f32.partialorder %v827_v6, %v831_v18  ;;  %v1021_v57 = vsub.f32 %v831_v18, %v2340_v8 }
 0x4e0   : > { %v837_v19 = vsel %vm835_vm13, %v2338_v7, 16 }
 0x4e1   : > { %v839_v20 = vsel %vm732_vm0, %v837_v19, 2147483647  ;;  %v1023_v61 = vmul.f32 0.088388346, %v1021_v57  ;;  %v1732_v19 = vpop.eup %1731 }
 0x4e2   : > { %v841_v21 = vshra.s32 %v839_v20, 16  ;;  %v840_v28 = vand.u32 65535, %v839_v20 }
 0x4e3   : > { %v1025_v3 = vmul.f32 1.442695, %v1023_v61 }
 0x4e4   : > { %v843_v22 = vcvt.s32.f32 %v841_v21  ;;  %v842_v30 = vcvt.s32.f32 %v840_v28 }
 0x4e5   : > { %1735 = vpow2.f32 %v1025_v3 }
 0x4e6   : > { %v2378_v23 = vpop.xlane.xlu1 %833  ;;  %844 = vmin.xlane.f32.xlu2 %v843_v22 }
 0x4e7   : > { %vm836_vm14 = vcmp.eq.f32.partialorder %v828_v16, %v2378_v23  ;;  %v1022_v43 = vsub.f32 %v2378_v23, %v2345_v13 }
 0x4e8   : > { %v838_v24 = vsel %vm836_vm14, %v2338_v7, 16 }
 0x4e9   : > { %v854_v25 = vsel %vm732_vm0, %v838_v24, 2147483647  ;;  %v1024_v48 = vmul.f32 0.088388346, %v1022_v43 }
 0x4ea   : > { %v856_v26 = vshra.s32 %v854_v25, 16  ;;  %v855_v33 = vand.u32 65535, %v854_v25 }
 0x4eb   : > { %v1027_v20 = vmul.f32 1.442695, %v1024_v48 }
 0x4ec   : > { %v858_v27 = vcvt.s32.f32 %v856_v26  ;;  %v857_v35 = vcvt.s32.f32 %v855_v33 }
 0x4ee   : > { %859 = vmin.xlane.f32.xlu0 %v858_v27 }
 0x559   : > { %v845_v29 = vpop.xlane.xlu2 %844 }
 0x55a   : > { %vm846_vm15 = vcmp.eq.f32.partialorder %v843_v22, %v845_v29  ;;  %v851_v37 = vcvt.f32.s32 %v845_v29 }
 0x55b   : > { %v847_v31 = vsel %vm846_vm15, %v842_v30, inf }
 0x55c   : > { %848 = vmin.xlane.f32.xlu1 %v847_v31  ;;  %v852_v39 = vshll.u32 %v851_v37, 16 }
 0x561   : > { %v860_v34 = vpop.xlane.xlu0 %859 }
 0x562   : > { %vm861_vm1 = vcmp.eq.f32.partialorder %v858_v27, %v860_v34  ;;  %v866_v42 = vcvt.f32.s32 %v860_v34 }
 0x563   : > { %v862_v36 = vsel %vm861_vm1, %v857_v35, inf }
 0x564   : > { %863 = vmin.xlane.f32.xlu2 %v862_v36  ;;  %v867_v49 = vshll.u32 %v866_v42, 16  ;;  %v2432_v42 = vpop.f32.mrf.mxu3 }
 0x56c   : > { %v2437_v0 = vpop.f32.mrf.mxu3 }
 0x5cf   : > { %v849_v38 = vpop.xlane.xlu1 %848 }
 0x5d0   : > { %v850_v40 = vcvt.f32.s32 %v849_v38 }
 0x5d2   : > { %v853_v41 = vadd.s32 %v852_v39, %v850_v40 }
 0x5d4   : > { %vm869_vm2 = vcmp.eq.s32.totalorder %v2338_v7, %v853_v41 }
 0x5d5   : > { %v1603_v44 = vsel %vm869_vm2, 1.0, %v2067_v32  ;;  %v875_v45 = vsel %vm869_vm2, -inf, %v827_v6 }
 0x5d6   : > { %1609 = vmatmul.msk.f32.gmra.mxu3 %vm732_vm0, %v1603_v44  ;;  %v877_v46 = vsel %vm732_vm0, %v875_v45, -inf }
 0x5d7   : > { %878 = vmax.xlane.f32.xlu0 %v877_v46  ;;  %v864_v47 = vpop.xlane.xlu2 %863 }
 0x5d8   : > { %v865_v50 = vcvt.f32.s32 %v864_v47 }
 0x5da   : > { %v868_v51 = vadd.s32 %v867_v49, %v865_v50 }
 0x5dc   : > { %vm870_vm3 = vcmp.eq.s32.totalorder %v2338_v7, %v868_v51 }
 0x5dd   : > { %v1604_v52 = vsel %vm870_vm3, 1.0, %v2067_v32  ;;  %v876_v53 = vsel %vm870_vm3, -inf, %v828_v16 }
 0x5de   : > { %1613 = vmatmul.msk.f32.gmra.mxu2 %vm732_vm0, %v1604_v52  ;;  %v880_v54 = vsel %vm732_vm0, %v876_v53, -inf }
 0x5df   : > { %881 = vmax.xlane.f32.xlu1 %v880_v54 }
 0x64a   : > { %v879_v4 = vpop.xlane.xlu0 %878 }
 0x64b   : > { %vm883_vm4 = vcmp.eq.f32.partialorder %v875_v45, %v879_v4  ;;  %v1029_v6 = vsub.f32 %v879_v4, %v2340_v8  ;;  %v2410_v8 = vpop.eup %1733 }
 0x64c   : > { %v885_v10 = vsel %vm883_vm4, %v2338_v7, 16  ;;  %v2413_v22 = vpop.eup %1735  ;;  %v1037_v24 = vadd.f32 %v2410_v8, %v1732_v19 }
 0x64d   : > { %v1031_v11 = vmul.f32 0.088388346, %v1029_v6  ;;  %v2405_v12 = vsel %vm732_vm0, %v885_v10, 2147483647 }
 0x64e   : > { %v889_v14 = vshra.s32 %v2405_v12, 16  ;;  %v1039_v28 = vadd.f32 %v2413_v22, %v1037_v24  ;;  %v2453_v24 = vpop.f32.mrf.mxu2 }
 0x64f   : > { %v1033_v16 = vmul.f32 1.442695, %v1031_v11 }
 0x650   : > { %v2408_v18 = vcvt.s32.f32 %v889_v14 }
 0x651   : > { %1737 = vpow2.f32 %v1033_v16 }
 0x652   : > { %v882_v21 = vpop.xlane.xlu1 %881  ;;  %892 = vmin.xlane.f32.xlu2 %v2408_v18  ;;  %1739 = vpow2.f32 %v1019_v15  ;;  %v2448_v15 = vpop.f32.mrf.mxu0 }
 0x653   : > { %vm884_vm5 = vcmp.eq.f32.partialorder %v876_v53, %v882_v21  ;;  %v1030_v23 = vsub.f32 %v882_v21, %v2345_v13  ;;  %1741 = vpow2.f32 %v1011_v17 }
 0x654   : > { %v886_v25 = vsel %vm884_vm5, %v2338_v7, 16  ;;  %1743 = vpow2.f32 %v1027_v20 }
 0x655   : > { %v1032_v26 = vmul.f32 0.088388346, %v1030_v23  ;;  %v2419_v27 = vsel %vm732_vm0, %v886_v25, 2147483647 }
 0x656   : > { %v904_v29 = vshra.s32 %v2419_v27, 16 }
 0x657   : > { %v1738_v30 = vpop.eup %1737  ;;  %v1035_v31 = vmul.f32 1.442695, %v1032_v26 }
 0x658   : > { %v1041_v33 = vadd.f32 %v1738_v30, %v1039_v28  ;;  %v2423_v34 = vcvt.s32.f32 %v904_v29  ;;  %v2425_v13 = vpop.eup %1739 }
 0x659   : > { %1745 = vpow2.f32 %v1035_v31  ;;  %v1742_v35 = vpop.eup %1741  ;;  %v888_v31 = vand.u32 65535, %v2405_v12  ;;  %v2467_v12 = vpop.f32.mrf.mxu3 }
 0x65a   : > { %1747 = vrcp.f32 %v1041_v33  ;;  %907 = vmin.xlane.f32.xlu0 %v2423_v34  ;;  %v2428_v36 = vpop.eup %1743  ;;  %v1038_v37 = vadd.f32 %v1742_v35, %v2425_v13  ;;  %v1054_v46 = vand.u32 2147483648, %v1041_v33  ;;  %v1052_v49 = vand.u32 2147483647, %v1041_v33 }
 0x65b   : > { %vm1048_vm7 = vweird.f32 %v1041_v33 }
 0x65c   : > { %v1040_v38 = vadd.f32 %v2428_v36, %v1038_v37  ;;  %v1055_v52 = vor.u32 1.1754944e-38, %v1054_v46  ;;  %vm1053_vm9 = vcmp.eq.f32.partialorder %v1052_v49, 8.507059e+37 }
 0x65f   : > { %v1746_v39 = vpop.eup %1745 }
 0x660   : > { %v1748_v40 = vpop.eup %1747  ;;  %v1042_v41 = vadd.f32 %v1746_v39, %v1040_v38  ;;  %v890_v38 = vcvt.s32.f32 %v888_v31 }
 0x661   : > { %v1044_v44 = vmul.f32 %v1748_v40, %v1041_v33  ;;  %vm1049_vm6 = vweird.f32 %v1748_v40  ;;  %v2455_v25 = vpop.f32.mrf.mxu2 }
 0x662   : > { %1749 = vrcp.f32 %v1042_v41  ;;  %1093 = vadd.xlane.f32.xlu0 %v2432_v42  ;;  %vm1050_vm8 = vmor %vm1048_vm7, %vm1049_vm6  ;;  %v1069_v58 = vand.u32 2147483648, %v1042_v41  ;;  %v1067_v62 = vand.u32 2147483647, %v1042_v41  ;;  %vm1063_vm11 = vweird.f32 %v1042_v41 }
 0x663   : > { %v1045_v45 = vsub.f32 1.0, %v1044_v44 }
 0x664   : > { %v1070_v4 = vor.u32 1.1754944e-38, %v1069_v58  ;;  %vm1068_vm13 = vcmp.eq.f32.partialorder %v1067_v62, 8.507059e+37 }
 0x665   : > { %v1046_v47 = vmul.f32 %v1748_v40, %v1045_v45 }
 0x667   : > { %v1047_v50 = vadd.f32 %v1748_v40, %v1046_v47 }
 0x668   : > { %v1750_v51 = vpop.eup %1749 }
 0x669   : > { %v1051_v53 = vsel %vm1050_vm8, %v1748_v40, %v1047_v50  ;;  %v1059_v54 = vmul.f32 %v1750_v51, %v1042_v41  ;;  %vm1064_vm10 = vweird.f32 %v1750_v51 }
 0x66a   : > { %v1056_v55 = vsel %vm1053_vm9, %v1055_v52, %v1051_v53  ;;  %vm1065_vm12 = vmor %vm1063_vm11, %vm1064_vm10 }
 0x66b   : > { %v1060_v56 = vsub.f32 1.0, %v1059_v54  ;;  %v1075_v57 = vmul.f32 %v1732_v19, %v1056_v55  ;;  %v2435_v60 = vmul.f32 %v1738_v30, %v1056_v55  ;;  %v1073_v26 = vmul.f32 %v2410_v8, %v1056_v55 }
 0x66c   : > { %v903_v8 = vand.u32 65535, %v2419_v27 }
 0x66d   : > { %v1061_v61 = vmul.f32 %v1750_v51, %v1060_v56  ;;  %v1103_v63 = vsub.f32 1.0, %v1075_v57  ;;  %v1107_v43 = vmul.f32 %v1075_v57, %v2437_v0  ;;  %v1081_v28 = vsub.f32 1.0, %v1073_v26 }
 0x66e   : > { %v1085_v30 = vmul.f32 %v1073_v26, %v2432_v42  ;;  %v905_v46 = vcvt.s32.f32 %v903_v8 }
 0x66f   : > { %v1062_v2 = vadd.f32 %v1750_v51, %v1061_v61  ;;  %v1105_v3 = vmul.f32 %v1103_v63, %v2330_v59  ;;  %v1083_v29 = vmul.f32 %v1081_v28, %v2330_v59 }
 0x671   : > { %v1066_v5 = vsel %vm1065_vm12, %v1750_v51, %v1062_v2  ;;  %v1109_v6 = vadd.f32 %v1107_v43, %v1105_v3  ;;  %v1087_v33 = vadd.f32 %v1085_v30, %v1083_v29 }
 0x672   : > { %v2441_v9 = vsel %vm1068_vm13, %v1070_v4, %v1066_v5 }
 0x673   : > { %v1111_v10 = vadd.f32 %v1109_v6, %v2330_v59  ;;  %v1074_v48 = vmul.f32 %v1742_v35, %v2441_v9  ;;  %v2446_v11 = vmul.f32 %v1746_v39, %v2441_v9  ;;  %v1077_v35 = vmul.f32 %v2413_v22, %v1056_v55 }
 0x674   : > { %v1089_v39 = vadd.f32 %v1087_v33, %v2330_v59  ;;  %v1076_v27 = vmul.f32 %v2425_v13, %v2441_v9 }
 0x675   : > { %1751 = vtanh.f32 %v1111_v10  ;;  %v1082_v14 = vsub.f32 1.0, %v1074_v48  ;;  %v1086_v17 = vmul.f32 %v1074_v48, %v2448_v15  ;;  %v1125_v41 = vsub.f32 1.0, %v1077_v35 }
 0x676   : > { %v1129_v47 = vmul.f32 %v1077_v35, %v2467_v12  ;;  %v1104_v51 = vsub.f32 1.0, %v1076_v27  ;;  %v1108_v53 = vmul.f32 %v1076_v27, %v2453_v24  ;;  %v1078_v10 = vmul.f32 %v2428_v36, %v2441_v9 }
 0x677   : > { %v1084_v16 = vmul.f32 %v1082_v14, %v2333_v1  ;;  %v1127_v44 = vmul.f32 %v1125_v41, %v2330_v59  ;;  %v1147_v48 = vsub.f32 1.0, %v2435_v60 }
 0x678   : > { %v1126_v14 = vsub.f32 1.0, %v1078_v10 }
 0x679   : > { %v1088_v19 = vadd.f32 %v1086_v17, %v1084_v16  ;;  %v1149_v17 = vmul.f32 %v1147_v48, %v2330_v59 }
 0x67b   : > { %v1752_v20 = vpop.eup %1751  ;;  %v1090_v21 = vadd.f32 %v1088_v19, %v2333_v1 }
 0x67c   : > { %1119 = vadd.xlane.f32.xlu0 %v1752_v20  ;;  %v1130_v20 = vmul.f32 %v1078_v10, %v2455_v25 }
 0x67d   : > { %1753 = vtanh.f32 %v1090_v21  ;;  %v1148_v21 = vsub.f32 1.0, %v2446_v11 }
 0x67e   : > { %1755 = vtanh.f32 %v1089_v39 }
 0x67f   : > { %v1150_v26 = vmul.f32 %v1148_v21, %v2333_v1 }
 0x683   : > { %v1754_v23 = vpop.eup %1753 }
 0x684   : > { %1099 = vadd.xlane.f32.xlu0 %v1754_v23  ;;  %v1756_v22 = vpop.eup %1755 }
 0x68c   : > { %1139 = vadd.xlane.f32.xlu0 %v2455_v25 }
 0x6c5   : > { %v893_v37 = vpop.xlane.xlu2 %892 }
 0x6c6   : > { %vm894_vm14 = vcmp.eq.f32.partialorder %v2408_v18, %v893_v37  ;;  %v1131_v18 = vadd.f32 %v1129_v47, %v1127_v44  ;;  %v899_v56 = vcvt.f32.s32 %v893_v37  ;;  %v1334_v47 = vld [vmem:[#allocation12 + $0x78] sm:$0xff] }
 0x6c7   : > { %v895_v40 = vsel %vm894_vm14, %v890_v38, inf  ;;  %1338 = vmatpush.msrb.mxu1 %v1334_v47  ;;  %v1323_v47 = vld [vmem:[#allocation12 + $0x20] sm:$0xff] }
 0x6c8   : > { %896 = vmin.xlane.f32.xlu1 %v895_v40  ;;  %v1133_v50 = vadd.f32 %v1131_v18, %v2330_v59  ;;  %v900_v58 = vshll.u32 %v899_v56, 16  ;;  %v1285_v18 = vld [vmem:[#allocation11 + $0x70] sm:$0xff]  ;;  %v1331_v56 = vld [vmem:[#allocation12 + $0x60] sm:$0xff] }
 0x6ca   : > { %1757 = vtanh.f32 %v1133_v50  ;;  %v1333_v50 = vld [vmem:[#allocation12 + $0x70] sm:$0xff] }
 0x6cb   : > { %1339 = vmatpush.msrb.mxu1 %v1333_v50  ;;  %v1274_v50 = vld [vmem:[#allocation11 + $0x18] sm:$0xff] }
 0x6cd   : > { %v908_v45 = vpop.xlane.xlu0 %907 }
 0x6ce   : > { %vm909_vm15 = vcmp.eq.f32.partialorder %v2423_v34, %v908_v45  ;;  %v1106_v34 = vmul.f32 %v1104_v51, %v2333_v1  ;;  %v914_v63 = vcvt.f32.s32 %v908_v45 }
 0x6cf   : > { %v910_v49 = vsel %vm909_vm15, %v905_v46, inf }
 0x6d0   : > { %1097 = vadd.xlane.f32.xlu1 %v1756_v22  ;;  %911 = vmin.xlane.f32.xlu2 %v910_v49  ;;  %v1758_v52 = vpop.eup %1757  ;;  %v1110_v54 = vadd.f32 %v1108_v53, %v1106_v34  ;;  %v915_v43 = vshll.u32 %v914_v63, 16  ;;  %v1286_v22 = vld [vmem:[#allocation11 + $0x78] sm:$0xff]  ;;  %v1284_v34 = vld [vmem:[#allocation11 + $0x68] sm:$0xff] }
 0x6d1   : > { %1290 = vmatpush.msrb.mxu3 %v1286_v22  ;;  %v1330_v63 = vld [vmem:[#allocation12 + $0x58] sm:$0xff] }
 0x6d2   : > { %v1112_v55 = vadd.f32 %v1110_v54, %v2333_v1 }
 0x6d3   : > { %1291 = vmatpush.msrb.mxu3 %v1285_v18 }
 0x6d4   : > { %1759 = vtanh.f32 %v1112_v55 }
 0x6d5   : > { %v1094_v37 = vpop.xlane.xlu0 %1093  ;;  %1292 = vmatpush.msrb.mxu3 %v1284_v34 }
 0x6d8   : > { %1137 = vadd.xlane.f32.xlu1 %v2467_v12  ;;  %1115 = vadd.xlane.f32.xlu2 %v2437_v0 }
 0x6da   : > { %v1760_v13 = vpop.eup %1759 }
 0x6e0   : > { %1117 = vadd.xlane.f32.xlu1 %v2453_v24  ;;  %1141 = vadd.xlane.f32.xlu2 %v1758_v52  ;;  %v1332_v52 = vld [vmem:[#allocation12 + $0x68] sm:$0xff] }
 0x6e1   : > { %1340 = vmatpush.msrb.mxu1 %v1332_v52  ;;  %v1322_v52 = vld [vmem:[#allocation12 + $0x18] sm:$0xff] }
 0x6e3   : > { %1341 = vmatpush.msrb.mxu1 %v1331_v56  ;;  %v1321_v56 = vld [vmem:[#allocation12 + $0x10] sm:$0xff] }
 0x6e5   : > { %1342 = vmatpush.msrb.mxu1 %v1330_v63  ;;  %v1320_v63 = vld [vmem:[#allocation12 + $0x8] sm:$0xff] }
 0x6e8   : > { %1095 = vadd.xlane.f32.xlu2 %v2448_v15 }
 0x6ef   : > { %v1120_v38 = vpop.xlane.xlu0 %1119 }
 0x6f0   : > { %1121 = vadd.xlane.f32.xlu2 %v1760_v13  ;;  %v1283_v13 = vld [vmem:[#allocation11 + $0x60] sm:$0xff] }
 0x6f1   : > { %1293 = vmatpush.msrb.mxu3 %v1283_v13 }
 0x73b   : > { %v897_v57 = vpop.xlane.xlu1 %896 }
 0x73c   : > { %v898_v61 = vcvt.f32.s32 %v897_v57 }
 0x73e   : > { %v901_v62 = vadd.s32 %v900_v58, %v898_v61 }
 0x740   : > { %vm917_vm1 = vcmp.eq.s32.totalorder %v2338_v7, %v901_v62  ;;  %v1282_v62 = vld [vmem:[#allocation11 + $0x58] sm:$0xff] }
 0x741   : > { %v1605_v2 = vsel %vm917_vm1, 1.0, %v2067_v32  ;;  %1294 = vmatpush.msrb.mxu3 %v1282_v62 }
 0x742   : > { %1610 = vmatmul.msk.f32.gmra.mxu3 %vm732_vm0, %v1605_v2 }
 0x743   : > { %v912_v3 = vpop.xlane.xlu2 %911  ;;  %v1098_v39 = vpop.xlane.xlu1 %1097 }
 0x744   : > { %v913_v4 = vcvt.f32.s32 %v912_v3  ;;  %v1101_v27 = vmul.f32 %v1098_v39, %v1094_v37  ;;  %v1281_v3 = vld [vmem:[#allocation11 + $0x50] sm:$0xff] }
 0x745   : > { %1295 = vmatpush.msrb.mxu3 %v1281_v3  ;;  %v1325_v39 = vld [vmem:[#allocation12 + $0x30] sm:$0xff]  ;;  %v1319_v3 = vld [vmem:[#allocation12] sm:$0xff] }
 0x746   : > { %v916_v5 = vadd.s32 %v915_v43, %v913_v4  ;;  %v1329_v43 = vld [vmem:[#allocation12 + $0x50] sm:$0xff] }
 0x747   : > { %1343 = vmatpush.msrb.mxu1 %v1329_v43 }
 0x748   : > { %vm918_vm2 = vcmp.eq.s32.totalorder %v2338_v7, %v916_v5  ;;  %v1128_v7 = vmul.f32 %v1126_v14, %v2333_v1  ;;  %v1280_v14 = vld [vmem:[#allocation11 + $0x48] sm:$0xff] }
 0x749   : > { %v1606_v6 = vsel %vm918_vm2, 1.0, %v2067_v32  ;;  %1296 = vmatpush.msrb.mxu3 %v1280_v14 }
 0x74a   : > { %1614 = vmatmul.msk.f32.gmra.mxu2 %vm732_vm0, %v1606_v6  ;;  %v1132_v9 = vadd.f32 %v1130_v20, %v1128_v7 }
 0x74b   : > { %v1116_v40 = vpop.xlane.xlu2 %1115  ;;  %v1138_v41 = vpop.xlane.xlu1 %1137 }
 0x74c   : > { %v1134_v28 = vadd.f32 %v1132_v9, %v2333_v1  ;;  %v1123_v49 = vmul.f32 %v1120_v38, %v1116_v40  ;;  %v1279_v9 = vld [vmem:[#allocation11 + $0x40] sm:$0xff]  ;;  %v1276_v40 = vld [vmem:[#allocation11 + $0x28] sm:$0xff] }
 0x74d   : > { %1297 = vmatpush.msrb.mxu3 %v1279_v9 }
 0x74e   : > { %v1169_v53 = vmax.f32 %v1101_v27, %v1123_v49 }
 0x753   : > { %v1142_v8 = vpop.xlane.xlu2 %1141  ;;  %v1118_v45 = vpop.xlane.xlu1 %1117 }
 0x754   : > { %v1145_v51 = vmul.f32 %v1142_v8, %v1138_v41  ;;  %v1324_v41 = vld [vmem:[#allocation12 + $0x28] sm:$0xff]  ;;  %v1275_v8 = vld [vmem:[#allocation11 + $0x20] sm:$0xff] }
 0x756   : > { %v1171_v57 = vmax.f32 %v1169_v53, %v1145_v51 }
 0x75b   : > { %v1096_v46 = vpop.xlane.xlu2 %1095 }
 0x763   : > { %v1122_v61 = vpop.xlane.xlu2 %1121 }
 0x764   : > { %v1124_v4 = vmul.f32 %v1122_v61, %v1118_v45  ;;  %v1272_v61 = vld [vmem:[#allocation11 + $0x8] sm:$0xff] }
 0x7c5   : > { %v2490_v16 = vpop.f32.mrf.mxu3 }
 0x7c6   : > { %v1151_v19 = vmul.f32 %v2435_v60, %v2490_v16  ;;  %1159 = vadd.xlane.f32.xlu0 %v2490_v16 }
 0x7c8   : > { %v1153_v32 = vadd.f32 %v1151_v19, %v1149_v17  ;;  %v1328_v17 = vld [vmem:[#allocation12 + $0x48] sm:$0xff] }
 0x7c9   : > { %1344 = vmatpush.msrb.mxu1 %v1328_v17 }
 0x7ca   : > { %v1155_v36 = vadd.f32 %v1153_v32, %v2330_v59 }
 0x7cc   : > { %1761 = vtanh.f32 %v1155_v36 }
 0x7cd   : > { %v2500_v23 = vpop.f32.mrf.mxu2  ;;  %1763 = vtanh.f32 %v1134_v28 }
 0x7ce   : > { %v1152_v60 = vmul.f32 %v2446_v11, %v2500_v23  ;;  %1161 = vadd.xlane.f32.xlu2 %v2500_v23  ;;  %v1100_v11 = vpop.xlane.xlu0 %1099 }
 0x7cf   : > { %v1102_v19 = vmul.f32 %v1100_v11, %v1096_v46 }
 0x7d0   : > { %v1154_v29 = vadd.f32 %v1152_v60, %v1150_v26  ;;  %v1327_v26 = vld [vmem:[#allocation12 + $0x40] sm:$0xff] }
 0x7d1   : > { %v1170_v60 = vmax.f32 %v1102_v19, %v1124_v4  ;;  %1345 = vmatpush.msrb.mxu1 %v1327_v26 }
 0x7d2   : > { %v1762_v30 = vpop.eup %1761  ;;  %v1156_v31 = vadd.f32 %v1154_v29, %v2333_v1 }
 0x7d3   : > { %1163 = vadd.xlane.f32.xlu1 %v1762_v30  ;;  %v1764_v33 = vpop.eup %1763 }
 0x7d4   : > { %1765 = vtanh.f32 %v1156_v31  ;;  %v1278_v31 = vld [vmem:[#allocation11 + $0x38] sm:$0xff] }
 0x7d5   : > { %1298 = vmatpush.msrb.mxu3 %v1278_v31 }
 0x7d6   : > { %v1140_v44 = vpop.xlane.xlu0 %1139 }
 0x7da   : > { %v1766_v35 = vpop.eup %1765 }
 0x7db   : > { %1143 = vadd.xlane.f32.xlu1 %v1764_v33  ;;  %1165 = vadd.xlane.f32.xlu0 %v1766_v35  ;;  %v1326_v33 = vld [vmem:[#allocation12 + $0x38] sm:$0xff]  ;;  %v1277_v35 = vld [vmem:[#allocation11 + $0x30] sm:$0xff] }
 0x7dc   : > { %1346 = vmatpush.msrb.mxu1 %v1326_v33  ;;  %1299 = vmatpush.msrb.mxu3 %v1277_v35 }
 0x7de   : > { %1347 = vmatpush.msrb.mxu1 %v1325_v39  ;;  %1300 = vmatpush.msrb.mxu3 %v1276_v40 }
 0x7e0   : > { %1348 = vmatpush.msrb.mxu1 %v1324_v41  ;;  %1301 = vmatpush.msrb.mxu3 %v1275_v8 }
 0x7e2   : > { %1349 = vmatpush.msrb.mxu1 %v1323_v47  ;;  %1302 = vmatpush.msrb.mxu3 %v1274_v50 }
 0x7e4   : > { %1350 = vmatpush.msrb.mxu1 %v1322_v52 }
 0x7e6   : > { %1351 = vmatpush.msrb.mxu1 %v1321_v56 }
 0x7e8   : > { %1352 = vmatpush.msrb.mxu1 %v1320_v63 }
 0x7ea   : > { %1353 = vmatpush.msrb.mxu1 %v1319_v3 }
 0x839   : > { %v1160_v54 = vpop.xlane.xlu0 %1159 }
 0x841   : > { %v1162_v29 = vpop.xlane.xlu2 %1161 }
 0x846   : > { %v1164_v55 = vpop.xlane.xlu1 %1163 }
 0x847   : > { %v1167_v58 = vmul.f32 %v1164_v55, %v1160_v54  ;;  %v1273_v55 = vld [vmem:[#allocation11 + $0x10] sm:$0xff] }
 0x848   : > { %1303 = vmatpush.msrb.mxu3 %v1273_v55  ;;  %v1793_v55 = vld [vmem:[%s2294_s13] sm:$0xff] }
 0x849   : > { %v1173_v2 = vmax.f32 %v1171_v57, %v1167_v58 }
 0x84a   : > { %1304 = vmatpush.msrb.mxu3 %v1272_v61 }
 0x84b   : > { %v1175_v5 = vsub.f32 %v1101_v27, %v1173_v2  ;;  %v1181_v6 = vsub.f32 %v1123_v49, %v1173_v2  ;;  %v1187_v10 = vsub.f32 %v1145_v51, %v1173_v2  ;;  %v1193_v48 = vsub.f32 %v1167_v58, %v1173_v2  ;;  %v1271_v2 = vld [vmem:[#allocation11] sm:$0xff] }
 0x84c   : > { %1305 = vmatpush.msrb.mxu3 %v1271_v2 }
 0x84d   : > { %v1177_v7 = vmul.f32 1.442695, %v1175_v5  ;;  %v1183_v32 = vmul.f32 1.442695, %v1181_v6  ;;  %v1189_v20 = vmul.f32 1.442695, %v1187_v10 }
 0x84e   : > { %v1144_v21 = vpop.xlane.xlu1 %1143  ;;  %v1166_v36 = vpop.xlane.xlu0 %1165  ;;  %v1195_v30 = vmul.f32 1.442695, %v1193_v48 }
 0x84f   : > { %1767 = vpow2.f32 %v1177_v7  ;;  %v1146_v28 = vmul.f32 %v1144_v21, %v1140_v44  ;;  %v1168_v38 = vmul.f32 %v1166_v36, %v1162_v29 }
 0x850   : > { %1769 = vpow2.f32 %v1183_v32 }
 0x851   : > { %v1172_v37 = vmax.f32 %v1170_v60, %v1146_v28  ;;  %1771 = vpow2.f32 %v1189_v20 }
 0x852   : > { %1773 = vpow2.f32 %v1195_v30 }
 0x853   : > { %v1174_v11 = vmax.f32 %v1172_v37, %v1168_v38 }
 0x855   : > { %v2508_v44 = vpop.eup %1767  ;;  %v1176_v45 = vsub.f32 %v1102_v19, %v1174_v11  ;;  %v1182_v46 = vsub.f32 %v1124_v4, %v1174_v11  ;;  %v1188_v22 = vsub.f32 %v1146_v28, %v1174_v11  ;;  %v1194_v18 = vsub.f32 %v1168_v38, %v1174_v11 }
 0x856   : > { %v1770_v49 = vpop.eup %1769 }
 0x857   : > { %v1199_v27 = vadd.f32 %v1770_v49, %v2508_v44  ;;  %v1179_v51 = vmul.f32 1.442695, %v1176_v45  ;;  %v1185_v34 = vmul.f32 1.442695, %v1182_v46  ;;  %v1772_v53 = vpop.eup %1771  ;;  %v1191_v54 = vmul.f32 1.442695, %v1188_v22 }
 0x858   : > { %v1774_v57 = vpop.eup %1773  ;;  %v1197_v58 = vmul.f32 1.442695, %v1194_v18 }
 0x859   : > { %v1201_v13 = vadd.f32 %v1772_v53, %v1199_v27  ;;  %1775 = vpow2.f32 %v1179_v51 }
 0x85a   : > { %1777 = vpow2.f32 %v1185_v34 }
 0x85b   : > { %v1203_v62 = vadd.f32 %v1774_v57, %v1201_v13  ;;  %1779 = vpow2.f32 %v1191_v54 }
 0x85d   : > { %1781 = vrcp.f32 %v1203_v62  ;;  %v1216_v32 = vand.u32 2147483648, %v1203_v62  ;;  %v1214_v21 = vand.u32 2147483647, %v1203_v62  ;;  %vm1210_vm3 = vweird.f32 %v1203_v62 }
 0x85e   : > { %1783 = vpow2.f32 %v1197_v58 }
 0x85f   : > { %v1776_v43 = vpop.eup %1775  ;;  %v1217_v9 = vor.u32 1.1754944e-38, %v1216_v32  ;;  %vm1215_vm5 = vcmp.eq.f32.partialorder %v1214_v21, 8.507059e+37 }
 0x860   : > { %v1778_v4 = vpop.eup %1777 }
 0x861   : > { %v1200_v5 = vadd.f32 %v1778_v4, %v1776_v43  ;;  %v1780_v6 = vpop.eup %1779 }
 0x863   : > { %v1782_v10 = vpop.eup %1781  ;;  %v1202_v48 = vadd.f32 %v1780_v6, %v1200_v5 }
 0x864   : > { %v1784_v14 = vpop.eup %1783  ;;  %v1206_v17 = vmul.f32 %v1782_v10, %v1203_v62  ;;  %vm1211_vm0 = vweird.f32 %v1782_v10 }
 0x865   : > { %v1204_v19 = vadd.f32 %v1784_v14, %v1202_v48  ;;  %vm1212_vm4 = vmor %vm1210_vm3, %vm1211_vm0 }
 0x866   : > { %v1207_v7 = vsub.f32 1.0, %v1206_v17 }
 0x867   : > { %1785 = vrcp.f32 %v1204_v19  ;;  %v1229_v40 = vand.u32 2147483647, %v1204_v19  ;;  %v1231_v11 = vand.u32 2147483648, %v1204_v19  ;;  %vm1225_vm7 = vweird.f32 %v1204_v19 }
 0x868   : > { %v1208_v20 = vmul.f32 %v1782_v10, %v1207_v7 }
 0x869   : > { %v1232_v47 = vor.u32 1.1754944e-38, %v1231_v11  ;;  %vm1230_vm9 = vcmp.eq.f32.partialorder %v1229_v40, 8.507059e+37 }
 0x86a   : > { %v1209_v36 = vadd.f32 %v1782_v10, %v1208_v20 }
 0x86c   : > { %v1213_v26 = vsel %vm1212_vm4, %v1782_v10, %v1209_v36 }
 0x86d   : > { %v1786_v60 = vpop.eup %1785  ;;  %v1218_v28 = vsel %vm1215_vm5, %v1217_v9, %v1213_v26 }
 0x86e   : > { %v1235_v29 = vmul.f32 %v2508_v44, %v1218_v28  ;;  %v1241_v30 = vmul.f32 %v1770_v49, %v1218_v28  ;;  %v1221_v31 = vmul.f32 %v1786_v60, %v1204_v19  ;;  %v1247_v33 = vmul.f32 %v1772_v53, %v1218_v28 }
 0x86f   : > { %v1253_v35 = vmul.f32 %v1774_v57, %v1218_v28  ;;  %vm1226_vm6 = vweird.f32 %v1786_v60 }
 0x870   : > { %v1222_v37 = vsub.f32 1.0, %v1221_v31  ;;  %v1237_v38 = vmul.f32 %v1235_v29, %v2432_v42  ;;  %v1243_v39 = vmul.f32 %v1241_v30, %v2437_v0  ;;  %v1249_v8 = vmul.f32 %v1247_v33, %v2467_v12  ;;  %vm1227_vm8 = vmor %vm1225_vm7, %vm1226_vm6 }
 0x871   : > { %v1255_v46 = vmul.f32 %v1253_v35, %v2490_v16  ;;  %v2068_v30 = vmov 128.0  }
 0x872   : > { %v1245_v41 = vadd.f32 %v1243_v39, %v1237_v38  ;;  %v1223_v45 = vmul.f32 %v1786_v60, %v1222_v37  ;;  %1787 = vrcp.f32 %v2068_v30 }
 0x874   : > { %v1251_v22 = vadd.f32 %v1249_v8, %v1245_v41  ;;  %v1224_v44 = vadd.f32 %v1786_v60, %v1223_v45 }
 0x876   : > { %v1257_v49 = vadd.f32 %v1255_v46, %v1251_v22  ;;  %v1228_v18 = vsel %vm1227_vm8, %v1786_v60, %v1224_v44 }
 0x877   : > { %v1233_v42 = vsel %vm1230_vm9, %v1232_v47, %v1228_v18 }
 0x878   : > { %v1259_v0 = vadd.f32 %v1257_v49, %v2330_v59  ;;  %v1265_v50 = vmul.f32 %v1257_v49, %v2330_v59  ;;  %v1236_v27 = vmul.f32 %v1776_v43, %v1233_v42  ;;  %v1242_v12 = vmul.f32 %v1778_v4, %v1233_v42  ;;  %v1794_v43 = vld [vmem:[%s2294_s13 + $0x8] sm:$0xff]  ;;  %v1788_v31 = vpop.eup %1787 }
 0x879   : > { %v1248_v51 = vmul.f32 %v1780_v6, %v1233_v42  ;;  %v1254_v34 = vmul.f32 %v1784_v14, %v1233_v42  ;;  %v1374_v33 = vmul.f32 128.0, %v1788_v31  ;;  %vm1378_vm14 = vweird.f32 %v1788_v31 }
 0x87a   : > { %v1261_v52 = vmul.f32 0.1, %v1259_v0  ;;  %v1267_v16 = vmul.f32 0.1, %v1265_v50  ;;  %v1238_v53 = vmul.f32 %v1236_v27, %v2448_v15  ;;  %v1244_v54 = vmul.f32 %v1242_v12, %v2453_v24 }
 0x87b   : > { %v1250_v58 = vmul.f32 %v1248_v51, %v2455_v25  ;;  %v1256_v61 = vmul.f32 %v1254_v34, %v2500_v23  ;;  %v1727_v25 = vld [vmem:[%s2581_s9] ss:$0 sm:$0xff]  ;;  %v1375_v35 = vsub.f32 1.0, %v1374_v33 }
 0x87c   : > { %v1263_v13 = vadd.f32 %v1793_v55, %v1261_v52  ;;  %v1269_v56 = vadd.f32 %v1793_v55, %v1267_v16  ;;  %v1246_v57 = vadd.f32 %v1244_v54, %v1238_v53  ;;  %v1728_v23 = vld [vmem:[%s2579_s7] ss:$0 sm:$0xff] }
 0x87d   : > { %v1376_v37 = vmul.f32 %v1788_v31, %v1375_v35  ;;  %v1729_v54 = vld [vmem:[%s2582_s10] ss:$0 sm:$0xff] }
 0x87e   : > { %1306 = vmatmul.f32.vlgmr.msrb.gmra.mxu3 %v1263_v13  ;;  %1354 = vmatmul.f32.vlgmr.msrb.gmra.mxu1 %v1269_v56  ;;  %v1252_v59 = vadd.f32 %v1250_v58, %v1246_v57  ;;  %v1730_v56 = vld [vmem:[%s2583_s11] ss:$0 sm:$0xff] }
 0x87f   : > { %v1377_v38 = vadd.f32 %v1788_v31, %v1376_v37 }
 0x880   : > { %v1258_v62 = vadd.f32 %v1256_v61, %v1252_v59 }
 0x881   : > { %v1379_v39 = vsel %vm1378_vm14, %v1788_v31, %v1377_v38 }
 0x882   : > { %v1260_v63 = vadd.f32 %v1258_v62, %v2333_v1  ;;  %v1266_v2 = vmul.f32 %v1258_v62, %v2333_v1 }
 0x884   : > { %v1262_v15 = vmul.f32 0.1, %v1260_v63  ;;  %v1268_v3 = vmul.f32 0.1, %v1266_v2 }
 0x886   : > { %v1264_v24 = vadd.f32 %v1794_v43, %v1262_v15  ;;  %v1270_v4 = vadd.f32 %v1794_v43, %v1268_v3 }
 0x888   : > { %1309 = vmatmul.f32.gmra.mxu3 %v1264_v24  ;;  %1357 = vmatmul.f32.gmra.mxu1 %v1270_v4 }
 0x8fb   : > { %v1355_v5 = vpop.f32.mrf.mxu1 }
 0x8fc   : > { %v1356_v6 = vadd.f32 %v1727_v25, %v1355_v5 }
 0x8fe   : > { %v1363_v48 = vmul.f32 0.01, %v1356_v6  ;;  %vm1361_vm10 = vcmp.ge.f32.partialorder %v1356_v6, 0.0 }
 0x900   : > { %v1365_v7 = vsel %vm1361_vm10, %v1356_v6, %v1363_v48 }
 0x901   : > { %v1307_v10 = vpop.f32.mrf.mxu3 }
 0x902   : > { %v1308_v1 = vadd.f32 %v1728_v23, %v1307_v10 }
 0x904   : > { %v1315_v14 = vmul.f32 0.01, %v1308_v1  ;;  %vm1313_vm11 = vcmp.ge.f32.partialorder %v1308_v1, 0.0 }
 0x905   : > { %v1358_v17 = vpop.f32.mrf.mxu1 }
 0x906   : > { %v1317_v19 = vsel %vm1313_vm11, %v1308_v1, %v1315_v14  ;;  %v1359_v20 = vadd.f32 %v1727_v25, %v1358_v17 }
 0x907   : > { %v1367_v32 = vadd.f32 %v1365_v7, %v1317_v19 }
 0x908   : > { %v1364_v36 = vmul.f32 0.01, %v1359_v20  ;;  %vm1362_vm12 = vcmp.ge.f32.partialorder %v1359_v20, 0.0 }
 0x909   : > { %1369 = vadd.xlane.f32.xlu1 %v1367_v32 }
 0x90a   : > { %v1366_v28 = vsel %vm1362_vm12, %v1359_v20, %v1364_v36 }
 0x90b   : > { %v1310_v21 = vpop.f32.mrf.mxu3 }
 0x90c   : > { %v1311_v9 = vadd.f32 %v1728_v23, %v1310_v21 }
 0x90e   : > { %v1316_v26 = vmul.f32 0.01, %v1311_v9  ;;  %vm1314_vm13 = vcmp.ge.f32.partialorder %v1311_v9, 0.0 }
 0x910   : > { %v1318_v60 = vsel %vm1314_vm13, %v1311_v9, %v1316_v26 }
 0x911   : > { %v1368_v29 = vadd.f32 %v1366_v28, %v1318_v60 }
 0x913   : > { %1371 = vadd.xlane.f32.xlu2 %v1368_v29 }
 0x97c   : > { %v1370_v40 = vpop.xlane.xlu1 %1369 }
 0x97d   : > { %v1380_v11 = vmul.f32 %v1379_v39, %v1370_v40 }
 0x97f   : > { %v1382_v41 = vsub.f32 %v1367_v32, %v1380_v11 }
 0x981   : > { %v1384_v8 = vmul.f32 %v1382_v41, %v1382_v41 }
 0x983   : > { %1386 = vadd.xlane.f32.xlu0 %v1384_v8 }
 0x986   : > { %v1372_v45 = vpop.xlane.xlu2 %1371 }
 0x987   : > { %v1381_v46 = vmul.f32 %v1379_v39, %v1372_v45 }
 0x989   : > { %v1383_v22 = vsub.f32 %v1368_v29, %v1381_v46 }
 0x98b   : > { %v1385_v44 = vmul.f32 %v1383_v22, %v1383_v22 }
 0x98d   : > { %1388 = vadd.xlane.f32.xlu1 %v1385_v44 }
 0x9f6   : > { %v1387_v47 = vpop.xlane.xlu0 %1386 }
 0x9f7   : > { %v1390_v49 = vmul.f32 %v1387_v47, %v1379_v39 }
 0x9f9   : > { %v1392_v18 = vadd.f32 1e-05, %v1390_v49 }
 0x9fb   : > { %1789 = vrsqrt.f32 %v1392_v18  ;;  %vm1400_vm1 = vweird.f32 %v1392_v18 }
 0xa00   : > { %v1389_v42 = vpop.xlane.xlu1 %1388 }
 0xa01   : > { %v1790_v0 = vpop.eup %1789  ;;  %v1391_v50 = vmul.f32 %v1389_v42, %v1379_v39 }
 0xa02   : > { %v1395_v27 = vmul.f32 %v1790_v0, %v1392_v18  ;;  %vm1401_vm15 = vweird.f32 %v1790_v0 }
 0xa03   : > { %v1393_v12 = vadd.f32 1e-05, %v1391_v50  ;;  %vm1402_vm2 = vmor %vm1400_vm1, %vm1401_vm15 }
 0xa04   : > { %v1396_v51 = vmul.f32 %v1790_v0, %v1395_v27 }
 0xa05   : > { %1791 = vrsqrt.f32 %v1393_v12  ;;  %vm1410_vm3 = vweird.f32 %v1393_v12 }
 0xa06   : > { %v1397_v34 = vmul.f32 0.5, %v1396_v51 }
 0xa08   : > { %v1398_v52 = vsub.f32 1.5, %v1397_v34 }
 0xa0a   : > { %v1399_v16 = vmul.f32 %v1790_v0, %v1398_v52 }
 0xa0b   : > { %v1792_v53 = vpop.eup %1791 }
 0xa0c   : > { %v1403_v55 = vsel %vm1402_vm2, %v1790_v0, %v1399_v16  ;;  %v1405_v13 = vmul.f32 %v1792_v53, %v1393_v12  ;;  %vm1411_vm0 = vweird.f32 %v1792_v53 }
 0xa0d   : > { %v1414_v57 = vmul.f32 %v1403_v55, %v1382_v41  ;;  %vm1412_vm4 = vmor %vm1410_vm3, %vm1411_vm0 }
 0xa0e   : > { %v1406_v58 = vmul.f32 %v1792_v53, %v1405_v13 }
 0xa0f   : > { %v1419_v59 = vmul.f32 %v1729_v54, %v1414_v57 }
 0xa10   : > { %v1407_v61 = vmul.f32 0.5, %v1406_v58 }
 0xa11   : > { %v1424_v62 = vadd.f32 %v1730_v56, %v1419_v59 }
 0xa12   : > { %v1408_v63 = vsub.f32 1.5, %v1407_v61 }
 0xa13   : > { %1426 = vst [vmem:[%s541_s0] sm:$0xff] %v1424_v62 }
 0xa14   : > { %v1409_v2 = vmul.f32 %v1792_v53, %v1408_v63 }
 0xa16   : > { %v1413_v15 = vsel %vm1412_vm4, %v1792_v53, %v1409_v2 }
 0xa17   : > { %v1415_v3 = vmul.f32 %v1413_v15, %v1383_v22 }
 0xa19   : > { %v1420_v43 = vmul.f32 %v1729_v54, %v1415_v3 }
 0xa1b   : > { %v1425_v24 = vadd.f32 %v1730_v56, %v1420_v43 }
 0xa1d   : > { %1427 = vst [vmem:[%s541_s0 + $0x8] sm:$0xff] %v1425_v24 }
 0xa1e   : > { %2002 = shalt.err (!%p1999_p11)
}
 0xa1f   : > { %s2069_s28 = smov 128   ;;  %s2070_s21 = smov 8  }
 0xa20   : > { %1645 = dma.vmem_to_hbm [thread:$0]  (%p2229_p3), %s1442_s27, 256, %s1444_s29, %s1429_s25, %s2069_s28, %s2069_s28, %s2070_s21  }
 0xa21 PF: > { %s2621_s30 = sld [smem:[#allocation21_spill]]  ;;  %p2623_p12 = scmp.ge.s32.totalorder %s2057_s24, 2 }
 0xa23   : > { %p1668_p13 = pnand %p2623_p12, %p2171_p6 }
 0xa25   : > { %p1669_p0 = pneg %p1668_p13 }
 0xa27   : > { %s1458_s19 = sand.u32 1, %s2621_s30  }
 0xa28   : > { %s1459_s2 = scalar_lea.sflag [#allocation5], %s1458_s19 }
 0xa29   : > { %2040 = dma.done.wait (%p1669_p0), %s1459_s2, 256  }
 0xa2a   : > { %2042 = vsyncadd (%p1669_p0), %s1459_s2, 4294967040  ;;  %s2624_s24 = sld [smem:[#allocation24_spill]]  ;;  %s2627_s21 = smov %s2049_s22 }
 0xa2b   : > { %s2625_s0 = sld [smem:[#allocation22_spill]] }
 0xa2c   : > { %s2626_s23 = sld [smem:[#allocation26_spill]] }
 0xa30   : > { %p30_p5 = scmp.ge.s32.totalorder %s2624_s24, 4  }
 0xa31   : > { %s2628_s22 = smov %s2625_s0 }
 0xa32   :  { %32 = sbr.rel (!%p30_p5) target bundleno = 15 (0xf), region = 142 }
 0xa37   :  { %1465 = vsyncpa [#allocation4], 1 }
 0xa38   :  { %1467 = vsyncpa [#allocation4 + $0x1], 1 }
 0xa39   :  { %1468 = vsyncpa [#allocation7], 1 }
 0xa3a   :  { %1470 = vsyncpa [#allocation7 + $0x1], 1 }
 0xa3b   :  { %1471 = vsyncpa [#allocation10], 1 }
 0xa3c   :  { %1472 = vsyncpa [#allocation13], 1 }
 0xa3d   :  { %1473 = vsyncpa [#allocation5], 1 }
 0xa3e   :  { %1475 = vsyncpa [#allocation5 + $0x1], 1 }

// kernel: tpu_custom_call.1
= control target key start
LH: loop header
LB: loop body
LE: loop exit
PB: predicated region body
PF: predicated region fallthrough
CT: control target
= control target key end

     0   :  { %s2572_s0 = inlined_call_operand.hbm [shape: f32[4,8,128], index: 0, kind: input, shape index: {}]   ;;  %s2573_s1 = inlined_call_operand.hbm [shape: f32[4,8,128], index: 1, kind: input, shape index: {}]   ;;  %s2574_s2 = inlined_call_operand.hbm [shape: f32[128,256], index: 2, kind: input, shape index: {}]   ;;  %s2575_s3 = inlined_call_operand.hbm [shape: f32[128,128], index: 3, kind: input, shape index: {}]   ;;  %s2576_s4 = inlined_call_operand.vmem [shape: f32[1,128], index: 4, kind: input, shape index: {}]   ;;  %s2577_s5 = inlined_call_operand.vmem [shape: f32[1,128], index: 5, kind: input, shape index: {}]   ;;  %s2578_s6 = inlined_call_operand.hbm [shape: f32[128,128], index: 6, kind: input, shape index: {}]   ;;  %s2579_s7 = inlined_call_operand.vmem [shape: f32[1,128], index: 7, kind: input, shape index: {}]   ;;  %s2580_s8 = inlined_call_operand.hbm [shape: f32[128,128], index: 8, kind: input, shape index: {}]   ;;  %s2581_s9 = inlined_call_operand.vmem [shape: f32[1,128], index: 9, kind: input, shape index: {}]   ;;  %s2582_s10 = inlined_call_operand.vmem [shape: f32[1,128], index: 10, kind: input, shape index: {}]   ;;  %s2583_s11 = inlined_call_operand.vmem [shape: f32[1,128], index: 11, kind: input, shape index: {}]   ;;  %s2584_s12 = inlined_call_operand.hbm [shape: f32[4,8,128], index: 12, kind: output, shape index: {}]  }
   0x1   :  { %2596 = sst [smem:[#allocation27_spill]] %s2572_s0 }
   0x2   :  { %2597 = sst [smem:[#allocation28_spill]] %s2574_s2 }
   0x3   :  { %2598 = sst [smem:[#allocation29_spill]] %s2575_s3 }
   0x4   :  { %2599 = sst [smem:[#allocation30_spill]] %s2578_s6 }
   0x5   :  { %2600 = sst [smem:[#allocation31_spill]] %s2580_s8 }
   0x6   :  { %17 = vsyncpa [#allocation4], 0 }
   0x7   :  { %19 = vsyncpa [#allocation4 + $0x1], 0 }
   0x8   :  { %20 = vsyncpa [#allocation7], 0 }
   0x9   :  { %22 = vsyncpa [#allocation7 + $0x1], 0 }
   0xa   :  { %23 = vsyncpa [#allocation10], 0 }
   0xb   :  { %24 = vsyncpa [#allocation13], 0 }
   0xc   :  { %25 = vsyncpa [#allocation5], 0 }
   0xd   :  { %27 = vsyncpa [#allocation5 + $0x1], 0  ;;  %s2136_s21 = smov 0   ;;  %s2138_s22 = smov 0  }
   0xe   :  { %s2140_s23 = smov 0   ;;  %s2142_s24 = smov 0  }
   0xf LB: > { %2601 = sst [smem:[#allocation21_spill]] %s2045_s21  ;;  %s2157_s25 = sadd.s32 4294967295, %s2057_s24   ;;  %s2057_s24 = sphi %s2142_s24, %s2624_s24   ;;  %s2053_s23 = sphi %s2140_s23, %s2626_s23   ;;  %s2049_s22 = sphi %s2138_s22, %s2628_s22   ;;  %s2045_s21 = sphi %s2136_s21, %s2627_s21  }
  0x10   : > { %2602 = sst [smem:[#allocation22_spill]] %s2053_s23  ;;  %s1578_s26 = sadd.s32 4294967294, %s2057_s24  }
  0x11   : > { %p53_p0 = scmp.ne.s32.totalorder %s2049_s22, %s2045_s21  ;;  %p54_p1 = scmp.eq.s32.totalorder %s2157_s25, 0 }
  0x12   : > { %p313_p2 = scmp.eq.s32.totalorder %s2157_s25, 1  ;;  %p319_p3 = scmp.eq.s32.totalorder %s1578_s26, 1 }
  0x13   : > { %p2166_p4 = por %p54_p1, %p53_p0  ;;  %p1579_p5 = scmp.ge.s32.totalorder %s2057_s24, 1 }
  0x14   : > { %p2171_p6 = por %p319_p3, %p53_p0  ;;  %p326_p7 = scmp.lt.s32.totalorder %s2057_s24, 3 }
  0x15   : > { %s2606_s2 = sld [smem:[#allocation28_spill]]  ;;  %s2059_s15 = smov [#allocation8]  }
  0x16   : > { %s2604_s28 = scalar_select %p2171_p6, 1, 0 }
  0x17   : > { %p2179_p8 = pnand %p1579_p5, %p326_p7  ;;  %s339_s16 = sshll.u32 %s2059_s15, 4  ;;  %s340_s16 = int_to_ptr.vmem [resolvable:$true] %s339_s16 }
  0x18   : > { %2605 = sst [smem:[#allocation23_spill]] %s2604_s28  ;;  %s2060_s26 = smov 256  }
  0x19   : > { %p1647_p9 = pneg %p2179_p8  ;;  %s2609_s3 = sld [smem:[#allocation29_spill]] }
  0x1a   : > { %s2061_s29 = smov 16   ;;  %s2062_s30 = smov [#allocation9]  }
  0x1b   : > { %s337_s13 = sshll.u32 %s2606_s2, 4  ;;  %p2187_p10 = pnand %p1647_p9, %p54_p1  ;;  %s338_s13 = int_to_ptr.hbm [resolvable:$true] %s337_s13 }
  0x1c   : > { %s353_s15 = sshll.u32 %s2062_s30, 4  ;;  %s2586_s2 = smov 128   ;;  %s354_s15 = int_to_ptr.vmem [resolvable:$true] %s353_s15 }
  0x1d   : > { %1650 = dma.hbm_to_vmem [thread:$0]  (!%p2187_p10), %s338_s13, 4096, %s340_s16, [#allocation7], %s2060_s26, %s2060_s26, %s2061_s29  }
  0x1e   : > { %s2588_s28 = smov 8   ;;  %s2610_s6 = sld [smem:[#allocation30_spill]] }
  0x1f   : > { %s351_s20 = sshll.u32 %s2609_s3, 4  ;;  %s2065_s16 = smov [#allocation11]   ;;  %s352_s20 = int_to_ptr.hbm [resolvable:$true] %s351_s20 }
  0x20   : > { %1653 = dma.hbm_to_vmem [thread:$0]  (!%p2187_p10), %s352_s20, 2048, %s354_s15, [#allocation10], %s2586_s2, %s2586_s2, %s2588_s28  }
  0x21   : > { %s373_s26 = sshll.u32 %s2065_s16, 4  ;;  %s2611_s8 = sld [smem:[#allocation31_spill]]  ;;  %s374_s26 = int_to_ptr.vmem [resolvable:$true] %s373_s26 }
  0x22   : > { %s2066_s20 = smov [#allocation12]   ;;  %s2219_s18 = sadd.s32 1, %s2057_s24  }
  0x23   : > { %s390_s15 = sshll.u32 %s2066_s20, 4  ;;  %2612 = sst [smem:[#allocation24_spill]] %s2219_s18  ;;  %s391_s15 = int_to_ptr.vmem [resolvable:$true] %s390_s15 }
  0x24   : > { %s371_s13 = sshll.u32 %s2610_s6, 4  ;;  %s40_s19 = sadd.s32 1, %s2053_s23  ;;  %s372_s13 = int_to_ptr.hbm [resolvable:$true] %s371_s13 }
  0x25   : > { %1656 = dma.hbm_to_vmem [thread:$0]  (!%p2187_p10), %s372_s13, 2048, %s374_s26, [#allocation10], %s2586_s2, %s2586_s2, %s2588_s28  }
  0x26   : > { %s37_s16 = ssub.s32 %s2057_s24, %s2219_s18  ;;  %p47_p12 = scmp.ne.s32.totalorder %s2053_s23, %s2049_s22 }
  0x27   : > { %s388_s3 = sshll.u32 %s2611_s8, 4  ;;  %p38_p13 = scmp.eq.s32.totalorder %s37_s16, 0  ;;  %s389_s3 = int_to_ptr.hbm [resolvable:$true] %s388_s3 }
  0x28   : > { %1659 = dma.hbm_to_vmem [thread:$0]  (!%p2187_p10), %s389_s3, 2048, %s391_s15, [#allocation13], %s2586_s2, %s2586_s2, %s2588_s28  }
  0x29   : > { %p48_p0 = scmp.eq.s32.totalorder %s2057_s24, 0  ;;  %p2229_p3 = por %p313_p2, %p47_p12 }
  0x2a   : > { %p1675_p5 = scmp.lt.s32.totalorder %s2057_s24, 2  ;;  %s413_s17 = sand.u32 1, %s2053_s23  }
  0x2b   : > { %s2613_s13 = scalar_select %p2229_p3, 1, 0 }
  0x2c   : > { %s2235_s26 = scalar_select %p38_p13, %s2053_s23, %s40_s19  }
  0x2d   : > { %2614 = sst [smem:[#allocation25_spill]] %s2613_s13  ;;  %p49_p7 = por %p48_p0, %p47_p12 }
  0x2e   : > { %2615 = sst [smem:[#allocation26_spill]] %s2235_s26  ;;  %s2238_s29 = sshll.u32 %s413_s17, 4 }
  0x2f   : > { %s1620_s3 = sshll.u32 %s2057_s24, 4  ;;  %s2616_s0 = sld [smem:[#allocation27_spill]] }
  0x30   : > { %s417_s16 = scalar_lea.vmem [#allocation3], %s2238_s29  ;;  %p2245_p2 = pnand %p1675_p5, %p49_p7 }
  0x31   : > { %s425_s2 = sshll.u32 %s417_s16, 4  ;;  %s444_s26 = scalar_lea.hbm %s2573_s1, %s1620_s3  ;;  %s426_s2 = int_to_ptr.vmem [resolvable:$true] %s425_s2 }
  0x32   : > { %s445_s23 = sshll.u32 %s444_s26, 4  ;;  %s414_s18 = scalar_lea.sflag [#allocation4], %s413_s17  ;;  %s446_s23 = int_to_ptr.hbm [resolvable:$true] %s445_s23 }
  0x33   : > { %p1919_p10 = pneg %p2245_p2 }
  0x35   : > { %s422_s15 = scalar_lea.hbm %s2616_s0, %s1620_s3  ;;  %s1922_s16 = scalar_lea.hbm %s2616_s0, 32 }
  0x36   : > { %s423_s28 = sshll.u32 %s422_s15, 4  ;;  %s424_s28 = int_to_ptr.hbm [resolvable:$true] %s423_s28 }
  0x37   : > { %s1915_s21 = sshra.s32 %s424_s28, 4  ;;  %s1916_s21 = int_to_ptr.hbm [resolvable:$true] %s1915_s21 }
  0x38   : > { %s1917_s30 = scalar_lea.hbm %s1916_s21, 16  ;;  %p1923_p0 = scmp.lt.s32.totalorder %s1916_s21, %s2616_s0 }
  0x39   : > { %p1918_p9 = scmp.ne.s32.totalorder %s1916_s21, %s1917_s30  ;;  %p1924_p5 = scmp.lt.s32.totalorder %s1922_s16, %s1917_s30 }
  0x3b   : > { %p1920_p12 = pnand %p1919_p10, %p1918_p9  ;;  %p1925_p7 = por %p1924_p5, %p1923_p0 }
  0x3d   : > { %p1921_p13 = pneg %p1920_p12 }
  0x3f   : > { %p1926_p11 = pnand %p1925_p7, %p1921_p13 }
  0x41   : > { %1929 = shalt.err (!%p1926_p11)
}
  0x42   : > { %s2618_s26 = smov 8   ;;  %s2619_s17 = smov 128  }
  0x43   : > { %1663 = dma.hbm_to_vmem [thread:$0]  (!%p2245_p2), %s424_s28, 256, %s426_s2, %s414_s18, %s2619_s17, %s2619_s17, %s2618_s26  }
  0x44   : > { %s439_s3 = scalar_lea.vmem [#allocation6], %s2238_s29  ;;  %s435_s15 = sand.u32 1, %s2057_s24  }
  0x45   : > { %s447_s20 = sshll.u32 %s439_s3, 4  ;;  %s436_s8 = scalar_lea.sflag [#allocation7], %s435_s15  ;;  %s448_s20 = int_to_ptr.vmem [resolvable:$true] %s447_s20 }
  0x46   : > { %s1945_s21 = sshra.s32 %s446_s23, 4  ;;  %s1952_s0 = scalar_lea.hbm %s2573_s1, 32  ;;  %s1946_s21 = int_to_ptr.hbm [resolvable:$true] %s1945_s21 }
  0x47   : > { %s1947_s30 = scalar_lea.hbm %s1946_s21, 16  ;;  %p1953_p13 = scmp.lt.s32.totalorder %s1946_s21, %s2573_s1 }
  0x48   : > { %p1948_p9 = scmp.ne.s32.totalorder %s1946_s21, %s1947_s30  ;;  %p1954_p0 = scmp.lt.s32.totalorder %s1952_s0, %s1947_s30 }
  0x4a   : > { %p1950_p11 = pnand %p1948_p9, %p1919_p10  ;;  %p1955_p5 = por %p1954_p0, %p1953_p13 }
  0x4c   : > { %p1951_p12 = pneg %p1950_p11 }
  0x4e   : > { %p1956_p7 = pnand %p1955_p5, %p1951_p12 }
  0x50   : > { %1959 = shalt.err (!%p1956_p7)
}
  0x51   : > { %1666 = dma.hbm_to_vmem [thread:$0]  (!%p2245_p2), %s446_s23, 256, %s448_s20, %s436_s8, %s2619_s17, %s2619_s17, %s2618_s26  }
  0x52   : > { %459 = sbr.rel (%p2179_p8) target bundleno = 2593 (0xa21), region = 68  ;;  %s2287_s28 = sand.u32 (!%p2179_p8), 1, %s2049_s22  }
  0x53   : > { %s2290_s18 = sshll.u32 (!%p2179_p8), %s2287_s28, 4  ;;  %s462_s0 = scalar_lea.sflag (!%p2179_p8), [#allocation4], %s2287_s28 }
  0x54   : > { %s2294_s13 = scalar_lea.vmem (!%p2179_p8), [#allocation3], %s2290_s18 }
  0x57   : > { %2020 = dma.done.wait (%p2166_p4), %s462_s0, 256  }
  0x58   : > { %2022 = vsyncadd (%p2166_p4), %s462_s0, 4294967040  ;;  %s471_s6 = sand.u32 1, %s2157_s25   ;;  %s475_s14 = scalar_lea.vmem [#allocation6], %s2290_s18 }
  0x59   : > { %s472_s23 = scalar_lea.sflag [#allocation7], %s471_s6 }
  0x5a   : > { %2024 = dma.done.wait (%p2166_p4), %s472_s23, 256  }
  0x5b   : > { %2026 = vsyncadd (%p2166_p4), %s472_s23, 4294967040 }
  0x5c   : > { %2028 = dma.done.wait (%p54_p1), [#allocation7], 4096  }
  0x5d   : > { %2030 = vsyncadd (%p54_p1), [#allocation7], 4294963200 }
  0x5e   : > { %2032 = dma.done.wait (%p54_p1), [#allocation10], 4096  }
  0x5f   : > { %2034 = vsyncadd (%p54_p1), [#allocation10], 4294963200 }
  0x60   : > { %2036 = dma.done.wait (%p54_p1), [#allocation13], 2048  }
  0x61   : > { %2038 = vsyncadd (%p54_p1), [#allocation13], 4294965248  ;;  %v660_v0 = vld [vmem:[#allocation9 + $0x78] sm:$0xff]  ;;  %v659_v1 = vld [vmem:[#allocation9 + $0x70] sm:$0xff]  ;;  %vm732_vm0 = vcmask 130048   ;;  %s1622_s2 = sshll.u32 %s2157_s25, 4 }
  0x62   : > { %661 = vmatpush.msra.mxu2 %v660_v0  ;;  %v584_v2 = vld [vmem:[#allocation8 + $0xf8] sm:$0xff]  ;;  %v658_v3 = vld [vmem:[#allocation9 + $0x68] sm:$0xff]  ;;  %v583_v5 = vld [vmem:[#allocation8 + $0xf0] sm:$0xff]  ;;  %s541_s0 = scalar_lea.vmem [#allocation14], %s2290_s18  ;;  %s1440_s23 = scalar_lea.hbm %s2584_s12, %s1622_s2 }
  0x63   : > { %608 = vmatpush.msra.mxu1 %v584_v2  ;;  %v582_v4 = vld [vmem:[#allocation8 + $0xe8] sm:$0xff]  ;;  %v580_v6 = vld [vmem:[#allocation8 + $0xd8] sm:$0xff]  ;;  %v657_v7 = vld [vmem:[#allocation9 + $0x60] sm:$0xff]  ;;  %585 = vmatpush.msra.mxu0 %v583_v5  ;;  %s1441_s27 = sshll.u32 %s541_s0, 4  ;;  %s1443_s29 = sshll.u32 %s1440_s23, 4  ;;  %s1442_s27 = int_to_ptr.vmem [resolvable:$true] %s1441_s27  ;;  %s1444_s29 = int_to_ptr.hbm [resolvable:$true] %s1443_s29 }
  0x64   : > { %662 = vmatpush.msra.mxu2 %v659_v1  ;;  %v581_v8 = vld [vmem:[#allocation8 + $0xe0] sm:$0xff]  ;;  %v578_v9 = vld [vmem:[#allocation8 + $0xc8] sm:$0xff]  ;;  %v579_v10 = vld [vmem:[#allocation8 + $0xd0] sm:$0xff]  ;;  %s1429_s25 = scalar_lea.sflag [#allocation5], %s2287_s28  ;;  %s1989_s18 = sshra.s32 %s1444_s29, 4  ;;  %s1990_s18 = int_to_ptr.hbm [resolvable:$true] %s1989_s18 }
  0x65   : > { %609 = vmatpush.msra.mxu1 %v582_v4  ;;  %v656_v11 = vld [vmem:[#allocation9 + $0x58] sm:$0xff]  ;;  %586 = vmatpush.msra.mxu0 %v581_v8  ;;  %v577_v13 = vld [vmem:[#allocation8 + $0xc0] sm:$0xff]  ;;  %v655_v14 = vld [vmem:[#allocation9 + $0x50] sm:$0xff]  ;;  %s1991_s26 = scalar_lea.hbm %s1990_s18, 16  ;;  %s1995_s20 = scalar_lea.hbm %s2584_s12, 32 }
  0x66   : > { %663 = vmatpush.msra.mxu2 %v658_v3  ;;  %v576_v12 = vld [vmem:[#allocation8 + $0xb8] sm:$0xff]  ;;  %v574_v15 = vld [vmem:[#allocation8 + $0xa8] sm:$0xff]  ;;  %v575_v16 = vld [vmem:[#allocation8 + $0xb0] sm:$0xff]  ;;  %p1992_p1 = scmp.ne.s32.totalorder %s1990_s18, %s1991_s26  ;;  %p1996_p2 = scmp.lt.s32.totalorder %s1990_s18, %s2584_s12 }
  0x67   : > { %610 = vmatpush.msra.mxu1 %v580_v6  ;;  %587 = vmatpush.msra.mxu0 %v579_v10  ;;  %v654_v17 = vld [vmem:[#allocation9 + $0x48] sm:$0xff]  ;;  %v572_v18 = vld [vmem:[#allocation8 + $0x98] sm:$0xff]  ;;  %v573_v19 = vld [vmem:[#allocation8 + $0xa0] sm:$0xff]  ;;  %v730_v6 = vlaneseq  ;;  %p1997_p10 = scmp.lt.s32.totalorder %s1995_s20, %s1991_s26 }
  0x68   : > { %664 = vmatpush.msra.mxu2 %v657_v7  ;;  %v653_v20 = vld [vmem:[#allocation9 + $0x40] sm:$0xff]  ;;  %v570_v21 = vld [vmem:[#allocation8 + $0x88] sm:$0xff]  ;;  %v571_v22 = vld [vmem:[#allocation8 + $0x90] sm:$0xff]  ;;  %p1993_p4 = pnand %p1992_p1, %p2229_p3 }
  0x69   : > { %611 = vmatpush.msra.mxu1 %v578_v9  ;;  %588 = vmatpush.msra.mxu0 %v577_v13  ;;  %v652_v23 = vld [vmem:[#allocation9 + $0x38] sm:$0xff]  ;;  %v569_v25 = vld [vmem:[#allocation8 + $0x80] sm:$0xff]  ;;  %v651_v26 = vld [vmem:[#allocation9 + $0x30] sm:$0xff]  ;;  %v2338_v7 = vand.u32 127, %v730_v6  ;;  %p1998_p9 = por %p1997_p10, %p1996_p2 }
  0x6a   : > { %665 = vmatpush.msra.mxu2 %v656_v11  ;;  %v568_v24 = vld [vmem:[#allocation8 + $0x78] sm:$0xff]  ;;  %v650_v27 = vld [vmem:[#allocation9 + $0x28] sm:$0xff]  ;;  %v567_v29 = vld [vmem:[#allocation8 + $0x70] sm:$0xff]  ;;  %p1994_p8 = pneg %p1993_p4 }
  0x6b   : > { %612 = vmatpush.msra.mxu1 %v576_v12  ;;  %589 = vmatpush.msra.mxu0 %v575_v16  ;;  %v566_v28 = vld [vmem:[#allocation8 + $0x68] sm:$0xff]  ;;  %v564_v30 = vld [vmem:[#allocation8 + $0x58] sm:$0xff]  ;;  %v565_v31 = vld [vmem:[#allocation8 + $0x60] sm:$0xff] }
  0x6c   : > { %666 = vmatpush.msra.mxu2 %v655_v14  ;;  %v649_v32 = vld [vmem:[#allocation9 + $0x20] sm:$0xff]  ;;  %v562_v33 = vld [vmem:[#allocation8 + $0x48] sm:$0xff]  ;;  %v563_v34 = vld [vmem:[#allocation8 + $0x50] sm:$0xff]  ;;  %p1999_p11 = pnand %p1998_p9, %p1994_p8 }
  0x6d   : > { %613 = vmatpush.msra.mxu1 %v574_v15  ;;  %590 = vmatpush.msra.mxu0 %v573_v19  ;;  %v648_v35 = vld [vmem:[#allocation9 + $0x18] sm:$0xff]  ;;  %v561_v37 = vld [vmem:[#allocation8 + $0x40] sm:$0xff]  ;;  %v647_v38 = vld [vmem:[#allocation9 + $0x10] sm:$0xff] }
  0x6e   : > { %667 = vmatpush.msra.mxu2 %v654_v17  ;;  %v560_v36 = vld [vmem:[#allocation8 + $0x38] sm:$0xff]  ;;  %v558_v39 = vld [vmem:[#allocation8 + $0x28] sm:$0xff]  ;;  %v559_v40 = vld [vmem:[#allocation8 + $0x30] sm:$0xff] }
  0x6f   : > { %614 = vmatpush.msra.mxu1 %v572_v18  ;;  %591 = vmatpush.msra.mxu0 %v571_v22  ;;  %v646_v41 = vld [vmem:[#allocation9 + $0x8] sm:$0xff]  ;;  %v556_v42 = vld [vmem:[#allocation8 + $0x18] sm:$0xff]  ;;  %v557_v43 = vld [vmem:[#allocation8 + $0x20] sm:$0xff] }
  0x70   : > { %668 = vmatpush.msra.mxu2 %v653_v20  ;;  %v645_v44 = vld [vmem:[#allocation9] sm:$0xff]  ;;  %v554_v46 = vld [vmem:[#allocation8 + $0x8] sm:$0xff]  ;;  %v555_v47 = vld [vmem:[#allocation8 + $0x10] sm:$0xff] }
  0x71   : > { %615 = vmatpush.msra.mxu1 %v570_v21  ;;  %592 = vmatpush.msra.mxu0 %v569_v25  ;;  %v643_v45 = vld [vmem:[%s475_s14] sm:$0xff]  ;;  %v644_v50 = vld [vmem:[%s475_s14 + $0x8] sm:$0xff] }
  0x72   : > { %669 = vmatpush.msra.mxu2 %v652_v23  ;;  %v545_v48 = vld [vmem:[%s2294_s13] sm:$0xff]  ;;  %v546_v51 = vld [vmem:[%s2294_s13 + $0x8] sm:$0xff] }
  0x73   : > { %616 = vmatpush.msra.mxu1 %v568_v24  ;;  %593 = vmatpush.msra.mxu0 %v567_v29  ;;  %v553_v49 = vld [vmem:[#allocation8] sm:$0xff] }
  0x74   : > { %670 = vmatpush.msra.mxu2 %v651_v26  ;;  %v1725_v52 = vld [vmem:[%s2577_s5] ss:$0 sm:$0xff] }
  0x75   : > { %617 = vmatpush.msra.mxu1 %v566_v28  ;;  %594 = vmatpush.msra.mxu0 %v565_v31  ;;  %v1726_v57 = vld [vmem:[%s2576_s4] ss:$0 sm:$0xff] }
  0x76   : > { %671 = vmatpush.msra.mxu2 %v650_v27 }
  0x77   : > { %618 = vmatpush.msra.mxu1 %v564_v30  ;;  %595 = vmatpush.msra.mxu0 %v563_v34 }
  0x78   : > { %672 = vmatpush.msra.mxu2 %v649_v32  ;;  %v2067_v32 = vmov 0.0  }
  0x79   : > { %619 = vmatpush.msra.mxu1 %v562_v33  ;;  %596 = vmatpush.msra.mxu0 %v561_v37 }
  0x7a   : > { %673 = vmatpush.msra.mxu2 %v648_v35 }
  0x7b   : > { %620 = vmatpush.msra.mxu1 %v560_v36  ;;  %597 = vmatpush.msra.mxu0 %v559_v40 }
  0x7c   : > { %674 = vmatpush.msra.mxu2 %v647_v38 }
  0x7d   : > { %621 = vmatpush.msra.mxu1 %v558_v39  ;;  %598 = vmatpush.msra.mxu0 %v557_v43 }
  0x7e   : > { %675 = vmatpush.msra.mxu2 %v646_v41 }
  0x7f   : > { %622 = vmatpush.msra.mxu1 %v556_v42  ;;  %599 = vmatpush.msra.mxu0 %v555_v47 }
  0x80   : > { %676 = vmatpush.msra.mxu2 %v645_v44 }
  0x81   : > { %677 = vmatmul.f32.vlgmr.msra.gmra.mxu2 %v643_v45  ;;  %623 = vmatpush.msra.mxu1 %v554_v46 }
  0x82   : > { %624 = vmatmul.f32.vlgmr.msra.gmra.mxu1 %v545_v48  ;;  %600 = vmatpush.msra.mxu0 %v553_v49 }
  0x83   : > { %601 = vmatmul.f32.vlgmr.msra.gmra.mxu0 %v545_v48 }
  0x89   : > { %680 = vmatmul.f32.gmra.mxu2 %v644_v50 }
  0x8a   : > { %627 = vmatmul.f32.gmra.mxu1 %v546_v51 }
  0x8b   : > { %604 = vmatmul.f32.gmra.mxu0 %v546_v51 }
  0xff   : > { %v625_v53 = vpop.f32.mrf.mxu1 }
 0x100   : > { %v602_v56 = vpop.f32.mrf.mxu0  ;;  %v639_v58 = vadd.f32 %v1725_v52, %v625_v53 }
 0x101   : > { %v2330_v59 = vadd.f32 %v1726_v57, %v602_v56 }
 0x104   : > { %v678_v54 = vpop.f32.mrf.mxu2 }
 0x105   : > { %v679_v55 = vadd.f32 %v1725_v52, %v678_v54 }
 0x107   : > { %704 = vmatpush.xpose.msra.mxu3 %v679_v55  ;;  %v628_v61 = vpop.f32.mrf.mxu1 }
 0x108   : > { %v640_v63 = vadd.f32 %v1725_v52, %v628_v61  ;;  %v605_v0 = vpop.f32.mrf.mxu0 }
 0x109   : > { %v2333_v1 = vadd.f32 %v1726_v57, %v605_v0 }
 0x10b   : > { %705 = vmatpush.xpose.msra.mxu3 %v639_v58 }
 0x10c   : > { %v681_v60 = vpop.f32.mrf.mxu2 }
 0x10d   : > { %v682_v62 = vadd.f32 %v1725_v52, %v681_v60 }
 0x10e   : > { %706 = vmatmul.f32.vlgmr.msra.gmra.mxu3 %v2330_v59 }
 0x10f   : > { %724 = vmatpush.xpose.msrb.mxu3 %v682_v62  ;;  %990 = vmatpush.msrb.mxu0 %v682_v62 }
 0x110   : > { %1623 = vmatpush.msrb.mxu2 %v682_v62 }
 0x111   : > { %991 = vmatpush.msrb.mxu0 %v640_v63 }
 0x112   : > { %1624 = vmatpush.msrb.mxu2 %v640_v63 }
 0x113   : > { %725 = vmatpush.xpose.msrb.mxu3 %v640_v63 }
 0x116   : > { %726 = vmatmul.f32.vlgmr.msrb.gmra.mxu3 %v2333_v1 }
 0x117   : > { %949 = vmatpush.msra.mxu3 %v679_v55 }
 0x119   : > { %950 = vmatpush.msra.mxu3 %v639_v58 }
 0x191   : > { %v707_v2 = vpop.f32.mrf.mxu3 }
 0x192   : > { %v733_v3 = vsel %vm732_vm0, %v707_v2, -inf }
 0x193   : > { %734 = vmax.xlane.f32.xlu0 %v733_v3 }
 0x199   : > { %v727_v4 = vpop.f32.mrf.mxu3 }
 0x19a   : > { %v736_v5 = vsel %vm732_vm0, %v727_v4, -inf }
 0x19b   : > { %737 = vmax.xlane.f32.xlu0 %v736_v5 }
 0x206   : > { %v2340_v8 = vpop.xlane.xlu0 %734 }
 0x207   : > { %vm739_vm1 = vcmp.eq.f32.partialorder %v707_v2, %v2340_v8 }
 0x208   : > { %v741_v9 = vsel %vm739_vm1, %v2338_v7, 16 }
 0x209   : > { %v743_v10 = vsel %vm732_vm0, %v741_v9, 2147483647 }
 0x20a   : > { %v745_v11 = vshra.s32 %v743_v10, 16  ;;  %v744_v18 = vand.u32 65535, %v743_v10 }
 0x20c   : > { %v747_v12 = vcvt.s32.f32 %v745_v11  ;;  %v746_v20 = vcvt.s32.f32 %v744_v18 }
 0x20e   : > { %748 = vmin.xlane.f32.xlu1 %v747_v12  ;;  %v2345_v13 = vpop.xlane.xlu0 %737 }
 0x20f   : > { %vm740_vm2 = vcmp.eq.f32.partialorder %v727_v4, %v2345_v13 }
 0x210   : > { %v742_v14 = vsel %vm740_vm2, %v2338_v7, 16 }
 0x211   : > { %v758_v15 = vsel %vm732_vm0, %v742_v14, 2147483647 }
 0x212   : > { %v760_v16 = vshra.s32 %v758_v15, 16  ;;  %v759_v22 = vand.u32 65535, %v758_v15 }
 0x214   : > { %v762_v17 = vcvt.s32.f32 %v760_v16  ;;  %v761_v24 = vcvt.s32.f32 %v759_v22 }
 0x216   : > { %763 = vmin.xlane.f32.xlu1 %v762_v17 }
 0x281   : > { %v749_v19 = vpop.xlane.xlu1 %748 }
 0x282   : > { %vm750_vm3 = vcmp.eq.f32.partialorder %v747_v12, %v749_v19  ;;  %v755_v26 = vcvt.f32.s32 %v749_v19 }
 0x283   : > { %v751_v21 = vsel %vm750_vm3, %v746_v20, inf }
 0x284   : > { %752 = vmin.xlane.f32.xlu2 %v751_v21  ;;  %v756_v28 = vshll.u32 %v755_v26, 16 }
 0x289   : > { %v764_v23 = vpop.xlane.xlu1 %763 }
 0x28a   : > { %vm765_vm4 = vcmp.eq.f32.partialorder %v762_v17, %v764_v23  ;;  %v770_v31 = vcvt.f32.s32 %v764_v23 }
 0x28b   : > { %v766_v25 = vsel %vm765_vm4, %v761_v24, inf }
 0x28c   : > { %767 = vmin.xlane.f32.xlu2 %v766_v25  ;;  %v771_v37 = vshll.u32 %v770_v31, 16 }
 0x2f7   : > { %v753_v27 = vpop.xlane.xlu2 %752 }
 0x2f8   : > { %v754_v29 = vcvt.f32.s32 %v753_v27 }
 0x2fa   : > { %v757_v30 = vadd.s32 %v756_v28, %v754_v29 }
 0x2fc   : > { %vm773_vm5 = vcmp.eq.s32.totalorder %v2338_v7, %v757_v30 }
 0x2fd   : > { %v1599_v33 = vsel %vm773_vm5, 1.0, %v2067_v32  ;;  %v779_v34 = vsel %vm773_vm5, -inf, %v707_v2 }
 0x2fe   : > { %1607 = vmatmul.msk.f32.vlgmr.msra.gmra.mxu3 %vm732_vm0, %v1599_v33  ;;  %v781_v35 = vsel %vm732_vm0, %v779_v34, -inf }
 0x2ff   : > { %782 = vmax.xlane.f32.xlu0 %v781_v35  ;;  %v768_v36 = vpop.xlane.xlu2 %767 }
 0x300   : > { %v769_v38 = vcvt.f32.s32 %v768_v36 }
 0x302   : > { %v772_v39 = vadd.s32 %v771_v37, %v769_v38 }
 0x304   : > { %vm774_vm6 = vcmp.eq.s32.totalorder %v2338_v7, %v772_v39 }
 0x305   : > { %v1600_v40 = vsel %vm774_vm6, 1.0, %v2067_v32  ;;  %v780_v41 = vsel %vm774_vm6, -inf, %v727_v4 }
 0x306   : > { %1611 = vmatmul.msk.f32.vlgmr.msrb.gmra.mxu0 %vm732_vm0, %v1600_v40  ;;  %v784_v42 = vsel %vm732_vm0, %v780_v41, -inf }
 0x307   : > { %785 = vmax.xlane.f32.xlu1 %v784_v42 }
 0x372   : > { %v2358_v43 = vpop.xlane.xlu0 %782 }
 0x373   : > { %vm787_vm7 = vcmp.eq.f32.partialorder %v779_v34, %v2358_v43 }
 0x374   : > { %v789_v44 = vsel %vm787_vm7, %v2338_v7, 16 }
 0x375   : > { %v791_v45 = vsel %vm732_vm0, %v789_v44, 2147483647 }
 0x376   : > { %v793_v46 = vshra.s32 %v791_v45, 16  ;;  %v792_v53 = vand.u32 65535, %v791_v45 }
 0x378   : > { %v795_v47 = vcvt.s32.f32 %v793_v46  ;;  %v794_v55 = vcvt.s32.f32 %v792_v53 }
 0x37a   : > { %v2363_v48 = vpop.xlane.xlu1 %785  ;;  %796 = vmin.xlane.f32.xlu2 %v795_v47 }
 0x37b   : > { %vm788_vm8 = vcmp.eq.f32.partialorder %v780_v41, %v2363_v48 }
 0x37c   : > { %v790_v49 = vsel %vm788_vm8, %v2338_v7, 16 }
 0x37d   : > { %v806_v50 = vsel %vm732_vm0, %v790_v49, 2147483647 }
 0x37e   : > { %v808_v51 = vshra.s32 %v806_v50, 16  ;;  %v807_v57 = vand.u32 65535, %v806_v50 }
 0x380   : > { %v810_v52 = vcvt.s32.f32 %v808_v51  ;;  %v809_v60 = vcvt.s32.f32 %v807_v57 }
 0x382   : > { %811 = vmin.xlane.f32.xlu0 %v810_v52 }
 0x3ed   : > { %v797_v54 = vpop.xlane.xlu2 %796 }
 0x3ee   : > { %vm798_vm9 = vcmp.eq.f32.partialorder %v795_v47, %v797_v54  ;;  %v803_v62 = vcvt.f32.s32 %v797_v54 }
 0x3ef   : > { %v799_v56 = vsel %vm798_vm9, %v794_v55, inf  ;;  %v1013_v55 = vsub.f32 %v2358_v43, %v2340_v8 }
 0x3f0   : > { %800 = vmin.xlane.f32.xlu1 %v799_v56  ;;  %v804_v0 = vshll.u32 %v803_v62, 16  ;;  %v1005_v56 = vsub.f32 %v2340_v8, %v2340_v8 }
 0x3f5   : > { %v812_v58 = vpop.xlane.xlu0 %811 }
 0x3f6   : > { %vm813_vm10 = vcmp.eq.f32.partialorder %v810_v52, %v812_v58  ;;  %v818_v4 = vcvt.f32.s32 %v812_v58  ;;  %v1015_v58 = vmul.f32 0.088388346, %v1013_v55 }
 0x3f7   : > { %v814_v61 = vsel %vm813_vm10, %v809_v60, inf  ;;  %v1007_v60 = vmul.f32 0.088388346, %v1005_v56 }
 0x3f8   : > { %815 = vmin.xlane.f32.xlu2 %v814_v61  ;;  %v819_v11 = vshll.u32 %v818_v4, 16  ;;  %v1017_v62 = vmul.f32 1.442695, %v1015_v58 }
 0x3fa   : > { %1731 = vpow2.f32 %v1017_v62 }
 0x463   : > { %v801_v63 = vpop.xlane.xlu1 %800 }
 0x464   : > { %v802_v2 = vcvt.f32.s32 %v801_v63  ;;  %v1014_v63 = vsub.f32 %v2363_v48, %v2345_v13 }
 0x466   : > { %v805_v3 = vadd.s32 %v804_v0, %v802_v2  ;;  %v1009_v0 = vmul.f32 1.442695, %v1007_v60  ;;  %v1006_v2 = vsub.f32 %v2345_v13, %v2345_v13 }
 0x468   : > { %vm821_vm11 = vcmp.eq.s32.totalorder %v2338_v7, %v805_v3  ;;  %1733 = vpow2.f32 %v1009_v0 }
 0x469   : > { %v1601_v5 = vsel %vm821_vm11, 1.0, %v2067_v32  ;;  %v827_v6 = vsel %vm821_vm11, -inf, %v779_v34 }
 0x46a   : > { %1608 = vmatmul.msk.f32.gmra.mxu3 %vm732_vm0, %v1601_v5  ;;  %v829_v9 = vsel %vm732_vm0, %v827_v6, -inf  ;;  %v1016_v5 = vmul.f32 0.088388346, %v1014_v63 }
 0x46b   : > { %830 = vmax.xlane.f32.xlu0 %v829_v9  ;;  %v816_v10 = vpop.xlane.xlu2 %815  ;;  %v1008_v9 = vmul.f32 0.088388346, %v1006_v2 }
 0x46c   : > { %v817_v12 = vcvt.f32.s32 %v816_v10 }
 0x46e   : > { %v820_v14 = vadd.s32 %v819_v11, %v817_v12 }
 0x470   : > { %vm822_vm12 = vcmp.eq.s32.totalorder %v2338_v7, %v820_v14 }
 0x471   : > { %v1602_v15 = vsel %vm822_vm12, 1.0, %v2067_v32  ;;  %v828_v16 = vsel %vm822_vm12, -inf, %v780_v41 }
 0x472   : > { %1612 = vmatmul.msk.f32.vlgmr.msrb.gmra.mxu2 %vm732_vm0, %v1602_v15  ;;  %v832_v17 = vsel %vm732_vm0, %v828_v16, -inf  ;;  %v1019_v15 = vmul.f32 1.442695, %v1016_v5 }
 0x473   : > { %833 = vmax.xlane.f32.xlu1 %v832_v17  ;;  %v1011_v17 = vmul.f32 1.442695, %v1008_v9 }
 0x4de   : > { %v831_v18 = vpop.xlane.xlu0 %830 }
 0x4df   : > { %vm835_vm13 = vcmp.eq.f32.partialorder %v827_v6, %v831_v18  ;;  %v1021_v57 = vsub.f32 %v831_v18, %v2340_v8 }
 0x4e0   : > { %v837_v19 = vsel %vm835_vm13, %v2338_v7, 16 }
 0x4e1   : > { %v839_v20 = vsel %vm732_vm0, %v837_v19, 2147483647  ;;  %v1023_v61 = vmul.f32 0.088388346, %v1021_v57  ;;  %v1732_v19 = vpop.eup %1731 }
 0x4e2   : > { %v841_v21 = vshra.s32 %v839_v20, 16  ;;  %v840_v28 = vand.u32 65535, %v839_v20 }
 0x4e3   : > { %v1025_v3 = vmul.f32 1.442695, %v1023_v61 }
 0x4e4   : > { %v843_v22 = vcvt.s32.f32 %v841_v21  ;;  %v842_v30 = vcvt.s32.f32 %v840_v28 }
 0x4e5   : > { %1735 = vpow2.f32 %v1025_v3 }
 0x4e6   : > { %v2378_v23 = vpop.xlane.xlu1 %833  ;;  %844 = vmin.xlane.f32.xlu2 %v843_v22 }
 0x4e7   : > { %vm836_vm14 = vcmp.eq.f32.partialorder %v828_v16, %v2378_v23  ;;  %v1022_v43 = vsub.f32 %v2378_v23, %v2345_v13 }
 0x4e8   : > { %v838_v24 = vsel %vm836_vm14, %v2338_v7, 16 }
 0x4e9   : > { %v854_v25 = vsel %vm732_vm0, %v838_v24, 2147483647  ;;  %v1024_v48 = vmul.f32 0.088388346, %v1022_v43 }
 0x4ea   : > { %v856_v26 = vshra.s32 %v854_v25, 16  ;;  %v855_v33 = vand.u32 65535, %v854_v25 }
 0x4eb   : > { %v1027_v20 = vmul.f32 1.442695, %v1024_v48 }
 0x4ec   : > { %v858_v27 = vcvt.s32.f32 %v856_v26  ;;  %v857_v35 = vcvt.s32.f32 %v855_v33 }
 0x4ee   : > { %859 = vmin.xlane.f32.xlu0 %v858_v27 }
 0x559   : > { %v845_v29 = vpop.xlane.xlu2 %844 }
 0x55a   : > { %vm846_vm15 = vcmp.eq.f32.partialorder %v843_v22, %v845_v29  ;;  %v851_v37 = vcvt.f32.s32 %v845_v29 }
 0x55b   : > { %v847_v31 = vsel %vm846_vm15, %v842_v30, inf }
 0x55c   : > { %848 = vmin.xlane.f32.xlu1 %v847_v31  ;;  %v852_v39 = vshll.u32 %v851_v37, 16 }
 0x561   : > { %v860_v34 = vpop.xlane.xlu0 %859 }
 0x562   : > { %vm861_vm1 = vcmp.eq.f32.partialorder %v858_v27, %v860_v34  ;;  %v866_v42 = vcvt.f32.s32 %v860_v34 }
 0x563   : > { %v862_v36 = vsel %vm861_vm1, %v857_v35, inf }
 0x564   : > { %863 = vmin.xlane.f32.xlu2 %v862_v36  ;;  %v867_v49 = vshll.u32 %v866_v42, 16  ;;  %v2432_v42 = vpop.f32.mrf.mxu3 }
 0x56c   : > { %v2437_v0 = vpop.f32.mrf.mxu3 }
 0x5cf   : > { %v849_v38 = vpop.xlane.xlu1 %848 }
 0x5d0   : > { %v850_v40 = vcvt.f32.s32 %v849_v38 }
 0x5d2   : > { %v853_v41 = vadd.s32 %v852_v39, %v850_v40 }
 0x5d4   : > { %vm869_vm2 = vcmp.eq.s32.totalorder %v2338_v7, %v853_v41 }
 0x5d5   : > { %v1603_v44 = vsel %vm869_vm2, 1.0, %v2067_v32  ;;  %v875_v45 = vsel %vm869_vm2, -inf, %v827_v6 }
 0x5d6   : > { %1609 = vmatmul.msk.f32.gmra.mxu3 %vm732_vm0, %v1603_v44  ;;  %v877_v46 = vsel %vm732_vm0, %v875_v45, -inf }
 0x5d7   : > { %878 = vmax.xlane.f32.xlu0 %v877_v46  ;;  %v864_v47 = vpop.xlane.xlu2 %863 }
 0x5d8   : > { %v865_v50 = vcvt.f32.s32 %v864_v47 }
 0x5da   : > { %v868_v51 = vadd.s32 %v867_v49, %v865_v50 }
 0x5dc   : > { %vm870_vm3 = vcmp.eq.s32.totalorder %v2338_v7, %v868_v51 }
 0x5dd   : > { %v1604_v52 = vsel %vm870_vm3, 1.0, %v2067_v32  ;;  %v876_v53 = vsel %vm870_vm3, -inf, %v828_v16 }
 0x5de   : > { %1613 = vmatmul.msk.f32.gmra.mxu2 %vm732_vm0, %v1604_v52  ;;  %v880_v54 = vsel %vm732_vm0, %v876_v53, -inf }
 0x5df   : > { %881 = vmax.xlane.f32.xlu1 %v880_v54 }
 0x64a   : > { %v879_v4 = vpop.xlane.xlu0 %878 }
 0x64b   : > { %vm883_vm4 = vcmp.eq.f32.partialorder %v875_v45, %v879_v4  ;;  %v1029_v6 = vsub.f32 %v879_v4, %v2340_v8  ;;  %v2410_v8 = vpop.eup %1733 }
 0x64c   : > { %v885_v10 = vsel %vm883_vm4, %v2338_v7, 16  ;;  %v2413_v22 = vpop.eup %1735  ;;  %v1037_v24 = vadd.f32 %v2410_v8, %v1732_v19 }
 0x64d   : > { %v1031_v11 = vmul.f32 0.088388346, %v1029_v6  ;;  %v2405_v12 = vsel %vm732_vm0, %v885_v10, 2147483647 }
 0x64e   : > { %v889_v14 = vshra.s32 %v2405_v12, 16  ;;  %v1039_v28 = vadd.f32 %v2413_v22, %v1037_v24  ;;  %v2453_v24 = vpop.f32.mrf.mxu2 }
 0x64f   : > { %v1033_v16 = vmul.f32 1.442695, %v1031_v11 }
 0x650   : > { %v2408_v18 = vcvt.s32.f32 %v889_v14 }
 0x651   : > { %1737 = vpow2.f32 %v1033_v16 }
 0x652   : > { %v882_v21 = vpop.xlane.xlu1 %881  ;;  %892 = vmin.xlane.f32.xlu2 %v2408_v18  ;;  %1739 = vpow2.f32 %v1019_v15  ;;  %v2448_v15 = vpop.f32.mrf.mxu0 }
 0x653   : > { %vm884_vm5 = vcmp.eq.f32.partialorder %v876_v53, %v882_v21  ;;  %v1030_v23 = vsub.f32 %v882_v21, %v2345_v13  ;;  %1741 = vpow2.f32 %v1011_v17 }
 0x654   : > { %v886_v25 = vsel %vm884_vm5, %v2338_v7, 16  ;;  %1743 = vpow2.f32 %v1027_v20 }
 0x655   : > { %v1032_v26 = vmul.f32 0.088388346, %v1030_v23  ;;  %v2419_v27 = vsel %vm732_vm0, %v886_v25, 2147483647 }
 0x656   : > { %v904_v29 = vshra.s32 %v2419_v27, 16 }
 0x657   : > { %v1738_v30 = vpop.eup %1737  ;;  %v1035_v31 = vmul.f32 1.442695, %v1032_v26 }
 0x658   : > { %v1041_v33 = vadd.f32 %v1738_v30, %v1039_v28  ;;  %v2423_v34 = vcvt.s32.f32 %v904_v29  ;;  %v2425_v13 = vpop.eup %1739 }
 0x659   : > { %1745 = vpow2.f32 %v1035_v31  ;;  %v1742_v35 = vpop.eup %1741  ;;  %v888_v31 = vand.u32 65535, %v2405_v12  ;;  %v2467_v12 = vpop.f32.mrf.mxu3 }
 0x65a   : > { %1747 = vrcp.f32 %v1041_v33  ;;  %907 = vmin.xlane.f32.xlu0 %v2423_v34  ;;  %v2428_v36 = vpop.eup %1743  ;;  %v1038_v37 = vadd.f32 %v1742_v35, %v2425_v13  ;;  %v1054_v46 = vand.u32 2147483648, %v1041_v33  ;;  %v1052_v49 = vand.u32 2147483647, %v1041_v33 }
 0x65b   : > { %vm1048_vm7 = vweird.f32 %v1041_v33 }
 0x65c   : > { %v1040_v38 = vadd.f32 %v2428_v36, %v1038_v37  ;;  %v1055_v52 = vor.u32 1.1754944e-38, %v1054_v46  ;;  %vm1053_vm9 = vcmp.eq.f32.partialorder %v1052_v49, 8.507059e+37 }
 0x65f   : > { %v1746_v39 = vpop.eup %1745 }
 0x660   : > { %v1748_v40 = vpop.eup %1747  ;;  %v1042_v41 = vadd.f32 %v1746_v39, %v1040_v38  ;;  %v890_v38 = vcvt.s32.f32 %v888_v31 }
 0x661   : > { %v1044_v44 = vmul.f32 %v1748_v40, %v1041_v33  ;;  %vm1049_vm6 = vweird.f32 %v1748_v40  ;;  %v2455_v25 = vpop.f32.mrf.mxu2 }
 0x662   : > { %1749 = vrcp.f32 %v1042_v41  ;;  %1093 = vadd.xlane.f32.xlu0 %v2432_v42  ;;  %vm1050_vm8 = vmor %vm1048_vm7, %vm1049_vm6  ;;  %v1069_v58 = vand.u32 2147483648, %v1042_v41  ;;  %v1067_v62 = vand.u32 2147483647, %v1042_v41  ;;  %vm1063_vm11 = vweird.f32 %v1042_v41 }
 0x663   : > { %v1045_v45 = vsub.f32 1.0, %v1044_v44 }
 0x664   : > { %v1070_v4 = vor.u32 1.1754944e-38, %v1069_v58  ;;  %vm1068_vm13 = vcmp.eq.f32.partialorder %v1067_v62, 8.507059e+37 }
 0x665   : > { %v1046_v47 = vmul.f32 %v1748_v40, %v1045_v45 }
 0x667   : > { %v1047_v50 = vadd.f32 %v1748_v40, %v1046_v47 }
 0x668   : > { %v1750_v51 = vpop.eup %1749 }
 0x669   : > { %v1051_v53 = vsel %vm1050_vm8, %v1748_v40, %v1047_v50  ;;  %v1059_v54 = vmul.f32 %v1750_v51, %v1042_v41  ;;  %vm1064_vm10 = vweird.f32 %v1750_v51 }
 0x66a   : > { %v1056_v55 = vsel %vm1053_vm9, %v1055_v52, %v1051_v53  ;;  %vm1065_vm12 = vmor %vm1063_vm11, %vm1064_vm10 }
 0x66b   : > { %v1060_v56 = vsub.f32 1.0, %v1059_v54  ;;  %v1075_v57 = vmul.f32 %v1732_v19, %v1056_v55  ;;  %v2435_v60 = vmul.f32 %v1738_v30, %v1056_v55  ;;  %v1073_v26 = vmul.f32 %v2410_v8, %v1056_v55 }
 0x66c   : > { %v903_v8 = vand.u32 65535, %v2419_v27 }
 0x66d   : > { %v1061_v61 = vmul.f32 %v1750_v51, %v1060_v56  ;;  %v1103_v63 = vsub.f32 1.0, %v1075_v57  ;;  %v1107_v43 = vmul.f32 %v1075_v57, %v2437_v0  ;;  %v1081_v28 = vsub.f32 1.0, %v1073_v26 }
 0x66e   : > { %v1085_v30 = vmul.f32 %v1073_v26, %v2432_v42  ;;  %v905_v46 = vcvt.s32.f32 %v903_v8 }
 0x66f   : > { %v1062_v2 = vadd.f32 %v1750_v51, %v1061_v61  ;;  %v1105_v3 = vmul.f32 %v1103_v63, %v2330_v59  ;;  %v1083_v29 = vmul.f32 %v1081_v28, %v2330_v59 }
 0x671   : > { %v1066_v5 = vsel %vm1065_vm12, %v1750_v51, %v1062_v2  ;;  %v1109_v6 = vadd.f32 %v1107_v43, %v1105_v3  ;;  %v1087_v33 = vadd.f32 %v1085_v30, %v1083_v29 }
 0x672   : > { %v2441_v9 = vsel %vm1068_vm13, %v1070_v4, %v1066_v5 }
 0x673   : > { %v1111_v10 = vadd.f32 %v1109_v6, %v2330_v59  ;;  %v1074_v48 = vmul.f32 %v1742_v35, %v2441_v9  ;;  %v2446_v11 = vmul.f32 %v1746_v39, %v2441_v9  ;;  %v1077_v35 = vmul.f32 %v2413_v22, %v1056_v55 }
 0x674   : > { %v1089_v39 = vadd.f32 %v1087_v33, %v2330_v59  ;;  %v1076_v27 = vmul.f32 %v2425_v13, %v2441_v9 }
 0x675   : > { %1751 = vtanh.f32 %v1111_v10  ;;  %v1082_v14 = vsub.f32 1.0, %v1074_v48  ;;  %v1086_v17 = vmul.f32 %v1074_v48, %v2448_v15  ;;  %v1125_v41 = vsub.f32 1.0, %v1077_v35 }
 0x676   : > { %v1129_v47 = vmul.f32 %v1077_v35, %v2467_v12  ;;  %v1104_v51 = vsub.f32 1.0, %v1076_v27  ;;  %v1108_v53 = vmul.f32 %v1076_v27, %v2453_v24  ;;  %v1078_v10 = vmul.f32 %v2428_v36, %v2441_v9 }
 0x677   : > { %v1084_v16 = vmul.f32 %v1082_v14, %v2333_v1  ;;  %v1127_v44 = vmul.f32 %v1125_v41, %v2330_v59  ;;  %v1147_v48 = vsub.f32 1.0, %v2435_v60 }
 0x678   : > { %v1126_v14 = vsub.f32 1.0, %v1078_v10 }
 0x679   : > { %v1088_v19 = vadd.f32 %v1086_v17, %v1084_v16  ;;  %v1149_v17 = vmul.f32 %v1147_v48, %v2330_v59 }
 0x67b   : > { %v1752_v20 = vpop.eup %1751  ;;  %v1090_v21 = vadd.f32 %v1088_v19, %v2333_v1 }
 0x67c   : > { %1119 = vadd.xlane.f32.xlu0 %v1752_v20  ;;  %v1130_v20 = vmul.f32 %v1078_v10, %v2455_v25 }
 0x67d   : > { %1753 = vtanh.f32 %v1090_v21  ;;  %v1148_v21 = vsub.f32 1.0, %v2446_v11 }
 0x67e   : > { %1755 = vtanh.f32 %v1089_v39 }
 0x67f   : > { %v1150_v26 = vmul.f32 %v1148_v21, %v2333_v1 }
 0x683   : > { %v1754_v23 = vpop.eup %1753 }
 0x684   : > { %1099 = vadd.xlane.f32.xlu0 %v1754_v23  ;;  %v1756_v22 = vpop.eup %1755 }
 0x68c   : > { %1139 = vadd.xlane.f32.xlu0 %v2455_v25 }
 0x6c5   : > { %v893_v37 = vpop.xlane.xlu2 %892 }
 0x6c6   : > { %vm894_vm14 = vcmp.eq.f32.partialorder %v2408_v18, %v893_v37  ;;  %v1131_v18 = vadd.f32 %v1129_v47, %v1127_v44  ;;  %v899_v56 = vcvt.f32.s32 %v893_v37  ;;  %v1334_v47 = vld [vmem:[#allocation12 + $0x78] sm:$0xff] }
 0x6c7   : > { %v895_v40 = vsel %vm894_vm14, %v890_v38, inf  ;;  %1338 = vmatpush.msrb.mxu1 %v1334_v47  ;;  %v1323_v47 = vld [vmem:[#allocation12 + $0x20] sm:$0xff] }
 0x6c8   : > { %896 = vmin.xlane.f32.xlu1 %v895_v40  ;;  %v1133_v50 = vadd.f32 %v1131_v18, %v2330_v59  ;;  %v900_v58 = vshll.u32 %v899_v56, 16  ;;  %v1285_v18 = vld [vmem:[#allocation11 + $0x70] sm:$0xff]  ;;  %v1331_v56 = vld [vmem:[#allocation12 + $0x60] sm:$0xff] }
 0x6ca   : > { %1757 = vtanh.f32 %v1133_v50  ;;  %v1333_v50 = vld [vmem:[#allocation12 + $0x70] sm:$0xff] }
 0x6cb   : > { %1339 = vmatpush.msrb.mxu1 %v1333_v50  ;;  %v1274_v50 = vld [vmem:[#allocation11 + $0x18] sm:$0xff] }
 0x6cd   : > { %v908_v45 = vpop.xlane.xlu0 %907 }
 0x6ce   : > { %vm909_vm15 = vcmp.eq.f32.partialorder %v2423_v34, %v908_v45  ;;  %v1106_v34 = vmul.f32 %v1104_v51, %v2333_v1  ;;  %v914_v63 = vcvt.f32.s32 %v908_v45 }
 0x6cf   : > { %v910_v49 = vsel %vm909_vm15, %v905_v46, inf }
 0x6d0   : > { %1097 = vadd.xlane.f32.xlu1 %v1756_v22  ;;  %911 = vmin.xlane.f32.xlu2 %v910_v49  ;;  %v1758_v52 = vpop.eup %1757  ;;  %v1110_v54 = vadd.f32 %v1108_v53, %v1106_v34  ;;  %v915_v43 = vshll.u32 %v914_v63, 16  ;;  %v1286_v22 = vld [vmem:[#allocation11 + $0x78] sm:$0xff]  ;;  %v1284_v34 = vld [vmem:[#allocation11 + $0x68] sm:$0xff] }
 0x6d1   : > { %1290 = vmatpush.msrb.mxu3 %v1286_v22  ;;  %v1330_v63 = vld [vmem:[#allocation12 + $0x58] sm:$0xff] }
 0x6d2   : > { %v1112_v55 = vadd.f32 %v1110_v54, %v2333_v1 }
 0x6d3   : > { %1291 = vmatpush.msrb.mxu3 %v1285_v18 }
 0x6d4   : > { %1759 = vtanh.f32 %v1112_v55 }
 0x6d5   : > { %v1094_v37 = vpop.xlane.xlu0 %1093  ;;  %1292 = vmatpush.msrb.mxu3 %v1284_v34 }
 0x6d8   : > { %1137 = vadd.xlane.f32.xlu1 %v2467_v12  ;;  %1115 = vadd.xlane.f32.xlu2 %v2437_v0 }
 0x6da   : > { %v1760_v13 = vpop.eup %1759 }
 0x6e0   : > { %1117 = vadd.xlane.f32.xlu1 %v2453_v24  ;;  %1141 = vadd.xlane.f32.xlu2 %v1758_v52  ;;  %v1332_v52 = vld [vmem:[#allocation12 + $0x68] sm:$0xff] }
 0x6e1   : > { %1340 = vmatpush.msrb.mxu1 %v1332_v52  ;;  %v1322_v52 = vld [vmem:[#allocation12 + $0x18] sm:$0xff] }
 0x6e3   : > { %1341 = vmatpush.msrb.mxu1 %v1331_v56  ;;  %v1321_v56 = vld [vmem:[#allocation12 + $0x10] sm:$0xff] }
 0x6e5   : > { %1342 = vmatpush.msrb.mxu1 %v1330_v63  ;;  %v1320_v63 = vld [vmem:[#allocation12 + $0x8] sm:$0xff] }
 0x6e8   : > { %1095 = vadd.xlane.f32.xlu2 %v2448_v15 }
 0x6ef   : > { %v1120_v38 = vpop.xlane.xlu0 %1119 }
 0x6f0   : > { %1121 = vadd.xlane.f32.xlu2 %v1760_v13  ;;  %v1283_v13 = vld [vmem:[#allocation11 + $0x60] sm:$0xff] }
 0x6f1   : > { %1293 = vmatpush.msrb.mxu3 %v1283_v13 }
 0x73b   : > { %v897_v57 = vpop.xlane.xlu1 %896 }
 0x73c   : > { %v898_v61 = vcvt.f32.s32 %v897_v57 }
 0x73e   : > { %v901_v62 = vadd.s32 %v900_v58, %v898_v61 }
 0x740   : > { %vm917_vm1 = vcmp.eq.s32.totalorder %v2338_v7, %v901_v62  ;;  %v1282_v62 = vld [vmem:[#allocation11 + $0x58] sm:$0xff] }
 0x741   : > { %v1605_v2 = vsel %vm917_vm1, 1.0, %v2067_v32  ;;  %1294 = vmatpush.msrb.mxu3 %v1282_v62 }
 0x742   : > { %1610 = vmatmul.msk.f32.gmra.mxu3 %vm732_vm0, %v1605_v2 }
 0x743   : > { %v912_v3 = vpop.xlane.xlu2 %911  ;;  %v1098_v39 = vpop.xlane.xlu1 %1097 }
 0x744   : > { %v913_v4 = vcvt.f32.s32 %v912_v3  ;;  %v1101_v27 = vmul.f32 %v1098_v39, %v1094_v37  ;;  %v1281_v3 = vld [vmem:[#allocation11 + $0x50] sm:$0xff] }
 0x745   : > { %1295 = vmatpush.msrb.mxu3 %v1281_v3  ;;  %v1325_v39 = vld [vmem:[#allocation12 + $0x30] sm:$0xff]  ;;  %v1319_v3 = vld [vmem:[#allocation12] sm:$0xff] }
 0x746   : > { %v916_v5 = vadd.s32 %v915_v43, %v913_v4  ;;  %v1329_v43 = vld [vmem:[#allocation12 + $0x50] sm:$0xff] }
 0x747   : > { %1343 = vmatpush.msrb.mxu1 %v1329_v43 }
 0x748   : > { %vm918_vm2 = vcmp.eq.s32.totalorder %v2338_v7, %v916_v5  ;;  %v1128_v7 = vmul.f32 %v1126_v14, %v2333_v1  ;;  %v1280_v14 = vld [vmem:[#allocation11 + $0x48] sm:$0xff] }
 0x749   : > { %v1606_v6 = vsel %vm918_vm2, 1.0, %v2067_v32  ;;  %1296 = vmatpush.msrb.mxu3 %v1280_v14 }
 0x74a   : > { %1614 = vmatmul.msk.f32.gmra.mxu2 %vm732_vm0, %v1606_v6  ;;  %v1132_v9 = vadd.f32 %v1130_v20, %v1128_v7 }
 0x74b   : > { %v1116_v40 = vpop.xlane.xlu2 %1115  ;;  %v1138_v41 = vpop.xlane.xlu1 %1137 }
 0x74c   : > { %v1134_v28 = vadd.f32 %v1132_v9, %v2333_v1  ;;  %v1123_v49 = vmul.f32 %v1120_v38, %v1116_v40  ;;  %v1279_v9 = vld [vmem:[#allocation11 + $0x40] sm:$0xff]  ;;  %v1276_v40 = vld [vmem:[#allocation11 + $0x28] sm:$0xff] }
 0x74d   : > { %1297 = vmatpush.msrb.mxu3 %v1279_v9 }
 0x74e   : > { %v1169_v53 = vmax.f32 %v1101_v27, %v1123_v49 }
 0x753   : > { %v1142_v8 = vpop.xlane.xlu2 %1141  ;;  %v1118_v45 = vpop.xlane.xlu1 %1117 }
 0x754   : > { %v1145_v51 = vmul.f32 %v1142_v8, %v1138_v41  ;;  %v1324_v41 = vld [vmem:[#allocation12 + $0x28] sm:$0xff]  ;;  %v1275_v8 = vld [vmem:[#allocation11 + $0x20] sm:$0xff] }
 0x756   : > { %v1171_v57 = vmax.f32 %v1169_v53, %v1145_v51 }
 0x75b   : > { %v1096_v46 = vpop.xlane.xlu2 %1095 }
 0x763   : > { %v1122_v61 = vpop.xlane.xlu2 %1121 }
 0x764   : > { %v1124_v4 = vmul.f32 %v1122_v61, %v1118_v45  ;;  %v1272_v61 = vld [vmem:[#allocation11 + $0x8] sm:$0xff] }
 0x7c5   : > { %v2490_v16 = vpop.f32.mrf.mxu3 }
 0x7c6   : > { %v1151_v19 = vmul.f32 %v2435_v60, %v2490_v16  ;;  %1159 = vadd.xlane.f32.xlu0 %v2490_v16 }
 0x7c8   : > { %v1153_v32 = vadd.f32 %v1151_v19, %v1149_v17  ;;  %v1328_v17 = vld [vmem:[#allocation12 + $0x48] sm:$0xff] }
 0x7c9   : > { %1344 = vmatpush.msrb.mxu1 %v1328_v17 }
 0x7ca   : > { %v1155_v36 = vadd.f32 %v1153_v32, %v2330_v59 }
 0x7cc   : > { %1761 = vtanh.f32 %v1155_v36 }
 0x7cd   : > { %v2500_v23 = vpop.f32.mrf.mxu2  ;;  %1763 = vtanh.f32 %v1134_v28 }
 0x7ce   : > { %v1152_v60 = vmul.f32 %v2446_v11, %v2500_v23  ;;  %1161 = vadd.xlane.f32.xlu2 %v2500_v23  ;;  %v1100_v11 = vpop.xlane.xlu0 %1099 }
 0x7cf   : > { %v1102_v19 = vmul.f32 %v1100_v11, %v1096_v46 }
 0x7d0   : > { %v1154_v29 = vadd.f32 %v1152_v60, %v1150_v26  ;;  %v1327_v26 = vld [vmem:[#allocation12 + $0x40] sm:$0xff] }
 0x7d1   : > { %v1170_v60 = vmax.f32 %v1102_v19, %v1124_v4  ;;  %1345 = vmatpush.msrb.mxu1 %v1327_v26 }
 0x7d2   : > { %v1762_v30 = vpop.eup %1761  ;;  %v1156_v31 = vadd.f32 %v1154_v29, %v2333_v1 }
 0x7d3   : > { %1163 = vadd.xlane.f32.xlu1 %v1762_v30  ;;  %v1764_v33 = vpop.eup %1763 }
 0x7d4   : > { %1765 = vtanh.f32 %v1156_v31  ;;  %v1278_v31 = vld [vmem:[#allocation11 + $0x38] sm:$0xff] }
 0x7d5   : > { %1298 = vmatpush.msrb.mxu3 %v1278_v31 }
 0x7d6   : > { %v1140_v44 = vpop.xlane.xlu0 %1139 }
 0x7da   : > { %v1766_v35 = vpop.eup %1765 }
 0x7db   : > { %1143 = vadd.xlane.f32.xlu1 %v1764_v33  ;;  %1165 = vadd.xlane.f32.xlu0 %v1766_v35  ;;  %v1326_v33 = vld [vmem:[#allocation12 + $0x38] sm:$0xff]  ;;  %v1277_v35 = vld [vmem:[#allocation11 + $0x30] sm:$0xff] }
 0x7dc   : > { %1346 = vmatpush.msrb.mxu1 %v1326_v33  ;;  %1299 = vmatpush.msrb.mxu3 %v1277_v35 }
 0x7de   : > { %1347 = vmatpush.msrb.mxu1 %v1325_v39  ;;  %1300 = vmatpush.msrb.mxu3 %v1276_v40 }
 0x7e0   : > { %1348 = vmatpush.msrb.mxu1 %v1324_v41  ;;  %1301 = vmatpush.msrb.mxu3 %v1275_v8 }
 0x7e2   : > { %1349 = vmatpush.msrb.mxu1 %v1323_v47  ;;  %1302 = vmatpush.msrb.mxu3 %v1274_v50 }
 0x7e4   : > { %1350 = vmatpush.msrb.mxu1 %v1322_v52 }
 0x7e6   : > { %1351 = vmatpush.msrb.mxu1 %v1321_v56 }
 0x7e8   : > { %1352 = vmatpush.msrb.mxu1 %v1320_v63 }
 0x7ea   : > { %1353 = vmatpush.msrb.mxu1 %v1319_v3 }
 0x839   : > { %v1160_v54 = vpop.xlane.xlu0 %1159 }
 0x841   : > { %v1162_v29 = vpop.xlane.xlu2 %1161 }
 0x846   : > { %v1164_v55 = vpop.xlane.xlu1 %1163 }
 0x847   : > { %v1167_v58 = vmul.f32 %v1164_v55, %v1160_v54  ;;  %v1273_v55 = vld [vmem:[#allocation11 + $0x10] sm:$0xff] }
 0x848   : > { %1303 = vmatpush.msrb.mxu3 %v1273_v55  ;;  %v1793_v55 = vld [vmem:[%s2294_s13] sm:$0xff] }
 0x849   : > { %v1173_v2 = vmax.f32 %v1171_v57, %v1167_v58 }
 0x84a   : > { %1304 = vmatpush.msrb.mxu3 %v1272_v61 }
 0x84b   : > { %v1175_v5 = vsub.f32 %v1101_v27, %v1173_v2  ;;  %v1181_v6 = vsub.f32 %v1123_v49, %v1173_v2  ;;  %v1187_v10 = vsub.f32 %v1145_v51, %v1173_v2  ;;  %v1193_v48 = vsub.f32 %v1167_v58, %v1173_v2  ;;  %v1271_v2 = vld [vmem:[#allocation11] sm:$0xff] }
 0x84c   : > { %1305 = vmatpush.msrb.mxu3 %v1271_v2 }
 0x84d   : > { %v1177_v7 = vmul.f32 1.442695, %v1175_v5  ;;  %v1183_v32 = vmul.f32 1.442695, %v1181_v6  ;;  %v1189_v20 = vmul.f32 1.442695, %v1187_v10 }
 0x84e   : > { %v1144_v21 = vpop.xlane.xlu1 %1143  ;;  %v1166_v36 = vpop.xlane.xlu0 %1165  ;;  %v1195_v30 = vmul.f32 1.442695, %v1193_v48 }
 0x84f   : > { %1767 = vpow2.f32 %v1177_v7  ;;  %v1146_v28 = vmul.f32 %v1144_v21, %v1140_v44  ;;  %v1168_v38 = vmul.f32 %v1166_v36, %v1162_v29 }
 0x850   : > { %1769 = vpow2.f32 %v1183_v32 }
 0x851   : > { %v1172_v37 = vmax.f32 %v1170_v60, %v1146_v28  ;;  %1771 = vpow2.f32 %v1189_v20 }
 0x852   : > { %1773 = vpow2.f32 %v1195_v30 }
 0x853   : > { %v1174_v11 = vmax.f32 %v1172_v37, %v1168_v38 }
 0x855   : > { %v2508_v44 = vpop.eup %1767  ;;  %v1176_v45 = vsub.f32 %v1102_v19, %v1174_v11  ;;  %v1182_v46 = vsub.f32 %v1124_v4, %v1174_v11  ;;  %v1188_v22 = vsub.f32 %v1146_v28, %v1174_v11  ;;  %v1194_v18 = vsub.f32 %v1168_v38, %v1174_v11 }
 0x856   : > { %v1770_v49 = vpop.eup %1769 }
 0x857   : > { %v1199_v27 = vadd.f32 %v1770_v49, %v2508_v44  ;;  %v1179_v51 = vmul.f32 1.442695, %v1176_v45  ;;  %v1185_v34 = vmul.f32 1.442695, %v1182_v46  ;;  %v1772_v53 = vpop.eup %1771  ;;  %v1191_v54 = vmul.f32 1.442695, %v1188_v22 }
 0x858   : > { %v1774_v57 = vpop.eup %1773  ;;  %v1197_v58 = vmul.f32 1.442695, %v1194_v18 }
 0x859   : > { %v1201_v13 = vadd.f32 %v1772_v53, %v1199_v27  ;;  %1775 = vpow2.f32 %v1179_v51 }
 0x85a   : > { %1777 = vpow2.f32 %v1185_v34 }
 0x85b   : > { %v1203_v62 = vadd.f32 %v1774_v57, %v1201_v13  ;;  %1779 = vpow2.f32 %v1191_v54 }
 0x85d   : > { %1781 = vrcp.f32 %v1203_v62  ;;  %v1216_v32 = vand.u32 2147483648, %v1203_v62  ;;  %v1214_v21 = vand.u32 2147483647, %v1203_v62  ;;  %vm1210_vm3 = vweird.f32 %v1203_v62 }
 0x85e   : > { %1783 = vpow2.f32 %v1197_v58 }
 0x85f   : > { %v1776_v43 = vpop.eup %1775  ;;  %v1217_v9 = vor.u32 1.1754944e-38, %v1216_v32  ;;  %vm1215_vm5 = vcmp.eq.f32.partialorder %v1214_v21, 8.507059e+37 }
 0x860   : > { %v1778_v4 = vpop.eup %1777 }
 0x861   : > { %v1200_v5 = vadd.f32 %v1778_v4, %v1776_v43  ;;  %v1780_v6 = vpop.eup %1779 }
 0x863   : > { %v1782_v10 = vpop.eup %1781  ;;  %v1202_v48 = vadd.f32 %v1780_v6, %v1200_v5 }
 0x864   : > { %v1784_v14 = vpop.eup %1783  ;;  %v1206_v17 = vmul.f32 %v1782_v10, %v1203_v62  ;;  %vm1211_vm0 = vweird.f32 %v1782_v10 }
 0x865   : > { %v1204_v19 = vadd.f32 %v1784_v14, %v1202_v48  ;;  %vm1212_vm4 = vmor %vm1210_vm3, %vm1211_vm0 }
 0x866   : > { %v1207_v7 = vsub.f32 1.0, %v1206_v17 }
 0x867   : > { %1785 = vrcp.f32 %v1204_v19  ;;  %v1229_v40 = vand.u32 2147483647, %v1204_v19  ;;  %v1231_v11 = vand.u32 2147483648, %v1204_v19  ;;  %vm1225_vm7 = vweird.f32 %v1204_v19 }
 0x868   : > { %v1208_v20 = vmul.f32 %v1782_v10, %v1207_v7 }
 0x869   : > { %v1232_v47 = vor.u32 1.1754944e-38, %v1231_v11  ;;  %vm1230_vm9 = vcmp.eq.f32.partialorder %v1229_v40, 8.507059e+37 }
 0x86a   : > { %v1209_v36 = vadd.f32 %v1782_v10, %v1208_v20 }
 0x86c   : > { %v1213_v26 = vsel %vm1212_vm4, %v1782_v10, %v1209_v36 }
 0x86d   : > { %v1786_v60 = vpop.eup %1785  ;;  %v1218_v28 = vsel %vm1215_vm5, %v1217_v9, %v1213_v26 }
 0x86e   : > { %v1235_v29 = vmul.f32 %v2508_v44, %v1218_v28  ;;  %v1241_v30 = vmul.f32 %v1770_v49, %v1218_v28  ;;  %v1221_v31 = vmul.f32 %v1786_v60, %v1204_v19  ;;  %v1247_v33 = vmul.f32 %v1772_v53, %v1218_v28 }
 0x86f   : > { %v1253_v35 = vmul.f32 %v1774_v57, %v1218_v28  ;;  %vm1226_vm6 = vweird.f32 %v1786_v60 }
 0x870   : > { %v1222_v37 = vsub.f32 1.0, %v1221_v31  ;;  %v1237_v38 = vmul.f32 %v1235_v29, %v2432_v42  ;;  %v1243_v39 = vmul.f32 %v1241_v30, %v2437_v0  ;;  %v1249_v8 = vmul.f32 %v1247_v33, %v2467_v12  ;;  %vm1227_vm8 = vmor %vm1225_vm7, %vm1226_vm6 }
 0x871   : > { %v1255_v46 = vmul.f32 %v1253_v35, %v2490_v16  ;;  %v2068_v30 = vmov 128.0  }
 0x872   : > { %v1245_v41 = vadd.f32 %v1243_v39, %v1237_v38  ;;  %v1223_v45 = vmul.f32 %v1786_v60, %v1222_v37  ;;  %1787 = vrcp.f32 %v2068_v30 }
 0x874   : > { %v1251_v22 = vadd.f32 %v1249_v8, %v1245_v41  ;;  %v1224_v44 = vadd.f32 %v1786_v60, %v1223_v45 }
 0x876   : > { %v1257_v49 = vadd.f32 %v1255_v46, %v1251_v22  ;;  %v1228_v18 = vsel %vm1227_vm8, %v1786_v60, %v1224_v44 }
 0x877   : > { %v1233_v42 = vsel %vm1230_vm9, %v1232_v47, %v1228_v18 }
 0x878   : > { %v1259_v0 = vadd.f32 %v1257_v49, %v2330_v59  ;;  %v1265_v50 = vmul.f32 %v1257_v49, %v2330_v59  ;;  %v1236_v27 = vmul.f32 %v1776_v43, %v1233_v42  ;;  %v1242_v12 = vmul.f32 %v1778_v4, %v1233_v42  ;;  %v1794_v43 = vld [vmem:[%s2294_s13 + $0x8] sm:$0xff]  ;;  %v1788_v31 = vpop.eup %1787 }
 0x879   : > { %v1248_v51 = vmul.f32 %v1780_v6, %v1233_v42  ;;  %v1254_v34 = vmul.f32 %v1784_v14, %v1233_v42  ;;  %v1374_v33 = vmul.f32 128.0, %v1788_v31  ;;  %vm1378_vm14 = vweird.f32 %v1788_v31 }
 0x87a   : > { %v1261_v52 = vmul.f32 0.1, %v1259_v0  ;;  %v1267_v16 = vmul.f32 0.1, %v1265_v50  ;;  %v1238_v53 = vmul.f32 %v1236_v27, %v2448_v15  ;;  %v1244_v54 = vmul.f32 %v1242_v12, %v2453_v24 }
 0x87b   : > { %v1250_v58 = vmul.f32 %v1248_v51, %v2455_v25  ;;  %v1256_v61 = vmul.f32 %v1254_v34, %v2500_v23  ;;  %v1727_v25 = vld [vmem:[%s2581_s9] ss:$0 sm:$0xff]  ;;  %v1375_v35 = vsub.f32 1.0, %v1374_v33 }
 0x87c   : > { %v1263_v13 = vadd.f32 %v1793_v55, %v1261_v52  ;;  %v1269_v56 = vadd.f32 %v1793_v55, %v1267_v16  ;;  %v1246_v57 = vadd.f32 %v1244_v54, %v1238_v53  ;;  %v1728_v23 = vld [vmem:[%s2579_s7] ss:$0 sm:$0xff] }
 0x87d   : > { %v1376_v37 = vmul.f32 %v1788_v31, %v1375_v35  ;;  %v1729_v54 = vld [vmem:[%s2582_s10] ss:$0 sm:$0xff] }
 0x87e   : > { %1306 = vmatmul.f32.vlgmr.msrb.gmra.mxu3 %v1263_v13  ;;  %1354 = vmatmul.f32.vlgmr.msrb.gmra.mxu1 %v1269_v56  ;;  %v1252_v59 = vadd.f32 %v1250_v58, %v1246_v57  ;;  %v1730_v56 = vld [vmem:[%s2583_s11] ss:$0 sm:$0xff] }
 0x87f   : > { %v1377_v38 = vadd.f32 %v1788_v31, %v1376_v37 }
 0x880   : > { %v1258_v62 = vadd.f32 %v1256_v61, %v1252_v59 }
 0x881   : > { %v1379_v39 = vsel %vm1378_vm14, %v1788_v31, %v1377_v38 }
 0x882   : > { %v1260_v63 = vadd.f32 %v1258_v62, %v2333_v1  ;;  %v1266_v2 = vmul.f32 %v1258_v62, %v2333_v1 }
 0x884   : > { %v1262_v15 = vmul.f32 0.1, %v1260_v63  ;;  %v1268_v3 = vmul.f32 0.1, %v1266_v2 }
 0x886   : > { %v1264_v24 = vadd.f32 %v1794_v43, %v1262_v15  ;;  %v1270_v4 = vadd.f32 %v1794_v43, %v1268_v3 }
 0x888   : > { %1309 = vmatmul.f32.gmra.mxu3 %v1264_v24  ;;  %1357 = vmatmul.f32.gmra.mxu1 %v1270_v4 }
 0x8fb   : > { %v1355_v5 = vpop.f32.mrf.mxu1 }
 0x8fc   : > { %v1356_v6 = vadd.f32 %v1727_v25, %v1355_v5 }
 0x8fe   : > { %v1363_v48 = vmul.f32 0.01, %v1356_v6  ;;  %vm1361_vm10 = vcmp.ge.f32.partialorder %v1356_v6, 0.0 }
 0x900   : > { %v1365_v7 = vsel %vm1361_vm10, %v1356_v6, %v1363_v48 }
 0x901   : > { %v1307_v10 = vpop.f32.mrf.mxu3 }
 0x902   : > { %v1308_v1 = vadd.f32 %v1728_v23, %v1307_v10 }
 0x904   : > { %v1315_v14 = vmul.f32 0.01, %v1308_v1  ;;  %vm1313_vm11 = vcmp.ge.f32.partialorder %v1308_v1, 0.0 }
 0x905   : > { %v1358_v17 = vpop.f32.mrf.mxu1 }
 0x906   : > { %v1317_v19 = vsel %vm1313_vm11, %v1308_v1, %v1315_v14  ;;  %v1359_v20 = vadd.f32 %v1727_v25, %v1358_v17 }
 0x907   : > { %v1367_v32 = vadd.f32 %v1365_v7, %v1317_v19 }
 0x908   : > { %v1364_v36 = vmul.f32 0.01, %v1359_v20  ;;  %vm1362_vm12 = vcmp.ge.f32.partialorder %v1359_v20, 0.0 }
 0x909   : > { %1369 = vadd.xlane.f32.xlu1 %v1367_v32 }
 0x90a   : > { %v1366_v28 = vsel %vm1362_vm12, %v1359_v20, %v1364_v36 }
 0x90b   : > { %v1310_v21 = vpop.f32.mrf.mxu3 }
 0x90c   : > { %v1311_v9 = vadd.f32 %v1728_v23, %v1310_v21 }
 0x90e   : > { %v1316_v26 = vmul.f32 0.01, %v1311_v9  ;;  %vm1314_vm13 = vcmp.ge.f32.partialorder %v1311_v9, 0.0 }
 0x910   : > { %v1318_v60 = vsel %vm1314_vm13, %v1311_v9, %v1316_v26 }
 0x911   : > { %v1368_v29 = vadd.f32 %v1366_v28, %v1318_v60 }
 0x913   : > { %1371 = vadd.xlane.f32.xlu2 %v1368_v29 }
 0x97c   : > { %v1370_v40 = vpop.xlane.xlu1 %1369 }
 0x97d   : > { %v1380_v11 = vmul.f32 %v1379_v39, %v1370_v40 }
 0x97f   : > { %v1382_v41 = vsub.f32 %v1367_v32, %v1380_v11 }
 0x981   : > { %v1384_v8 = vmul.f32 %v1382_v41, %v1382_v41 }
 0x983   : > { %1386 = vadd.xlane.f32.xlu0 %v1384_v8 }
 0x986   : > { %v1372_v45 = vpop.xlane.xlu2 %1371 }
 0x987   : > { %v1381_v46 = vmul.f32 %v1379_v39, %v1372_v45 }
 0x989   : > { %v1383_v22 = vsub.f32 %v1368_v29, %v1381_v46 }
 0x98b   : > { %v1385_v44 = vmul.f32 %v1383_v22, %v1383_v22 }
 0x98d   : > { %1388 = vadd.xlane.f32.xlu1 %v1385_v44 }
 0x9f6   : > { %v1387_v47 = vpop.xlane.xlu0 %1386 }
 0x9f7   : > { %v1390_v49 = vmul.f32 %v1387_v47, %v1379_v39 }
 0x9f9   : > { %v1392_v18 = vadd.f32 1e-05, %v1390_v49 }
 0x9fb   : > { %1789 = vrsqrt.f32 %v1392_v18  ;;  %vm1400_vm1 = vweird.f32 %v1392_v18 }
 0xa00   : > { %v1389_v42 = vpop.xlane.xlu1 %1388 }
 0xa01   : > { %v1790_v0 = vpop.eup %1789  ;;  %v1391_v50 = vmul.f32 %v1389_v42, %v1379_v39 }
 0xa02   : > { %v1395_v27 = vmul.f32 %v1790_v0, %v1392_v18  ;;  %vm1401_vm15 = vweird.f32 %v1790_v0 }
 0xa03   : > { %v1393_v12 = vadd.f32 1e-05, %v1391_v50  ;;  %vm1402_vm2 = vmor %vm1400_vm1, %vm1401_vm15 }
 0xa04   : > { %v1396_v51 = vmul.f32 %v1790_v0, %v1395_v27 }
 0xa05   : > { %1791 = vrsqrt.f32 %v1393_v12  ;;  %vm1410_vm3 = vweird.f32 %v1393_v12 }
 0xa06   : > { %v1397_v34 = vmul.f32 0.5, %v1396_v51 }
 0xa08   : > { %v1398_v52 = vsub.f32 1.5, %v1397_v34 }
 0xa0a   : > { %v1399_v16 = vmul.f32 %v1790_v0, %v1398_v52 }
 0xa0b   : > { %v1792_v53 = vpop.eup %1791 }
 0xa0c   : > { %v1403_v55 = vsel %vm1402_vm2, %v1790_v0, %v1399_v16  ;;  %v1405_v13 = vmul.f32 %v1792_v53, %v1393_v12  ;;  %vm1411_vm0 = vweird.f32 %v1792_v53 }
 0xa0d   : > { %v1414_v57 = vmul.f32 %v1403_v55, %v1382_v41  ;;  %vm1412_vm4 = vmor %vm1410_vm3, %vm1411_vm0 }
 0xa0e   : > { %v1406_v58 = vmul.f32 %v1792_v53, %v1405_v13 }
 0xa0f   : > { %v1419_v59 = vmul.f32 %v1729_v54, %v1414_v57 }
 0xa10   : > { %v1407_v61 = vmul.f32 0.5, %v1406_v58 }
 0xa11   : > { %v1424_v62 = vadd.f32 %v1730_v56, %v1419_v59 }
 0xa12   : > { %v1408_v63 = vsub.f32 1.5, %v1407_v61 }
 0xa13   : > { %1426 = vst [vmem:[%s541_s0] sm:$0xff] %v1424_v62 }
 0xa14   : > { %v1409_v2 = vmul.f32 %v1792_v53, %v1408_v63 }
 0xa16   : > { %v1413_v15 = vsel %vm1412_vm4, %v1792_v53, %v1409_v2 }
 0xa17   : > { %v1415_v3 = vmul.f32 %v1413_v15, %v1383_v22 }
 0xa19   : > { %v1420_v43 = vmul.f32 %v1729_v54, %v1415_v3 }
 0xa1b   : > { %v1425_v24 = vadd.f32 %v1730_v56, %v1420_v43 }
 0xa1d   : > { %1427 = vst [vmem:[%s541_s0 + $0x8] sm:$0xff] %v1425_v24 }
 0xa1e   : > { %2002 = shalt.err (!%p1999_p11)
}
 0xa1f   : > { %s2069_s28 = smov 128   ;;  %s2070_s21 = smov 8  }
 0xa20   : > { %1645 = dma.vmem_to_hbm [thread:$0]  (%p2229_p3), %s1442_s27, 256, %s1444_s29, %s1429_s25, %s2069_s28, %s2069_s28, %s2070_s21  }
 0xa21 PF: > { %s2621_s30 = sld [smem:[#allocation21_spill]]  ;;  %p2623_p12 = scmp.ge.s32.totalorder %s2057_s24, 2 }
 0xa23   : > { %p1668_p13 = pnand %p2623_p12, %p2171_p6 }
 0xa25   : > { %p1669_p0 = pneg %p1668_p13 }
 0xa27   : > { %s1458_s19 = sand.u32 1, %s2621_s30  }
 0xa28   : > { %s1459_s2 = scalar_lea.sflag [#allocation5], %s1458_s19 }
 0xa29   : > { %2040 = dma.done.wait (%p1669_p0), %s1459_s2, 256  }
 0xa2a   : > { %2042 = vsyncadd (%p1669_p0), %s1459_s2, 4294967040  ;;  %s2624_s24 = sld [smem:[#allocation24_spill]]  ;;  %s2627_s21 = smov %s2049_s22 }
 0xa2b   : > { %s2625_s0 = sld [smem:[#allocation22_spill]] }
 0xa2c   : > { %s2626_s23 = sld [smem:[#allocation26_spill]] }
 0xa30   : > { %p30_p5 = scmp.ge.s32.totalorder %s2624_s24, 4  }
 0xa31   : > { %s2628_s22 = smov %s2625_s0 }
 0xa32   :  { %32 = sbr.rel (!%p30_p5) target bundleno = 15 (0xf), region = 142 }
 0xa37   :  { %1465 = vsyncpa [#allocation4], 1 }
 0xa38   :  { %1467 = vsyncpa [#allocation4 + $0x1], 1 }
 0xa39   :  { %1468 = vsyncpa [#allocation7], 1 }
 0xa3a   :  { %1470 = vsyncpa [#allocation7 + $0x1], 1 }
 0xa3b   :  { %1471 = vsyncpa [#allocation10], 1 }
 0xa3c   :  { %1472 = vsyncpa [#allocation13], 1 }
 0xa3d   :  { %1473 = vsyncpa [#allocation5], 1 }
 0xa3e   :  { %1475 = vsyncpa [#allocation5 + $0x1], 1 }

</bundles_post_ra>
